<compile_context>
chip_gen: v7x
topology: tpu7x:2x2x1
jax: 0.10.0
libtpu: 0.0.40
codegen_flags: <defaults>
</compile_context>

<pallas_src>
import jax
import jax.numpy as jnp
from jax.experimental import pallas as pl
from jax.experimental.pallas import tpu as pltpu

NUM_LAYERS = 3
BN_EPS = 1e-5
GIN_EPS = 0.0      # GINConv default eps
C_PAD = 128        # lane-dense readout width (true num_classes is sliced out in the wrapper)


# ---------------------------------------------------------------------------
# Pallas kernel factory: one grid step processes GB graph-batches.
# All weight-pack offsets are static Python ints baked into the kernel body.
# ---------------------------------------------------------------------------
def make_qm9_kernel(GB, N, B, in_dim, emb, num_layers):
    Lemb = num_layers * emb

    # --- row offsets inside the packed [*, emb] weight-matrix operand (wmat) ---
    o_enc1 = 0
    o_enc2 = in_dim
    o_g1 = [in_dim + emb + l * emb for l in range(num_layers)]
    o_g2 = [in_dim + emb + Lemb + l * emb for l in range(num_layers)]

    # --- row indices inside the packed [*, emb] bias/gamma/beta operand (vecs) ---
    V_ENC_B1, V_ENC_B2 = 0, 1

    def vrow(l, k):  # k: 0=b1, 1=gamma1, 2=beta1, 3=b2, 4=gamma2, 5=beta2
        return 2 + 6 * l + k

    def kernel(x_ref, adj_ref, mask_ref, wmat_ref, wcls_ref, vecs_ref, out_ref):
        adj = adj_ref[...]                                        # [GB, N, N]

        # Fold the GIN self-term (1 + eps) * I into the adjacency ONCE: the per-layer
        # aggregation becomes a single MXU contraction, no extra VPU scale+add pass.
        r = jax.lax.broadcasted_iota(jnp.int32, (N, N), 0)
        c = jax.lax.broadcasted_iota(jnp.int32, (N, N), 1)
        adj_i = adj + jnp.where(r == c, jnp.float32(1.0 + GIN_EPS),
                                jnp.float32(0.0))[None]           # [GB, N, N]

        # Transpose-free max-pool bias: 0 for member nodes, -inf otherwise.
        pool_bias = jnp.where(mask_ref[...] > 0.5, 0.0, -jnp.inf)  # [GB, B, N]

        def lin(h2, roff, rlen, bidx):                            # h2: [GB*N, rlen]
            w = wmat_ref[roff:roff + rlen, :]                     # static slice of the pack
            return (jnp.dot(h2, w, preferred_element_type=jnp.float32)
                    + vecs_ref[bidx, :])

        def bn(z3, gidx, bidx):                                   # z3: [GB, N, emb]
            # BatchNorm1d training mode, stats per graph-batch segment (its N nodes).
            # One fused XLU reduction over [z | z*z]; var clamped >= 0 (f32 cancellation).
            zc = jnp.concatenate([z3, z3 * z3], axis=-1)          # [GB, N, 2*emb]
            s = jnp.mean(zc, axis=1, keepdims=True)               # [GB, 1, 2*emb]
            mean, mean_sq = s[..., :emb], s[..., emb:]
            var = jnp.maximum(mean_sq - mean * mean, 0.0)
            inv = jax.lax.rsqrt(var + BN_EPS)
            return (z3 - mean) * inv * vecs_ref[gidx, :] + vecs_ref[bidx, :]

        # ---- encoder: Linear -> ReLU -> Linear -> ReLU, all GB*N node rows in one push
        h2 = x_ref[...].reshape(GB * N, in_dim)
        h2 = jnp.maximum(lin(h2, o_enc1, in_dim, V_ENC_B1), 0.0)
        h2 = jnp.maximum(lin(h2, o_enc2, emb, V_ENC_B2), 0.0)     # [GB*N, emb]

        # initial readout logits (its bias is folded into the post-pool class bias)
        w0 = wcls_ref[0:emb, :]                                   # [emb, C_PAD]
        logits0 = jnp.dot(h2, w0, preferred_element_type=jnp.float32)  # [GB*N, C_PAD]

        pool_src = [logits0.reshape(GB, N, C_PAD)]
        for l in range(num_layers):
            h3 = h2.reshape(GB, N, emb)
            # GINConv: mlp((1+eps)*h_i + sum_j w_ij h_j) == mlp(adj_i @ h), block-diag per graph-batch
            z3 = jnp.einsum('gij,gjf->gif', adj_i, h3,
                            preferred_element_type=jnp.float32)
            z2 = lin(z3.reshape(GB * N, emb), o_g1[l], emb, vrow(l, 0))
            z3 = jnp.maximum(bn(z2.reshape(GB, N, emb), vrow(l, 1), vrow(l, 2)), 0.0)
            z2 = lin(z3.reshape(GB * N, emb), o_g2[l], emb, vrow(l, 3))
            h3 = jnp.maximum(bn(z2.reshape(GB, N, emb), vrow(l, 4), vrow(l, 5)), 0.0)
            h2 = h3.reshape(GB * N, emb)
            pool_src.append(h3)

        # ---- single max-pool pass over the lane-concatenated readout buffer
        P = jnp.concatenate(pool_src, axis=-1)                    # [GB, N, C_PAD + L*emb]
        pooled = jnp.max(P[:, None, :, :] + pool_bias[:, :, :, None], axis=2)  # [GB, B, .]

        pooled_cls = pooled[..., :C_PAD]                          # [GB, B, C_PAD]
        pooled_h = pooled[..., C_PAD:].reshape(GB * B, Lemb)      # [GB*B, L*emb]
        w_l = wcls_ref[emb:emb + Lemb, :]                         # [L*emb, C_PAD]
        bias_cls = wcls_ref[emb + Lemb, :]                        # [C_PAD] = lin0_b + sum_l lin_b
        out = (pooled_cls
               + jnp.dot(pooled_h, w_l,
                         preferred_element_type=jnp.float32).reshape(GB, B, C_PAD)
               + bias_cls)
        out_ref[...] = out                                        # lane-dense 128-wide store

    return kernel


# ---------------------------------------------------------------------------
# Wrapper: weight packing + pallas_call
# ---------------------------------------------------------------------------
def qm9_net_forward(x, adj, mask, params, *, grid_steps=2):
    G, N, in_dim = x.shape
    B = mask.shape[1]
    emb = params["enc_w2"].shape[1]
    C = params["lin0_w"].shape[1]
    L = params["gin_w1"].shape[0]

    # 2 steps fills both TensorCores on v7x; on v5e/v6e the difference vs 1 step is one
    # pipeline prologue. Fall back to a single step if G does not split evenly.
    steps = grid_steps if (grid_steps >= 1 and G % grid_steps == 0) else 1
    GB = G // steps

    def pad_c(a):  # zero-pad last (class) dim to a lane-dense width of 128
        return jnp.pad(a, [(0, 0)] * (a.ndim - 1) + [(0, C_PAD - C)])

    # ---- pack the 16 replicated parameter arrays into 3 operands ----
    # wmat: every [*, emb] weight matrix stacked along rows.
    wmat = jnp.concatenate(
        [params["enc_w1"], params["enc_w2"]]
        + [params["gin_w1"][l] for l in range(L)]
        + [params["gin_w2"][l] for l in range(L)], axis=0)            # [in+emb+2L*emb, emb]

    # wcls: initial readout weight, stacked per-layer readout weights, and the single
    # post-pool class bias row (lin0_b folds through the max pool; per-layer biases sum).
    bias_cls = params["lin0_b"] + jnp.sum(params["lin_b"], axis=0)    # [1, C]
    wcls = jnp.concatenate([pad_c(params["lin0_w"]),
                            pad_c(params["lin_w"].reshape(L * emb, C)),
                            pad_c(bias_cls)], axis=0)                 # [emb + L*emb + 1, 128]

    # vecs: every [1, emb] bias / gamma / beta row.
    vec_rows = [params["enc_b1"], params["enc_b2"]]
    for l in range(L):
        vec_rows += [params["gin_b1"][l], params["gin_g1"][l], params["gin_be1"][l],
                     params["gin_b2"][l], params["gin_g2"][l], params["gin_be2"][l]]
    vecs = jnp.concatenate(vec_rows, axis=0)                          # [2 + 6L, emb]

    kernel = make_qm9_kernel(GB, N, B, in_dim, emb, L)

    def rep(a):  # full-extent block, same for every grid step (packed weights)
        nd = a.ndim
        return pl.BlockSpec(a.shape, lambda s, _nd=nd: (0,) * _nd)

    out_padded = pl.pallas_call(
        kernel,
        out_shape=jax.ShapeDtypeStruct((G, B, C_PAD), jnp.float32),
        grid=(steps,),
        in_specs=[pl.BlockSpec((GB, N, in_dim), lambda s: (s, 0, 0)),
                  pl.BlockSpec((GB, N, N), lambda s: (s, 0, 0)),
                  pl.BlockSpec((GB, B, N), lambda s: (s, 0, 0)),
                  rep(wmat), rep(wcls), rep(vecs)],
        out_specs=pl.BlockSpec((GB, B, C_PAD), lambda s: (s, 0, 0)),
        compiler_params=pltpu.CompilerParams(
            # graph-batch blocks are independent -> shard across TCs (v7x megacore)
            dimension_semantics=("parallel",)),
    )(x, adj, mask, wmat, wcls, vecs)
    return out_padded[..., :C]                                        # [G, B, C]


# ---------------------------------------------------------------------------
# Pure-JAX reference (naive per-layer structure, torch-style BN formula, HIGHEST
# precision matmuls so the comparison is f32-vs-f32)
# ---------------------------------------------------------------------------
def _mm(a, b):
    return jnp.dot(a, b, precision=jax.lax.Precision.HIGHEST)


def _bn_ref(x, gamma, beta):
    mean = jnp.mean(x, axis=0, keepdims=True)
    var = jnp.mean((x - mean) ** 2, axis=0, keepdims=True)
    return (x - mean) / jnp.sqrt(var + BN_EPS) * gamma + beta


def qm9_net_reference(x, adj, mask, p):
    def pool(v, m):   # v [N, F], m [B, N] -> [B, F]
        return jnp.max(jnp.where(m[:, :, None] > 0.5, v[None, :, :], -jnp.inf), axis=1)

    def one(xg, ag, mg):
        h = jnp.maximum(_mm(xg, p["enc_w1"]) + p["enc_b1"], 0.0)
        h = jnp.maximum(_mm(h, p["enc_w2"]) + p["enc_b2"], 0.0)
        out = pool(_mm(h, p["lin0_w"]) + p["lin0_b"], mg)
        for l in range(NUM_LAYERS):
            z = (1.0 + GIN_EPS) * h + _mm(ag, h)
            z = jnp.maximum(_bn_ref(_mm(z, p["gin_w1"][l]) + p["gin_b1"][l],
                                    p["gin_g1"][l], p["gin_be1"][l]), 0.0)
            h = jnp.maximum(_bn_ref(_mm(z, p["gin_w2"][l]) + p["gin_b2"][l],
                                    p["gin_g2"][l], p["gin_be2"][l]), 0.0)
            out = out + _mm(pool(h, mg), p["lin_w"][l]) + p["lin_b"][l]
        return out

    return jax.vmap(one)(x, adj, mask)


# ---------------------------------------------------------------------------
# Deterministic parameter init (PyTorch Linear default: U(-1/sqrt(fan_in), ...))
# ---------------------------------------------------------------------------
def init_params(key, in_dim, emb, num_classes, num_layers):
    def linear(k, fan_in, fan_out):
        k1, k2 = jax.random.split(k)
        bound = 1.0 / jnp.sqrt(jnp.float32(fan_in))
        w = jax.random.uniform(k1, (fan_in, fan_out), jnp.float32, -bound, bound)
        b = jax.random.uniform(k2, (1, fan_out), jnp.float32, -bound, bound)
        return w, b

    n_lin = 3 + 3 * num_layers
    keys = jax.random.split(key, n_lin)
    ki = iter(keys)

    enc_w1, enc_b1 = linear(next(ki), in_dim, emb)
    enc_w2, enc_b2 = linear(next(ki), emb, emb)
    lin0_w, lin0_b = linear(next(ki), emb, num_classes)

    gw1, gb1, gw2, gb2, lw, lb = [], [], [], [], [], []
    for _ in range(num_layers):
        w1, b1 = linear(next(ki), emb, emb)
        w2, b2 = linear(next(ki), emb, emb)
        wl, bl = linear(next(ki), emb, num_classes)
        gw1.append(w1); gb1.append(b1); gw2.append(w2); gb2.append(b2)
        lw.append(wl); lb.append(bl)

    ones = jnp.ones((num_layers, 1, emb), jnp.float32)
    zeros = jnp.zeros((num_layers, 1, emb), jnp.float32)
    return dict(
        enc_w1=enc_w1, enc_b1=enc_b1, enc_w2=enc_w2, enc_b2=enc_b2,
        lin0_w=lin0_w, lin0_b=lin0_b,
        gin_w1=jnp.stack(gw1), gin_b1=jnp.stack(gb1),
        gin_g1=ones, gin_be1=zeros,
        gin_w2=jnp.stack(gw2), gin_b2=jnp.stack(gb2),
        gin_g2=ones, gin_be2=zeros,
        lin_w=jnp.stack(lw), lin_b=jnp.stack(lb),
    )


if __name__ == "__main__":
    G, N, IN_DIM, EMB, C, B = 4, 32, 16, 32, 8, 2

    key = jax.random.PRNGKey(0)
    kx, ka, kk, kp = jax.random.split(key, 4)

    # node features, G independent graph-batches
    x = jax.random.normal(kx, (G, N, IN_DIM), jnp.float32)

    # batch assignment: first half of nodes -> graph 0, second half -> graph 1
    batch = jnp.concatenate([jnp.zeros(N // 2, jnp.int32), jnp.ones(N // 2, jnp.int32)])
    mask1 = (batch[None, :] == jnp.arange(B, dtype=jnp.int32)[:, None]).astype(jnp.float32)
    mask = jnp.tile(mask1[None], (G, 1, 1))                      # [G, B, N], every graph non-empty

    # random weighted adjacency (edge_index + edge_weight densified), block-diagonal
    # per graph, no self loops
    weights = jax.random.uniform(ka, (G, N, N), jnp.float32)
    keep = (jax.random.uniform(kk, (G, N, N)) < 0.3).astype(jnp.float32)
    same_graph = (batch[:, None] == batch[None, :]).astype(jnp.float32)
    adj = weights * keep * same_graph[None] * (1.0 - jnp.eye(N, dtype=jnp.float32))[None]

    params = init_params(kp, IN_DIM, EMB, C, NUM_LAYERS)

    out = qm9_net_forward(x, adj, mask, params)
    out = jax.block_until_ready(out)

    ref = qm9_net_reference(x, adj, mask, params)
    assert out.shape == (G, B, C)
    assert jnp.allclose(out, ref, atol=1e-3, rtol=1e-3), (out, ref)

    print("KERNEL_OK")
</pallas_src>

<mosaic_0001>
module attributes {stable_mosaic.version = 11 : i64} {
  func.func @kernel(%arg0: i32, %arg1: memref<2x32x16xf32, #tpu.memory_space<vmem>>, %arg2: memref<2x32x32xf32, #tpu.memory_space<vmem>>, %arg3: memref<2x2x32xf32, #tpu.memory_space<vmem>>, %arg4: memref<240x32xf32, #tpu.memory_space<vmem>>, %arg5: memref<129x128xf32, #tpu.memory_space<vmem>>, %arg6: memref<20x32xf32, #tpu.memory_space<vmem>>, %arg7: memref<2x2x128xf32, #tpu.memory_space<vmem>>) attributes {dimension_semantics = [#tpu.dimension_semantics<parallel>], iteration_bounds = array<i64: 2>, scalar_prefetch = 0 : i64, scratch_operands = 0 : i64, tpu.core_type = #tpu.core_type<tc>, window_params = [{transform_indices = @transform_0, window_bounds = array<i64: 2, 32, 16>}, {transform_indices = @transform_1, window_bounds = array<i64: 2, 32, 32>}, {transform_indices = @transform_2, window_bounds = array<i64: 2, 2, 32>}, {pipeline_mode = #tpu.pipeline_mode<synchronous>, transform_indices = @transform_3, window_bounds = array<i64: 240, 32>}, {pipeline_mode = #tpu.pipeline_mode<synchronous>, transform_indices = @transform_4, window_bounds = array<i64: 129, 128>}, {pipeline_mode = #tpu.pipeline_mode<synchronous>, transform_indices = @transform_5, window_bounds = array<i64: 20, 32>}, {transform_indices = @transform_6, window_bounds = array<i64: 2, 2, 128>}]} {
    %c0 = arith.constant 0 : index
    %c0_0 = arith.constant 0 : index
    %c0_1 = arith.constant 0 : index
    %0 = vector.load %arg2[%c0, %c0_0, %c0_1] : memref<2x32x32xf32, #tpu.memory_space<vmem>>, vector<2x32x32xf32>
    %1 = tpu.iota {dimensions = array<i32: 0>} : vector<32x32xi32>
    %2 = tpu.iota {dimensions = array<i32: 1>} : vector<32x32xi32>
    %3 = arith.cmpi eq, %1, %2 : vector<32x32xi32>
    %cst = arith.constant 1.000000e+00 : f32
    %cst_2 = arith.constant 0.000000e+00 : f32
    %4 = vector.broadcast %cst : f32 to vector<32x32xf32>
    %5 = vector.broadcast %cst_2 : f32 to vector<32x32xf32>
    %6 = arith.select %3, %4, %5 : vector<32x32xi1>, vector<32x32xf32>
    %7 = vector.shape_cast %6 : vector<32x32xf32> to vector<1x32x32xf32>
    %8 = vector.broadcast %7 : vector<1x32x32xf32> to vector<2x32x32xf32>
    %9 = arith.addf %0, %8 : vector<2x32x32xf32>
    %c0_3 = arith.constant 0 : index
    %c0_4 = arith.constant 0 : index
    %c0_5 = arith.constant 0 : index
    %10 = vector.load %arg3[%c0_3, %c0_4, %c0_5] : memref<2x2x32xf32, #tpu.memory_space<vmem>>, vector<2x2x32xf32>
    %cst_6 = arith.constant 5.000000e-01 : f32
    %11 = vector.broadcast %cst_6 : f32 to vector<2x2x32xf32>
    %12 = arith.cmpf ogt, %10, %11 : vector<2x2x32xf32>
    %cst_7 = arith.constant 0.000000e+00 : f32
    %cst_8 = arith.constant 0xFF800000 : f32
    %13 = vector.broadcast %cst_7 : f32 to vector<2x2x32xf32>
    %14 = vector.broadcast %cst_8 : f32 to vector<2x2x32xf32>
    %15 = arith.select %12, %13, %14 : vector<2x2x32xi1>, vector<2x2x32xf32>
    %c0_9 = arith.constant 0 : index
    %c0_10 = arith.constant 0 : index
    %c0_11 = arith.constant 0 : index
    %16 = vector.load %arg1[%c0_9, %c0_10, %c0_11] : memref<2x32x16xf32, #tpu.memory_space<vmem>>, vector<2x32x16xf32>
    %17 = vector.shape_cast %16 : vector<2x32x16xf32> to vector<64x16xf32>
    %c0_12 = arith.constant 0 : index
    %c0_13 = arith.constant 0 : index
    %18 = vector.load %arg4[%c0_12, %c0_13] : memref<240x32xf32, #tpu.memory_space<vmem>>, vector<16x32xf32>
    %cst_14 = arith.constant dense<0.000000e+00> : vector<64x32xf32>
    %19 = tpu.matmul %17, %18, %cst_14 {dimension_numbers = #tpu.dot_dimension_numbers<[1], [0], [0], [1], [0, 0, 1, 1], [], []>} : vector<64x16xf32>, vector<16x32xf32>, vector<64x32xf32> -> vector<64x32xf32>
    %c0_15 = arith.constant 0 : index
    %c0_16 = arith.constant 0 : index
    %20 = vector.load %arg6[%c0_15, %c0_16] : memref<20x32xf32, #tpu.memory_space<vmem>>, vector<1x32xf32>
    %21 = vector.shape_cast %20 : vector<1x32xf32> to vector<32xf32>
    %22 = vector.shape_cast %21 : vector<32xf32> to vector<1x32xf32>
    %23 = vector.broadcast %22 : vector<1x32xf32> to vector<64x32xf32>
    %24 = arith.addf %19, %23 : vector<64x32xf32>
    %cst_17 = arith.constant 0.000000e+00 : f32
    %25 = vector.broadcast %cst_17 : f32 to vector<64x32xf32>
    %26 = arith.maximumf %24, %25 : vector<64x32xf32>
    %c16 = arith.constant 16 : index
    %c0_18 = arith.constant 0 : index
    %27 = vector.load %arg4[%c16, %c0_18] : memref<240x32xf32, #tpu.memory_space<vmem>>, vector<32x32xf32>
    %cst_19 = arith.constant dense<0.000000e+00> : vector<64x32xf32>
    %28 = tpu.matmul %26, %27, %cst_19 {dimension_numbers = #tpu.dot_dimension_numbers<[1], [0], [0], [1], [0, 0, 1, 1], [], []>} : vector<64x32xf32>, vector<32x32xf32>, vector<64x32xf32> -> vector<64x32xf32>
    %c1 = arith.constant 1 : index
    %c0_20 = arith.constant 0 : index
    %29 = vector.load %arg6[%c1, %c0_20] : memref<20x32xf32, #tpu.memory_space<vmem>>, vector<1x32xf32>
    %30 = vector.shape_cast %29 : vector<1x32xf32> to vector<32xf32>
    %31 = vector.shape_cast %30 : vector<32xf32> to vector<1x32xf32>
    %32 = vector.broadcast %31 : vector<1x32xf32> to vector<64x32xf32>
    %33 = arith.addf %28, %32 : vector<64x32xf32>
    %cst_21 = arith.constant 0.000000e+00 : f32
    %34 = vector.broadcast %cst_21 : f32 to vector<64x32xf32>
    %35 = arith.maximumf %33, %34 : vector<64x32xf32>
    %c0_22 = arith.constant 0 : index
    %c0_23 = arith.constant 0 : index
    %36 = vector.load %arg5[%c0_22, %c0_23] : memref<129x128xf32, #tpu.memory_space<vmem>>, vector<32x128xf32>
    %cst_24 = arith.constant dense<0.000000e+00> : vector<64x128xf32>
    %37 = tpu.matmul %35, %36, %cst_24 {dimension_numbers = #tpu.dot_dimension_numbers<[1], [0], [0], [1], [0, 0, 1, 1], [], []>} : vector<64x32xf32>, vector<32x128xf32>, vector<64x128xf32> -> vector<64x128xf32>
    %38 = vector.shape_cast %37 : vector<64x128xf32> to vector<2x32x128xf32>
    %39 = vector.shape_cast %35 : vector<64x32xf32> to vector<2x32x32xf32>
    "tpu.trace_start"() <{level = 10 : i32, message = "gij,gjf->gif"}> : () -> ()
    %cst_25 = arith.constant dense<0.000000e+00> : vector<2x32x32xf32>
    %40 = tpu.matmul %9, %39, %cst_25 {dimension_numbers = #tpu.dot_dimension_numbers<[2], [1], [1], [2], [0, 0, 0, 1, 1, 2], [0], [0]>} : vector<2x32x32xf32>, vector<2x32x32xf32>, vector<2x32x32xf32> -> vector<2x32x32xf32>
    "tpu.trace_stop"() : () -> ()
    %41 = vector.shape_cast %40 : vector<2x32x32xf32> to vector<64x32xf32>
    %c48 = arith.constant 48 : index
    %c0_26 = arith.constant 0 : index
    %42 = vector.load %arg4[%c48, %c0_26] : memref<240x32xf32, #tpu.memory_space<vmem>>, vector<32x32xf32>
    %cst_27 = arith.constant dense<0.000000e+00> : vector<64x32xf32>
    %43 = tpu.matmul %41, %42, %cst_27 {dimension_numbers = #tpu.dot_dimension_numbers<[1], [0], [0], [1], [0, 0, 1, 1], [], []>} : vector<64x32xf32>, vector<32x32xf32>, vector<64x32xf32> -> vector<64x32xf32>
    %c2 = arith.constant 2 : index
    %c0_28 = arith.constant 0 : index
    %44 = vector.load %arg6[%c2, %c0_28] : memref<20x32xf32, #tpu.memory_space<vmem>>, vector<1x32xf32>
    %45 = vector.shape_cast %44 : vector<1x32xf32> to vector<32xf32>
    %46 = vector.shape_cast %45 : vector<32xf32> to vector<1x32xf32>
    %47 = vector.broadcast %46 : vector<1x32xf32> to vector<64x32xf32>
    %48 = arith.addf %43, %47 : vector<64x32xf32>
    %49 = vector.shape_cast %48 : vector<64x32xf32> to vector<2x32x32xf32>
    %50 = arith.mulf %49, %49 : vector<2x32x32xf32>
    %51 = tpu.concatenate %49, %50 in 2 : vector<2x32x32xf32>, vector<2x32x32xf32> -> vector<2x32x64xf32>
    %cst_29 = arith.constant dense<0.000000e+00> : vector<2x64xf32>
    %52 = vector.multi_reduction <add>, %51, %cst_29 [1] : vector<2x32x64xf32> to vector<2x64xf32>
    %53 = vector.shape_cast %52 : vector<2x64xf32> to vector<2x1x64xf32>
    %cst_30 = arith.constant 3.200000e+01 : f32
    %54 = vector.broadcast %cst_30 : f32 to vector<2x1x64xf32>
    %55 = arith.divf %53, %54 : vector<2x1x64xf32>
    %56 = vector.extract_strided_slice %55 {offsets = [0, 0, 0], sizes = [2, 1, 32], strides = [1, 1, 1]} : vector<2x1x64xf32> to vector<2x1x32xf32>
    %57 = vector.extract_strided_slice %55 {offsets = [0, 0, 32], sizes = [2, 1, 32], strides = [1, 1, 1]} : vector<2x1x64xf32> to vector<2x1x32xf32>
    %58 = arith.mulf %56, %56 : vector<2x1x32xf32>
    %59 = arith.subf %57, %58 : vector<2x1x32xf32>
    %cst_31 = arith.constant 0.000000e+00 : f32
    %60 = vector.broadcast %cst_31 : f32 to vector<2x1x32xf32>
    %61 = arith.maximumf %59, %60 : vector<2x1x32xf32>
    %cst_32 = arith.constant 9.99999974E-6 : f32
    %62 = vector.broadcast %cst_32 : f32 to vector<2x1x32xf32>
    %63 = arith.addf %61, %62 : vector<2x1x32xf32>
    %64 = math.rsqrt %63 : vector<2x1x32xf32>
    %65 = vector.broadcast %56 : vector<2x1x32xf32> to vector<2x32x32xf32>
    %66 = arith.subf %49, %65 : vector<2x32x32xf32>
    %67 = vector.broadcast %64 : vector<2x1x32xf32> to vector<2x32x32xf32>
    %68 = arith.mulf %66, %67 : vector<2x32x32xf32>
    %c3 = arith.constant 3 : index
    %c0_33 = arith.constant 0 : index
    %69 = vector.load %arg6[%c3, %c0_33] : memref<20x32xf32, #tpu.memory_space<vmem>>, vector<1x32xf32>
    %70 = vector.shape_cast %69 : vector<1x32xf32> to vector<32xf32>
    %71 = vector.shape_cast %70 : vector<32xf32> to vector<1x1x32xf32>
    %72 = vector.broadcast %71 : vector<1x1x32xf32> to vector<2x32x32xf32>
    %73 = arith.mulf %68, %72 : vector<2x32x32xf32>
    %c4 = arith.constant 4 : index
    %c0_34 = arith.constant 0 : index
    %74 = vector.load %arg6[%c4, %c0_34] : memref<20x32xf32, #tpu.memory_space<vmem>>, vector<1x32xf32>
    %75 = vector.shape_cast %74 : vector<1x32xf32> to vector<32xf32>
    %76 = vector.shape_cast %75 : vector<32xf32> to vector<1x1x32xf32>
    %77 = vector.broadcast %76 : vector<1x1x32xf32> to vector<2x32x32xf32>
    %78 = arith.addf %73, %77 : vector<2x32x32xf32>
    %cst_35 = arith.constant 0.000000e+00 : f32
    %79 = vector.broadcast %cst_35 : f32 to vector<2x32x32xf32>
    %80 = arith.maximumf %78, %79 : vector<2x32x32xf32>
    %81 = vector.shape_cast %80 : vector<2x32x32xf32> to vector<64x32xf32>
    %c144 = arith.constant 144 : index
    %c0_36 = arith.constant 0 : index
    %82 = vector.load %arg4[%c144, %c0_36] : memref<240x32xf32, #tpu.memory_space<vmem>>, vector<32x32xf32>
    %cst_37 = arith.constant dense<0.000000e+00> : vector<64x32xf32>
    %83 = tpu.matmul %81, %82, %cst_37 {dimension_numbers = #tpu.dot_dimension_numbers<[1], [0], [0], [1], [0, 0, 1, 1], [], []>} : vector<64x32xf32>, vector<32x32xf32>, vector<64x32xf32> -> vector<64x32xf32>
    %c5 = arith.constant 5 : index
    %c0_38 = arith.constant 0 : index
    %84 = vector.load %arg6[%c5, %c0_38] : memref<20x32xf32, #tpu.memory_space<vmem>>, vector<1x32xf32>
    %85 = vector.shape_cast %84 : vector<1x32xf32> to vector<32xf32>
    %86 = vector.shape_cast %85 : vector<32xf32> to vector<1x32xf32>
    %87 = vector.broadcast %86 : vector<1x32xf32> to vector<64x32xf32>
    %88 = arith.addf %83, %87 : vector<64x32xf32>
    %89 = vector.shape_cast %88 : vector<64x32xf32> to vector<2x32x32xf32>
    %90 = arith.mulf %89, %89 : vector<2x32x32xf32>
    %91 = tpu.concatenate %89, %90 in 2 : vector<2x32x32xf32>, vector<2x32x32xf32> -> vector<2x32x64xf32>
    %cst_39 = arith.constant dense<0.000000e+00> : vector<2x64xf32>
    %92 = vector.multi_reduction <add>, %91, %cst_39 [1] : vector<2x32x64xf32> to vector<2x64xf32>
    %93 = vector.shape_cast %92 : vector<2x64xf32> to vector<2x1x64xf32>
    %cst_40 = arith.constant 3.200000e+01 : f32
    %94 = vector.broadcast %cst_40 : f32 to vector<2x1x64xf32>
    %95 = arith.divf %93, %94 : vector<2x1x64xf32>
    %96 = vector.extract_strided_slice %95 {offsets = [0, 0, 0], sizes = [2, 1, 32], strides = [1, 1, 1]} : vector<2x1x64xf32> to vector<2x1x32xf32>
    %97 = vector.extract_strided_slice %95 {offsets = [0, 0, 32], sizes = [2, 1, 32], strides = [1, 1, 1]} : vector<2x1x64xf32> to vector<2x1x32xf32>
    %98 = arith.mulf %96, %96 : vector<2x1x32xf32>
    %99 = arith.subf %97, %98 : vector<2x1x32xf32>
    %cst_41 = arith.constant 0.000000e+00 : f32
    %100 = vector.broadcast %cst_41 : f32 to vector<2x1x32xf32>
    %101 = arith.maximumf %99, %100 : vector<2x1x32xf32>
    %cst_42 = arith.constant 9.99999974E-6 : f32
    %102 = vector.broadcast %cst_42 : f32 to vector<2x1x32xf32>
    %103 = arith.addf %101, %102 : vector<2x1x32xf32>
    %104 = math.rsqrt %103 : vector<2x1x32xf32>
    %105 = vector.broadcast %96 : vector<2x1x32xf32> to vector<2x32x32xf32>
    %106 = arith.subf %89, %105 : vector<2x32x32xf32>
    %107 = vector.broadcast %104 : vector<2x1x32xf32> to vector<2x32x32xf32>
    %108 = arith.mulf %106, %107 : vector<2x32x32xf32>
    %c6 = arith.constant 6 : index
    %c0_43 = arith.constant 0 : index
    %109 = vector.load %arg6[%c6, %c0_43] : memref<20x32xf32, #tpu.memory_space<vmem>>, vector<1x32xf32>
    %110 = vector.shape_cast %109 : vector<1x32xf32> to vector<32xf32>
    %111 = vector.shape_cast %110 : vector<32xf32> to vector<1x1x32xf32>
    %112 = vector.broadcast %111 : vector<1x1x32xf32> to vector<2x32x32xf32>
    %113 = arith.mulf %108, %112 : vector<2x32x32xf32>
    %c7 = arith.constant 7 : index
    %c0_44 = arith.constant 0 : index
    %114 = vector.load %arg6[%c7, %c0_44] : memref<20x32xf32, #tpu.memory_space<vmem>>, vector<1x32xf32>
    %115 = vector.shape_cast %114 : vector<1x32xf32> to vector<32xf32>
    %116 = vector.shape_cast %115 : vector<32xf32> to vector<1x1x32xf32>
    %117 = vector.broadcast %116 : vector<1x1x32xf32> to vector<2x32x32xf32>
    %118 = arith.addf %113, %117 : vector<2x32x32xf32>
    %cst_45 = arith.constant 0.000000e+00 : f32
    %119 = vector.broadcast %cst_45 : f32 to vector<2x32x32xf32>
    %120 = arith.maximumf %118, %119 : vector<2x32x32xf32>
    %121 = vector.shape_cast %120 : vector<2x32x32xf32> to vector<64x32xf32>
    %122 = vector.shape_cast %121 : vector<64x32xf32> to vector<2x32x32xf32>
    "tpu.trace_start"() <{level = 10 : i32, message = "gij,gjf->gif"}> : () -> ()
    %cst_46 = arith.constant dense<0.000000e+00> : vector<2x32x32xf32>
    %123 = tpu.matmul %9, %122, %cst_46 {dimension_numbers = #tpu.dot_dimension_numbers<[2], [1], [1], [2], [0, 0, 0, 1, 1, 2], [0], [0]>} : vector<2x32x32xf32>, vector<2x32x32xf32>, vector<2x32x32xf32> -> vector<2x32x32xf32>
    "tpu.trace_stop"() : () -> ()
    %124 = vector.shape_cast %123 : vector<2x32x32xf32> to vector<64x32xf32>
    %c80 = arith.constant 80 : index
    %c0_47 = arith.constant 0 : index
    %125 = vector.load %arg4[%c80, %c0_47] : memref<240x32xf32, #tpu.memory_space<vmem>>, vector<32x32xf32>
    %cst_48 = arith.constant dense<0.000000e+00> : vector<64x32xf32>
    %126 = tpu.matmul %124, %125, %cst_48 {dimension_numbers = #tpu.dot_dimension_numbers<[1], [0], [0], [1], [0, 0, 1, 1], [], []>} : vector<64x32xf32>, vector<32x32xf32>, vector<64x32xf32> -> vector<64x32xf32>
    %c8 = arith.constant 8 : index
    %c0_49 = arith.constant 0 : index
    %127 = vector.load %arg6[%c8, %c0_49] : memref<20x32xf32, #tpu.memory_space<vmem>>, vector<1x32xf32>
    %128 = vector.shape_cast %127 : vector<1x32xf32> to vector<32xf32>
    %129 = vector.shape_cast %128 : vector<32xf32> to vector<1x32xf32>
    %130 = vector.broadcast %129 : vector<1x32xf32> to vector<64x32xf32>
    %131 = arith.addf %126, %130 : vector<64x32xf32>
    %132 = vector.shape_cast %131 : vector<64x32xf32> to vector<2x32x32xf32>
    %133 = arith.mulf %132, %132 : vector<2x32x32xf32>
    %134 = tpu.concatenate %132, %133 in 2 : vector<2x32x32xf32>, vector<2x32x32xf32> -> vector<2x32x64xf32>
    %cst_50 = arith.constant dense<0.000000e+00> : vector<2x64xf32>
    %135 = vector.multi_reduction <add>, %134, %cst_50 [1] : vector<2x32x64xf32> to vector<2x64xf32>
    %136 = vector.shape_cast %135 : vector<2x64xf32> to vector<2x1x64xf32>
    %cst_51 = arith.constant 3.200000e+01 : f32
    %137 = vector.broadcast %cst_51 : f32 to vector<2x1x64xf32>
    %138 = arith.divf %136, %137 : vector<2x1x64xf32>
    %139 = vector.extract_strided_slice %138 {offsets = [0, 0, 0], sizes = [2, 1, 32], strides = [1, 1, 1]} : vector<2x1x64xf32> to vector<2x1x32xf32>
    %140 = vector.extract_strided_slice %138 {offsets = [0, 0, 32], sizes = [2, 1, 32], strides = [1, 1, 1]} : vector<2x1x64xf32> to vector<2x1x32xf32>
    %141 = arith.mulf %139, %139 : vector<2x1x32xf32>
    %142 = arith.subf %140, %141 : vector<2x1x32xf32>
    %cst_52 = arith.constant 0.000000e+00 : f32
    %143 = vector.broadcast %cst_52 : f32 to vector<2x1x32xf32>
    %144 = arith.maximumf %142, %143 : vector<2x1x32xf32>
    %cst_53 = arith.constant 9.99999974E-6 : f32
    %145 = vector.broadcast %cst_53 : f32 to vector<2x1x32xf32>
    %146 = arith.addf %144, %145 : vector<2x1x32xf32>
    %147 = math.rsqrt %146 : vector<2x1x32xf32>
    %148 = vector.broadcast %139 : vector<2x1x32xf32> to vector<2x32x32xf32>
    %149 = arith.subf %132, %148 : vector<2x32x32xf32>
    %150 = vector.broadcast %147 : vector<2x1x32xf32> to vector<2x32x32xf32>
    %151 = arith.mulf %149, %150 : vector<2x32x32xf32>
    %c9 = arith.constant 9 : index
    %c0_54 = arith.constant 0 : index
    %152 = vector.load %arg6[%c9, %c0_54] : memref<20x32xf32, #tpu.memory_space<vmem>>, vector<1x32xf32>
    %153 = vector.shape_cast %152 : vector<1x32xf32> to vector<32xf32>
    %154 = vector.shape_cast %153 : vector<32xf32> to vector<1x1x32xf32>
    %155 = vector.broadcast %154 : vector<1x1x32xf32> to vector<2x32x32xf32>
    %156 = arith.mulf %151, %155 : vector<2x32x32xf32>
    %c10 = arith.constant 10 : index
    %c0_55 = arith.constant 0 : index
    %157 = vector.load %arg6[%c10, %c0_55] : memref<20x32xf32, #tpu.memory_space<vmem>>, vector<1x32xf32>
    %158 = vector.shape_cast %157 : vector<1x32xf32> to vector<32xf32>
    %159 = vector.shape_cast %158 : vector<32xf32> to vector<1x1x32xf32>
    %160 = vector.broadcast %159 : vector<1x1x32xf32> to vector<2x32x32xf32>
    %161 = arith.addf %156, %160 : vector<2x32x32xf32>
    %cst_56 = arith.constant 0.000000e+00 : f32
    %162 = vector.broadcast %cst_56 : f32 to vector<2x32x32xf32>
    %163 = arith.maximumf %161, %162 : vector<2x32x32xf32>
    %164 = vector.shape_cast %163 : vector<2x32x32xf32> to vector<64x32xf32>
    %c176 = arith.constant 176 : index
    %c0_57 = arith.constant 0 : index
    %165 = vector.load %arg4[%c176, %c0_57] : memref<240x32xf32, #tpu.memory_space<vmem>>, vector<32x32xf32>
    %cst_58 = arith.constant dense<0.000000e+00> : vector<64x32xf32>
    %166 = tpu.matmul %164, %165, %cst_58 {dimension_numbers = #tpu.dot_dimension_numbers<[1], [0], [0], [1], [0, 0, 1, 1], [], []>} : vector<64x32xf32>, vector<32x32xf32>, vector<64x32xf32> -> vector<64x32xf32>
    %c11 = arith.constant 11 : index
    %c0_59 = arith.constant 0 : index
    %167 = vector.load %arg6[%c11, %c0_59] : memref<20x32xf32, #tpu.memory_space<vmem>>, vector<1x32xf32>
    %168 = vector.shape_cast %167 : vector<1x32xf32> to vector<32xf32>
    %169 = vector.shape_cast %168 : vector<32xf32> to vector<1x32xf32>
    %170 = vector.broadcast %169 : vector<1x32xf32> to vector<64x32xf32>
    %171 = arith.addf %166, %170 : vector<64x32xf32>
    %172 = vector.shape_cast %171 : vector<64x32xf32> to vector<2x32x32xf32>
    %173 = arith.mulf %172, %172 : vector<2x32x32xf32>
    %174 = tpu.concatenate %172, %173 in 2 : vector<2x32x32xf32>, vector<2x32x32xf32> -> vector<2x32x64xf32>
    %cst_60 = arith.constant dense<0.000000e+00> : vector<2x64xf32>
    %175 = vector.multi_reduction <add>, %174, %cst_60 [1] : vector<2x32x64xf32> to vector<2x64xf32>
    %176 = vector.shape_cast %175 : vector<2x64xf32> to vector<2x1x64xf32>
    %cst_61 = arith.constant 3.200000e+01 : f32
    %177 = vector.broadcast %cst_61 : f32 to vector<2x1x64xf32>
    %178 = arith.divf %176, %177 : vector<2x1x64xf32>
    %179 = vector.extract_strided_slice %178 {offsets = [0, 0, 0], sizes = [2, 1, 32], strides = [1, 1, 1]} : vector<2x1x64xf32> to vector<2x1x32xf32>
    %180 = vector.extract_strided_slice %178 {offsets = [0, 0, 32], sizes = [2, 1, 32], strides = [1, 1, 1]} : vector<2x1x64xf32> to vector<2x1x32xf32>
    %181 = arith.mulf %179, %179 : vector<2x1x32xf32>
    %182 = arith.subf %180, %181 : vector<2x1x32xf32>
    %cst_62 = arith.constant 0.000000e+00 : f32
    %183 = vector.broadcast %cst_62 : f32 to vector<2x1x32xf32>
    %184 = arith.maximumf %182, %183 : vector<2x1x32xf32>
    %cst_63 = arith.constant 9.99999974E-6 : f32
    %185 = vector.broadcast %cst_63 : f32 to vector<2x1x32xf32>
    %186 = arith.addf %184, %185 : vector<2x1x32xf32>
    %187 = math.rsqrt %186 : vector<2x1x32xf32>
    %188 = vector.broadcast %179 : vector<2x1x32xf32> to vector<2x32x32xf32>
    %189 = arith.subf %172, %188 : vector<2x32x32xf32>
    %190 = vector.broadcast %187 : vector<2x1x32xf32> to vector<2x32x32xf32>
    %191 = arith.mulf %189, %190 : vector<2x32x32xf32>
    %c12 = arith.constant 12 : index
    %c0_64 = arith.constant 0 : index
    %192 = vector.load %arg6[%c12, %c0_64] : memref<20x32xf32, #tpu.memory_space<vmem>>, vector<1x32xf32>
    %193 = vector.shape_cast %192 : vector<1x32xf32> to vector<32xf32>
    %194 = vector.shape_cast %193 : vector<32xf32> to vector<1x1x32xf32>
    %195 = vector.broadcast %194 : vector<1x1x32xf32> to vector<2x32x32xf32>
    %196 = arith.mulf %191, %195 : vector<2x32x32xf32>
    %c13 = arith.constant 13 : index
    %c0_65 = arith.constant 0 : index
    %197 = vector.load %arg6[%c13, %c0_65] : memref<20x32xf32, #tpu.memory_space<vmem>>, vector<1x32xf32>
    %198 = vector.shape_cast %197 : vector<1x32xf32> to vector<32xf32>
    %199 = vector.shape_cast %198 : vector<32xf32> to vector<1x1x32xf32>
    %200 = vector.broadcast %199 : vector<1x1x32xf32> to vector<2x32x32xf32>
    %201 = arith.addf %196, %200 : vector<2x32x32xf32>
    %cst_66 = arith.constant 0.000000e+00 : f32
    %202 = vector.broadcast %cst_66 : f32 to vector<2x32x32xf32>
    %203 = arith.maximumf %201, %202 : vector<2x32x32xf32>
    %204 = vector.shape_cast %203 : vector<2x32x32xf32> to vector<64x32xf32>
    %205 = vector.shape_cast %204 : vector<64x32xf32> to vector<2x32x32xf32>
    "tpu.trace_start"() <{level = 10 : i32, message = "gij,gjf->gif"}> : () -> ()
    %cst_67 = arith.constant dense<0.000000e+00> : vector<2x32x32xf32>
    %206 = tpu.matmul %9, %205, %cst_67 {dimension_numbers = #tpu.dot_dimension_numbers<[2], [1], [1], [2], [0, 0, 0, 1, 1, 2], [0], [0]>} : vector<2x32x32xf32>, vector<2x32x32xf32>, vector<2x32x32xf32> -> vector<2x32x32xf32>
    "tpu.trace_stop"() : () -> ()
    %207 = vector.shape_cast %206 : vector<2x32x32xf32> to vector<64x32xf32>
    %c112 = arith.constant 112 : index
    %c0_68 = arith.constant 0 : index
    %208 = vector.load %arg4[%c112, %c0_68] : memref<240x32xf32, #tpu.memory_space<vmem>>, vector<32x32xf32>
    %cst_69 = arith.constant dense<0.000000e+00> : vector<64x32xf32>
    %209 = tpu.matmul %207, %208, %cst_69 {dimension_numbers = #tpu.dot_dimension_numbers<[1], [0], [0], [1], [0, 0, 1, 1], [], []>} : vector<64x32xf32>, vector<32x32xf32>, vector<64x32xf32> -> vector<64x32xf32>
    %c14 = arith.constant 14 : index
    %c0_70 = arith.constant 0 : index
    %210 = vector.load %arg6[%c14, %c0_70] : memref<20x32xf32, #tpu.memory_space<vmem>>, vector<1x32xf32>
    %211 = vector.shape_cast %210 : vector<1x32xf32> to vector<32xf32>
    %212 = vector.shape_cast %211 : vector<32xf32> to vector<1x32xf32>
    %213 = vector.broadcast %212 : vector<1x32xf32> to vector<64x32xf32>
    %214 = arith.addf %209, %213 : vector<64x32xf32>
    %215 = vector.shape_cast %214 : vector<64x32xf32> to vector<2x32x32xf32>
    %216 = arith.mulf %215, %215 : vector<2x32x32xf32>
    %217 = tpu.concatenate %215, %216 in 2 : vector<2x32x32xf32>, vector<2x32x32xf32> -> vector<2x32x64xf32>
    %cst_71 = arith.constant dense<0.000000e+00> : vector<2x64xf32>
    %218 = vector.multi_reduction <add>, %217, %cst_71 [1] : vector<2x32x64xf32> to vector<2x64xf32>
    %219 = vector.shape_cast %218 : vector<2x64xf32> to vector<2x1x64xf32>
    %cst_72 = arith.constant 3.200000e+01 : f32
    %220 = vector.broadcast %cst_72 : f32 to vector<2x1x64xf32>
    %221 = arith.divf %219, %220 : vector<2x1x64xf32>
    %222 = vector.extract_strided_slice %221 {offsets = [0, 0, 0], sizes = [2, 1, 32], strides = [1, 1, 1]} : vector<2x1x64xf32> to vector<2x1x32xf32>
    %223 = vector.extract_strided_slice %221 {offsets = [0, 0, 32], sizes = [2, 1, 32], strides = [1, 1, 1]} : vector<2x1x64xf32> to vector<2x1x32xf32>
    %224 = arith.mulf %222, %222 : vector<2x1x32xf32>
    %225 = arith.subf %223, %224 : vector<2x1x32xf32>
    %cst_73 = arith.constant 0.000000e+00 : f32
    %226 = vector.broadcast %cst_73 : f32 to vector<2x1x32xf32>
    %227 = arith.maximumf %225, %226 : vector<2x1x32xf32>
    %cst_74 = arith.constant 9.99999974E-6 : f32
    %228 = vector.broadcast %cst_74 : f32 to vector<2x1x32xf32>
    %229 = arith.addf %227, %228 : vector<2x1x32xf32>
    %230 = math.rsqrt %229 : vector<2x1x32xf32>
    %231 = vector.broadcast %222 : vector<2x1x32xf32> to vector<2x32x32xf32>
    %232 = arith.subf %215, %231 : vector<2x32x32xf32>
    %233 = vector.broadcast %230 : vector<2x1x32xf32> to vector<2x32x32xf32>
    %234 = arith.mulf %232, %233 : vector<2x32x32xf32>
    %c15 = arith.constant 15 : index
    %c0_75 = arith.constant 0 : index
    %235 = vector.load %arg6[%c15, %c0_75] : memref<20x32xf32, #tpu.memory_space<vmem>>, vector<1x32xf32>
    %236 = vector.shape_cast %235 : vector<1x32xf32> to vector<32xf32>
    %237 = vector.shape_cast %236 : vector<32xf32> to vector<1x1x32xf32>
    %238 = vector.broadcast %237 : vector<1x1x32xf32> to vector<2x32x32xf32>
    %239 = arith.mulf %234, %238 : vector<2x32x32xf32>
    %c16_76 = arith.constant 16 : index
    %c0_77 = arith.constant 0 : index
    %240 = vector.load %arg6[%c16_76, %c0_77] : memref<20x32xf32, #tpu.memory_space<vmem>>, vector<1x32xf32>
    %241 = vector.shape_cast %240 : vector<1x32xf32> to vector<32xf32>
    %242 = vector.shape_cast %241 : vector<32xf32> to vector<1x1x32xf32>
    %243 = vector.broadcast %242 : vector<1x1x32xf32> to vector<2x32x32xf32>
    %244 = arith.addf %239, %243 : vector<2x32x32xf32>
    %cst_78 = arith.constant 0.000000e+00 : f32
    %245 = vector.broadcast %cst_78 : f32 to vector<2x32x32xf32>
    %246 = arith.maximumf %244, %245 : vector<2x32x32xf32>
    %247 = vector.shape_cast %246 : vector<2x32x32xf32> to vector<64x32xf32>
    %c208 = arith.constant 208 : index
    %c0_79 = arith.constant 0 : index
    %248 = vector.load %arg4[%c208, %c0_79] : memref<240x32xf32, #tpu.memory_space<vmem>>, vector<32x32xf32>
    %cst_80 = arith.constant dense<0.000000e+00> : vector<64x32xf32>
    %249 = tpu.matmul %247, %248, %cst_80 {dimension_numbers = #tpu.dot_dimension_numbers<[1], [0], [0], [1], [0, 0, 1, 1], [], []>} : vector<64x32xf32>, vector<32x32xf32>, vector<64x32xf32> -> vector<64x32xf32>
    %c17 = arith.constant 17 : index
    %c0_81 = arith.constant 0 : index
    %250 = vector.load %arg6[%c17, %c0_81] : memref<20x32xf32, #tpu.memory_space<vmem>>, vector<1x32xf32>
    %251 = vector.shape_cast %250 : vector<1x32xf32> to vector<32xf32>
    %252 = vector.shape_cast %251 : vector<32xf32> to vector<1x32xf32>
    %253 = vector.broadcast %252 : vector<1x32xf32> to vector<64x32xf32>
    %254 = arith.addf %249, %253 : vector<64x32xf32>
    %255 = vector.shape_cast %254 : vector<64x32xf32> to vector<2x32x32xf32>
    %256 = arith.mulf %255, %255 : vector<2x32x32xf32>
    %257 = tpu.concatenate %255, %256 in 2 : vector<2x32x32xf32>, vector<2x32x32xf32> -> vector<2x32x64xf32>
    %cst_82 = arith.constant dense<0.000000e+00> : vector<2x64xf32>
    %258 = vector.multi_reduction <add>, %257, %cst_82 [1] : vector<2x32x64xf32> to vector<2x64xf32>
    %259 = vector.shape_cast %258 : vector<2x64xf32> to vector<2x1x64xf32>
    %cst_83 = arith.constant 3.200000e+01 : f32
    %260 = vector.broadcast %cst_83 : f32 to vector<2x1x64xf32>
    %261 = arith.divf %259, %260 : vector<2x1x64xf32>
    %262 = vector.extract_strided_slice %261 {offsets = [0, 0, 0], sizes = [2, 1, 32], strides = [1, 1, 1]} : vector<2x1x64xf32> to vector<2x1x32xf32>
    %263 = vector.extract_strided_slice %261 {offsets = [0, 0, 32], sizes = [2, 1, 32], strides = [1, 1, 1]} : vector<2x1x64xf32> to vector<2x1x32xf32>
    %264 = arith.mulf %262, %262 : vector<2x1x32xf32>
    %265 = arith.subf %263, %264 : vector<2x1x32xf32>
    %cst_84 = arith.constant 0.000000e+00 : f32
    %266 = vector.broadcast %cst_84 : f32 to vector<2x1x32xf32>
    %267 = arith.maximumf %265, %266 : vector<2x1x32xf32>
    %cst_85 = arith.constant 9.99999974E-6 : f32
    %268 = vector.broadcast %cst_85 : f32 to vector<2x1x32xf32>
    %269 = arith.addf %267, %268 : vector<2x1x32xf32>
    %270 = math.rsqrt %269 : vector<2x1x32xf32>
    %271 = vector.broadcast %262 : vector<2x1x32xf32> to vector<2x32x32xf32>
    %272 = arith.subf %255, %271 : vector<2x32x32xf32>
    %273 = vector.broadcast %270 : vector<2x1x32xf32> to vector<2x32x32xf32>
    %274 = arith.mulf %272, %273 : vector<2x32x32xf32>
    %c18 = arith.constant 18 : index
    %c0_86 = arith.constant 0 : index
    %275 = vector.load %arg6[%c18, %c0_86] : memref<20x32xf32, #tpu.memory_space<vmem>>, vector<1x32xf32>
    %276 = vector.shape_cast %275 : vector<1x32xf32> to vector<32xf32>
    %277 = vector.shape_cast %276 : vector<32xf32> to vector<1x1x32xf32>
    %278 = vector.broadcast %277 : vector<1x1x32xf32> to vector<2x32x32xf32>
    %279 = arith.mulf %274, %278 : vector<2x32x32xf32>
    %c19 = arith.constant 19 : index
    %c0_87 = arith.constant 0 : index
    %280 = vector.load %arg6[%c19, %c0_87] : memref<20x32xf32, #tpu.memory_space<vmem>>, vector<1x32xf32>
    %281 = vector.shape_cast %280 : vector<1x32xf32> to vector<32xf32>
    %282 = vector.shape_cast %281 : vector<32xf32> to vector<1x1x32xf32>
    %283 = vector.broadcast %282 : vector<1x1x32xf32> to vector<2x32x32xf32>
    %284 = arith.addf %279, %283 : vector<2x32x32xf32>
    %cst_88 = arith.constant 0.000000e+00 : f32
    %285 = vector.broadcast %cst_88 : f32 to vector<2x32x32xf32>
    %286 = arith.maximumf %284, %285 : vector<2x32x32xf32>
    %287 = tpu.concatenate %38, %120, %203, %286 in 2 : vector<2x32x128xf32>, vector<2x32x32xf32>, vector<2x32x32xf32>, vector<2x32x32xf32> -> vector<2x32x224xf32>
    %288 = vector.shape_cast %287 : vector<2x32x224xf32> to vector<2x1x32x224xf32>
    %289 = vector.shape_cast %15 : vector<2x2x32xf32> to vector<2x2x32x1xf32>
    %290 = vector.broadcast %288 : vector<2x1x32x224xf32> to vector<2x2x32x224xf32>
    %291 = vector.broadcast %289 : vector<2x2x32x1xf32> to vector<2x2x32x224xf32>
    %292 = arith.addf %290, %291 : vector<2x2x32x224xf32>
    %cst_89 = arith.constant dense<0xFF800000> : vector<2x2x224xf32>
    %293 = vector.multi_reduction <maximumf>, %292, %cst_89 [2] : vector<2x2x32x224xf32> to vector<2x2x224xf32>
    %294 = vector.extract_strided_slice %293 {offsets = [0, 0, 0], sizes = [2, 2, 128], strides = [1, 1, 1]} : vector<2x2x224xf32> to vector<2x2x128xf32>
    %295 = vector.extract_strided_slice %293 {offsets = [0, 0, 128], sizes = [2, 2, 96], strides = [1, 1, 1]} : vector<2x2x224xf32> to vector<2x2x96xf32>
    %296 = vector.shape_cast %295 : vector<2x2x96xf32> to vector<4x96xf32>
    %c32 = arith.constant 32 : index
    %c0_90 = arith.constant 0 : index
    %297 = vector.load %arg5[%c32, %c0_90] : memref<129x128xf32, #tpu.memory_space<vmem>>, vector<96x128xf32>
    %c128 = arith.constant 128 : index
    %c0_91 = arith.constant 0 : index
    %298 = vector.load %arg5[%c128, %c0_91] : memref<129x128xf32, #tpu.memory_space<vmem>>, vector<1x128xf32>
    %299 = vector.shape_cast %298 : vector<1x128xf32> to vector<128xf32>
    %cst_92 = arith.constant dense<0.000000e+00> : vector<4x128xf32>
    %300 = tpu.matmul %296, %297, %cst_92 {dimension_numbers = #tpu.dot_dimension_numbers<[1], [0], [0], [1], [0, 0, 1, 1], [], []>} : vector<4x96xf32>, vector<96x128xf32>, vector<4x128xf32> -> vector<4x128xf32>
    %301 = vector.shape_cast %300 : vector<4x128xf32> to vector<2x2x128xf32>
    %302 = arith.addf %294, %301 : vector<2x2x128xf32>
    %303 = vector.shape_cast %299 : vector<128xf32> to vector<1x1x128xf32>
    %304 = vector.broadcast %303 : vector<1x1x128xf32> to vector<2x2x128xf32>
    %305 = arith.addf %302, %304 : vector<2x2x128xf32>
    %c0_93 = arith.constant 0 : index
    %c0_94 = arith.constant 0 : index
    %c0_95 = arith.constant 0 : index
    %306 = vector.load %arg7[%c0_93, %c0_94, %c0_95] : memref<2x2x128xf32, #tpu.memory_space<vmem>>, vector<2x2x128xf32>
    tpu.vector_store %arg7[%c0_93, %c0_94, %c0_95], %305 {strides = array<i32>} : memref<2x2x128xf32, #tpu.memory_space<vmem>>, vector<2x2x128xf32>,
    return
  }
  func.func @transform_0(%arg0: i32) -> (i32, i32, i32) {
    %c0_i32 = arith.constant 0 : i32
    %c0_i32_0 = arith.constant 0 : i32
    %c0_i32_1 = arith.constant 0 : i32
    return %arg0, %c0_i32, %c0_i32_0 : i32, i32, i32
  }
  func.func @transform_1(%arg0: i32) -> (i32, i32, i32) {
    %c0_i32 = arith.constant 0 : i32
    %c0_i32_0 = arith.constant 0 : i32
    %c0_i32_1 = arith.constant 0 : i32
    return %arg0, %c0_i32, %c0_i32_0 : i32, i32, i32
  }
  func.func @transform_2(%arg0: i32) -> (i32, i32, i32) {
    %c0_i32 = arith.constant 0 : i32
    %c0_i32_0 = arith.constant 0 : i32
    %c0_i32_1 = arith.constant 0 : i32
    return %arg0, %c0_i32, %c0_i32_0 : i32, i32, i32
  }
  func.func @transform_3(%arg0: i32) -> (i32, i32) {
    %c0_i32 = arith.constant 0 : i32
    %c0_i32_0 = arith.constant 0 : i32
    %c0_i32_1 = arith.constant 0 : i32
    return %c0_i32, %c0_i32_0 : i32, i32
  }
  func.func @transform_4(%arg0: i32) -> (i32, i32) {
    %c0_i32 = arith.constant 0 : i32
    %c0_i32_0 = arith.constant 0 : i32
    %c0_i32_1 = arith.constant 0 : i32
    return %c0_i32, %c0_i32_0 : i32, i32
  }
  func.func @transform_5(%arg0: i32) -> (i32, i32) {
    %c0_i32 = arith.constant 0 : i32
    %c0_i32_0 = arith.constant 0 : i32
    %c0_i32_1 = arith.constant 0 : i32
    return %c0_i32, %c0_i32_0 : i32, i32
  }
  func.func @transform_6(%arg0: i32) -> (i32, i32, i32) {
    %c0_i32 = arith.constant 0 : i32
    %c0_i32_0 = arith.constant 0 : i32
    %c0_i32_1 = arith.constant 0 : i32
    return %arg0, %c0_i32, %c0_i32_0 : i32, i32, i32
  }
}

</mosaic_0001>

<bundles_post_ra>
// kernel: tpu_custom_call.1
= control target key start
LH: loop header
LB: loop body
LE: loop exit
PB: predicated region body
PF: predicated region fallthrough
CT: control target
= control target key end

     0   :  { %11 = vsyncpa [#allocation3], 0  ;;  %s5791_s0 = inlined_call_operand.vmem [shape: f32[4,32,16], index: 0, kind: input, shape index: {}]   ;;  %s5792_s1 = inlined_call_operand.vmem [shape: f32[4,32,32], index: 1, kind: input, shape index: {}]   ;;  %s5793_s2 = inlined_call_operand.vmem [shape: f32[4,2,32], index: 2, kind: input, shape index: {}]   ;;  %s5794_s3 = inlined_call_operand.vmem [shape: f32[240,32], index: 3, kind: input, shape index: {}]   ;;  %s5795_s4 = inlined_call_operand.vmem [shape: f32[129,128], index: 4, kind: input, shape index: {}]   ;;  %s5796_s5 = inlined_call_operand.vmem [shape: f32[20,32], index: 5, kind: input, shape index: {}]   ;;  %s5797_s6 = inlined_call_operand.hbm [shape: f32[4,2,128], index: 6, kind: output, shape index: {}]  }
   0x1   :  { %13 = vsyncpa [#allocation3 + $0x1], 0  ;;  %s4532_s21 = smov 0   ;;  %s4534_s22 = smov 0  }
   0x2   :  { %s4536_s23 = smov 0   ;;  %s4538_s24 = smov 0  }
   0x3 LB: > { %s4553_s25 = sadd.s32 4294967295, %s4485_s24   ;;  %s3622_s26 = sadd.s32 4294967294, %s4485_s24   ;;  %s4485_s24 = sphi %s4538_s24, %s5821_s24   ;;  %s4481_s23 = sphi %s4536_s23, %s5820_s23   ;;  %s4477_s22 = sphi %s4534_s22, %s5819_s22   ;;  %s4473_s21 = sphi %s4532_s21, %s5818_s21  }
   0x4   : > { %s4557_s27 = sadd.s32 1, %s4485_s24   ;;  %s167_s28 = sadd.s32 1, %s4481_s23 }
   0x5   : > { %s164_s29 = ssub.s32 %s4485_s24, %s4557_s27  ;;  %p177_p0 = scmp.ne.s32.totalorder %s4481_s23, %s4477_s22 }
   0x6   : > { %p165_p1 = scmp.eq.s32.totalorder %s164_s29, 0  ;;  %p178_p2 = scmp.eq.s32.totalorder %s4553_s25, 1 }
   0x7   : > { %p183_p3 = scmp.ne.s32.totalorder %s4477_s22, %s4473_s21  ;;  %p184_p4 = scmp.eq.s32.totalorder %s3622_s26, 1 }
   0x8   : > { %s4568_s30 = scalar_select %p165_p1, %s4481_s23, %s167_s28  }
   0x9   : > { %p4570_p5 = por %p178_p2, %p177_p0  ;;  %p4574_p6 = por %p184_p4, %p183_p3 }
   0xa   : > { %p3625_p7 = scmp.ge.s32.totalorder %s4485_s24, 1  ;;  %p240_p8 = scmp.lt.s32.totalorder %s4485_s24, 3 }
   0xc   : > { %p241_p9 = pnand %p3625_p7, %p240_p8 }
   0xd   : > { %v348_v0 = vld [vmem:[%s5794_s3] sm:$0xff] (!%p241_p9)  ;;  %v349_v1 = vld [vmem:[%s5794_s3 + $0x8] sm:$0xff] (!%p241_p9)  ;;  %s3627_s13 = sshll.u32 (!%p241_p9), %s4553_s25, 1  ;;  %v493_v2 = vld [vmem:[%s5794_s3 + $0x10] sm:$0xff] (!%p241_p9)  ;;  %vm355_vm0 = vcmask (!%p241_p9), 130048   ;;  %vm502_vm1 = vcmask (!%p241_p9), 261120   ;;  %v311_v48 = vlaneseq (!%p241_p9) }
   0xe   : > { %244 = sbr.rel (%p241_p9) target bundleno = 5236 (0x1474), region = 44  ;;  %v4215_v3 = vpack.c.bf16 (!%p241_p9), %v349_v1, %v348_v0  ;;  %p283_p10 = scmp.lt.s32.totalorder (!%p241_p9), %s3627_s13, 3  ;;  %v494_v4 = vld [vmem:[%s5794_s3 + $0x18] sm:$0xff] (!%p241_p9)  ;;  %v495_v14 = vld [vmem:[%s5794_s3 + $0x20] sm:$0xff] (!%p241_p9)  ;;  %v496_v15 = vld [vmem:[%s5794_s3 + $0x28] sm:$0xff] (!%p241_p9)  ;;  %v5806_v53 = vmov (!%p241_p9), 0.0  }
   0xf   : > { %v4219_v5 = vpack.c.bf16 (!%p241_p9), %v494_v4, %v493_v2  ;;  %v4223_v16 = vpack.c.bf16 (!%p241_p9), %v496_v15, %v495_v14  ;;  %v640_v17 = vld [vmem:[%s5795_s4] sm:$0xff] (!%p241_p9)  ;;  %v641_v18 = vld [vmem:[%s5795_s4 + $0x8] sm:$0xff] (!%p241_p9)  ;;  %v642_v45 = vld [vmem:[%s5795_s4 + $0x10] sm:$0xff] (!%p241_p9)  ;;  %v4638_v49 = vshrl.u32 (!%p241_p9), %v311_v48, 7  ;;  %v317_v50 = vand.u32 (!%p241_p9), 127, %v311_v48  ;;  %s4488_s9 = smov (!%p241_p9), 32  }
  0x10   : > { %4216 = vmatprep.subr.bf16.mxu0 (!%p241_p9), %v4215_v3  ;;  %4349 = vmatprep.subr.bf16.mxu1 (!%p241_p9), %v4215_v3  ;;  %v4227_v19 = vpack.c.bf16 (!%p241_p9), %v641_v18, %v640_v17  ;;  %v3635_v20 = vld [vmem:[%s5796_s5] ss:$0 sm:$0xff] (!%p241_p9)  ;;  %v643_v46 = vld [vmem:[%s5795_s4 + $0x18] sm:$0xff] (!%p241_p9)  ;;  %vm1153_vm6 = vcmask (!%p241_p9), 523264   ;;  %s4489_s19 = smov (!%p241_p9), 96   ;;  %s4491_s14 = smov (!%p241_p9), 64  }
  0x11   : > { %4218 = vmatpush3.bf16.msra.mxu0 (!%p241_p9), %v4215_v3  ;;  %4350 = vmatpush3.bf16.msra.mxu1 (!%p241_p9), %v4215_v3  ;;  %v4231_v47 = vpack.c.bf16 (!%p241_p9), %v643_v46, %v642_v45  ;;  %v313_v51 = vadd.s32 (!%p241_p9), 8, %v4638_v49  ;;  %vm318_vm2 = vcmp.eq.s32.totalorder (!%p241_p9), %v4638_v49, %v317_v50  ;;  %v314_v58 = vadd.s32 (!%p241_p9), 16, %v4638_v49  ;;  %s3760_s16 = sshll.u32 (!%p241_p9), %s4553_s25, 6 }
  0x12   : > { %4220 = vmatprep.subr.bf16.mxu1 (!%p241_p9), %v4219_v5  ;;  %4228 = vmatprep.subr.bf16.mxu0 (!%p241_p9), %v4227_v19  ;;  %v322_v54 = vsel (!%p241_p9), %vm318_vm2, 1.0, %v5806_v53  ;;  %v315_v60 = vadd.s32 (!%p241_p9), 24, %v4638_v49  ;;  %vm4493_vm9 = vmmov (!%p241_p9), 0   ;;  %vm3294_vm10 = vcmask (!%p241_p9), 785408   ;;  %s5741_s29 = scalar_lea.hbm (!%p241_p9), %s5797_s6, %s3760_s16 }
  0x13   : > { %vm319_vm3 = vcmp.eq.s32.totalorder (!%p241_p9), %v313_v51, %v317_v50  ;;  %vm320_vm4 = vcmp.eq.s32.totalorder (!%p241_p9), %v314_v58, %v317_v50  ;;  %vm3391_vm11 = vcmask (!%p241_p9), 1041409   ;;  %vm3393_vm12 = vcmask (!%p241_p9), 1042434  }
  0x14   : > { %v323_v57 = vsel (!%p241_p9), %vm319_vm3, 1.0, %v5806_v53  ;;  %v324_v62 = vsel (!%p241_p9), %vm320_vm4, 1.0, %v5806_v53  ;;  %vm321_vm5 = vcmp.eq.s32.totalorder (!%p241_p9), %v315_v60, %v317_v50  ;;  %vm3395_vm13 = vcmask (!%p241_p9), 1043459  }
  0x15   : > { %s5823_s13 = smov (!%p283_p10, %s3627_s13), 3  ;;  %v325_v1 = vsel %vm321_vm5, 1.0, %v5806_v53 }
  0x16   : > { %s3758_s18 = sshll.u32 %s5823_s13, 5  ;;  %s3634_s28 = sshll.u32 %s5823_s13, 1 }
  0x17   : > { %s287_s26 = scalar_lea.vmem %s5791_s0, %s3758_s18  ;;  %s294_s10 = scalar_lea.vmem %s5792_s1, %s3758_s18 }
  0x18   : > { %v340_v6 = vld [vmem:[%s287_s26] sm:$0xff]  ;;  %v341_v7 = vld [vmem:[%s287_s26 + $0x8] sm:$0xff]  ;;  %v342_v8 = vld [vmem:[%s287_s26 + $0x10] sm:$0xff]  ;;  %s300_s18 = scalar_lea.vmem %s5793_s2, %s3634_s28 }
  0x19   : > { %3932 = vmatprep.mubr.msk.f32.mxu0 %vm355_vm0, %v340_v6  ;;  %v344_v9 = vld [vmem:[%s287_s26 + $0x20] sm:$0xff]  ;;  %v345_v10 = vld [vmem:[%s287_s26 + $0x28] sm:$0xff]  ;;  %v346_v11 = vld [vmem:[%s287_s26 + $0x30] sm:$0xff] }
  0x1a   : > { %3933 = vmatmul.mubr.msk.f32.vlgmr.msra.gmra.mrb[0].mxu0 %vm355_vm0, %v341_v7  ;;  %3938 = vmatprep.mubr.msk.f32.mxu1 %vm355_vm0, %v344_v9  ;;  %v343_v12 = vld [vmem:[%s287_s26 + $0x18] sm:$0xff]  ;;  %v303_v52 = vld [vmem:[%s294_s10] sm:$0xff]  ;;  %v304_v56 = vld [vmem:[%s294_s10 + $0x8] sm:$0xff] }
  0x1b   : > { %3935 = vmatprep.mubr.msk.f32.mxu0 %vm355_vm0, %v342_v8  ;;  %3939 = vmatmul.mubr.msk.f32.vlgmr.msra.gmra.mrb[0].mxu1 %vm355_vm0, %v345_v10  ;;  %v347_v13 = vld [vmem:[%s287_s26 + $0x38] sm:$0xff]  ;;  %v4648_v55 = vadd.f32 %v322_v54, %v303_v52  ;;  %v4652_v59 = vadd.f32 %v323_v57, %v304_v56  ;;  %v305_v61 = vld [vmem:[%s294_s10 + $0x10] sm:$0xff]  ;;  %v307_v3 = vld [vmem:[%s294_s10 + $0x20] sm:$0xff] }
  0x1c   : > { %3941 = vmatprep.mubr.msk.f32.mxu1 %vm355_vm0, %v346_v11  ;;  %4222 = vmatpush3.bf16.msra.mxu1 %v4219_v5  ;;  %v4658_v63 = vadd.f32 %v324_v62, %v305_v61  ;;  %v306_v0 = vld [vmem:[%s294_s10 + $0x18] sm:$0xff]  ;;  %v4663_v4 = vadd.f32 %v322_v54, %v307_v3  ;;  %v308_v5 = vld [vmem:[%s294_s10 + $0x28] sm:$0xff]  ;;  %v309_v7 = vld [vmem:[%s294_s10 + $0x30] sm:$0xff] }
  0x1d   : > { %4224 = vmatprep.subr.bf16.mxu1 %v4223_v16  ;;  %4230 = vmatpush3.bf16.msra.mxu0 %v4227_v19  ;;  %v4661_v2 = vadd.f32 %v325_v1, %v306_v0  ;;  %v4665_v6 = vadd.f32 %v323_v57, %v308_v5  ;;  %v4667_v8 = vadd.f32 %v324_v62, %v309_v7  ;;  %v310_v9 = vld [vmem:[%s294_s10 + $0x38] sm:$0xff]  ;;  %v3644_v11 = vld [vmem:[%s5796_s5 + $0x1] ss:$0 sm:$0xff]  ;;  %v3669_v5 = vld [vmem:[%s5796_s5 + $0x2] ss:$0 sm:$0xff]  ;;  %s4495_s10 = smov [#allocation2]  }
  0x1e   : > { %3936 = vmatmul.mubr.msk.f32.gmra.mrb[2].mxu0 %vm355_vm0, %v343_v12  ;;  %4232 = vmatprep.subr.bf16.mxu0 %v4231_v47  ;;  %v4669_v10 = vadd.f32 %v325_v1, %v310_v9 }
  0x1f   : > { %3942 = vmatmul.mubr.msk.f32.gmra.mrb[2].mxu1 %vm355_vm0, %v347_v13 }
  0x20   : > { %4226 = vmatpush3.bf16.msra.mxu1 %v4223_v16 }
  0x21   : > { %4234 = vmatpush3.bf16.msra.mxu0 %v4231_v47 }
  0xed   : > { %v3934_v21 = vpop.f32.mrb[0].mxu0 }
  0xee   : > { %v452_v22 = vadd.f32 %v3934_v21, %v3635_v20  ;;  %v446_v23 = vpop.f32.mrb[1].mxu0  ;;  %v3940_v24 = vpop.f32.mrb[0].mxu1 }
  0xef   : > { %v447_v25 = vadd.f32 %v3635_v20, %v446_v23  ;;  %v466_v26 = vpop.f32.mrb[1].mxu1  ;;  %v472_v36 = vadd.f32 %v3940_v24, %v3635_v20 }
  0xf0   : > { %v467_v29 = vadd.f32 %v3635_v20, %v466_v26  ;;  %v486_v30 = vmax.f32 %v452_v22, 0.0 }
  0xf1   : > { %v485_v27 = vmax.f32 %v447_v25, 0.0  ;;  %v3937_v28 = vpop.f32.mrb[2].mxu0  ;;  %v490_v41 = vmax.f32 %v472_v36, 0.0 }
  0xf2   : > { %v462_v31 = vadd.f32 %v3937_v28, %v3635_v20  ;;  %v456_v32 = vpop.f32.mrb[3].mxu0  ;;  %v3943_v33 = vpop.f32.mrb[2].mxu1  ;;  %v489_v38 = vmax.f32 %v467_v29, 0.0 }
  0xf3   : > { %v457_v34 = vadd.f32 %v3635_v20, %v456_v32  ;;  %3952 = vmatprep.mubr.msk.f32.mxu1 %vm502_vm1, %v485_v27  ;;  %v476_v35 = vpop.f32.mrb[3].mxu1  ;;  %v482_v42 = vadd.f32 %v3943_v33, %v3635_v20 }
  0xf4   : > { %3953 = vmatmul.mubr.msk.f32.vlgmr.msra.gmra.mrb[4].mxu1 %vm502_vm1, %v486_v30  ;;  %v477_v39 = vadd.f32 %v3635_v20, %v476_v35  ;;  %v488_v40 = vmax.f32 %v462_v31, 0.0 }
  0xf5   : > { %v487_v37 = vmax.f32 %v457_v34, 0.0  ;;  %v492_v44 = vmax.f32 %v482_v42, 0.0 }
  0xf6   : > { %v491_v43 = vmax.f32 %v477_v39, 0.0 }
  0xf7   : > { %3955 = vmatprep.mubr.msk.f32.mxu1 %vm502_vm1, %v487_v37 }
  0xf8   : > { %3956 = vmatmul.mubr.msk.f32.gmra.mrb[6].mxu1 %vm502_vm1, %v488_v40  ;;  %v967_v40 = vld [vmem:[%s5794_s3 + $0x30] sm:$0xff] }
  0xf9   : > { %3958 = vmatprep.mubr.msk.f32.mxu1 %vm502_vm1, %v489_v38 }
  0xfc   : > { %3959 = vmatmul.mubr.msk.f32.gmra.mrb[8].mxu1 %vm502_vm1, %v490_v41  ;;  %v968_v41 = vld [vmem:[%s5794_s3 + $0x38] sm:$0xff] }
  0xfd   : > { %3961 = vmatprep.mubr.msk.f32.mxu1 %vm502_vm1, %v491_v43  ;;  %v4251_v42 = vpack.c.bf16 %v968_v41, %v967_v40  ;;  %v969_v43 = vld [vmem:[%s5794_s3 + $0x40] sm:$0xff] }
  0xff   : > { %4252 = vmatprep.subr.bf16.mxu0 %v4251_v42 }
 0x100   : > { %3962 = vmatmul.mubr.msk.f32.gmra.mrb[10].mxu1 %vm502_vm1, %v492_v44  ;;  %v970_v44 = vld [vmem:[%s5794_s3 + $0x48] sm:$0xff] }
 0x101   : > { %3992 = vmatprep.mubr.msk.f32.mxu1 %vm502_vm1, %v4648_v55  ;;  %v4255_v45 = vpack.c.bf16 %v970_v44, %v969_v43 }
 0x1c7   : > { %v3954_v12 = vpop.f32.mrb[4].mxu1 }
 0x1c8   : > { %v599_v13 = vadd.f32 %v3954_v12, %v3644_v11  ;;  %v593_v14 = vpop.f32.mrb[5].mxu1 }
 0x1c9   : > { %v594_v15 = vadd.f32 %v3644_v11, %v593_v14 }
 0x1ca   : > { %v633_v16 = vmax.f32 %v599_v13, 0.0 }
 0x1cb   : > { %v632_v17 = vmax.f32 %v594_v15, 0.0  ;;  %v3957_v18 = vpop.f32.mrb[6].mxu1 }
 0x1cc   : > { %v609_v19 = vadd.f32 %v3957_v18, %v3644_v11  ;;  %v603_v20 = vpop.f32.mrb[7].mxu1 }
 0x1cd   : > { %v4235_v21 = vpack.c.bf16 %v633_v16, %v632_v17  ;;  %v604_v22 = vadd.f32 %v3644_v11, %v603_v20  ;;  %3972 = vmatprep.mubr.msk.f32.mxu0 %vm502_vm1, %v632_v17 }
 0x1ce   : > { %v635_v23 = vmax.f32 %v609_v19, 0.0  ;;  %3973 = vmatmul.mubr.msk.f32.vlgmr.msra.gmra.mrb[4].mxu0 %vm502_vm1, %v633_v16 }
 0x1cf   : > { %v634_v24 = vmax.f32 %v604_v22, 0.0  ;;  %v3960_v25 = vpop.f32.mrb[8].mxu1  ;;  %4236 = vmatprep.subr.bf16.mxu1 %v4235_v21  ;;  %4254 = vmatpush3.bf16.msra.mxu0 %v4251_v42 }
 0x1d0   : > { %v619_v26 = vadd.f32 %v3960_v25, %v3644_v11  ;;  %v613_v27 = vpop.f32.mrb[9].mxu1  ;;  %4238 = vmatpush3.bf16.msra.mxu1 %v4235_v21  ;;  %4256 = vmatprep.subr.bf16.mxu0 %v4255_v45 }
 0x1d1   : > { %v4239_v28 = vpack.c.bf16 %v635_v23, %v634_v24  ;;  %v614_v29 = vadd.f32 %v3644_v11, %v613_v27  ;;  %3975 = vmatprep.mubr.msk.f32.mxu0 %vm502_vm1, %v634_v24 }
 0x1d2   : > { %v637_v30 = vmax.f32 %v619_v26, 0.0  ;;  %3976 = vmatmul.mubr.msk.f32.gmra.mrb[6].mxu0 %vm502_vm1, %v635_v23 }
 0x1d3   : > { %v636_v31 = vmax.f32 %v614_v29, 0.0  ;;  %v3963_v32 = vpop.f32.mrb[10].mxu1  ;;  %4240 = vmatprep.subr.bf16.mxu1 %v4239_v28  ;;  %4258 = vmatpush3.bf16.msra.mxu0 %v4255_v45 }
 0x1d4   : > { %v629_v33 = vadd.f32 %v3963_v32, %v3644_v11  ;;  %v623_v34 = vpop.f32.mrb[11].mxu1  ;;  %4242 = vmatpush3.bf16.msra.mxu1 %v4239_v28 }
 0x1d5   : > { %v4243_v35 = vpack.c.bf16 %v637_v30, %v636_v31  ;;  %v624_v36 = vadd.f32 %v3644_v11, %v623_v34  ;;  %3978 = vmatprep.mubr.msk.f32.mxu0 %vm502_vm1, %v636_v31 }
 0x1d6   : > { %v639_v37 = vmax.f32 %v629_v33, 0.0  ;;  %3979 = vmatmul.mubr.msk.f32.gmra.mrb[8].mxu0 %vm502_vm1, %v637_v30 }
 0x1d7   : > { %v638_v38 = vmax.f32 %v624_v36, 0.0  ;;  %3993 = vmatmul.mubr.msk.f32.vlgmr.msra.gmra.mrb[12].mxu1 %vm502_vm1, %v4652_v59  ;;  %4244 = vmatprep.subr.bf16.mxu1 %v4243_v35 }
 0x1d8   : > { %4246 = vmatpush3.bf16.msra.mxu1 %v4243_v35  ;;  %3995 = vmatprep.mubr.msk.f32.mxu1 %vm502_vm1, %v4658_v63 }
 0x1d9   : > { %v4247_v39 = vpack.c.bf16 %v639_v37, %v638_v38  ;;  %3981 = vmatprep.mubr.msk.f32.mxu0 %vm502_vm1, %v638_v38 }
 0x1da   : > { %3982 = vmatmul.mubr.msk.f32.gmra.mrb[10].mxu0 %vm502_vm1, %v639_v37 }
 0x1db   : > { %3996 = vmatmul.mubr.msk.f32.gmra.mrb[14].mxu1 %vm502_vm1, %v4661_v2  ;;  %4248 = vmatprep.subr.bf16.mxu1 %v4247_v39 }
 0x1dc   : > { %4250 = vmatpush3.bf16.msra.mxu1 %v4247_v39  ;;  %4006 = vmatprep.mubr.msk.f32.mxu1 %vm502_vm1, %v4663_v4 }
 0x1df   : > { %4007 = vmatmul.mubr.msk.f32.vlgmr.msra.gmra.mrb[16].mxu1 %vm502_vm1, %v4665_v6 }
 0x1e0   : > { %4009 = vmatprep.mubr.msk.f32.mxu1 %vm502_vm1, %v4667_v8 }
 0x1e3   : > { %4010 = vmatmul.mubr.msk.f32.gmra.mrb[18].mxu1 %vm502_vm1, %v4669_v10 }
 0x2a1   : > { %v4708_v46 = vpop.f32.mrb[4].mxu0 }
 0x2a2   : > { %v4710_v47 = vpop.f32.mrb[5].mxu0 }
 0x2a5   : > { %v4712_v48 = vpop.f32.mrb[6].mxu0 }
 0x2a6   : > { %v4714_v50 = vpop.f32.mrb[7].mxu0 }
 0x2a9   : > { %v4716_v51 = vpop.f32.mrb[8].mxu0 }
 0x2aa   : > { %v4718_v52 = vpop.f32.mrb[9].mxu0  ;;  %v3994_v54 = vpop.f32.mrb[12].mxu1 }
 0x2ab   : > { %v851_v56 = vpop.f32.mrb[13].mxu1 }
 0x2ac   : > { %4020 = vmatprep.mubr.msk.f32.mxu0 %vm502_vm1, %v851_v56 }
 0x2ad   : > { %v4721_v57 = vpop.f32.mrb[10].mxu0  ;;  %4021 = vmatmul.mubr.msk.f32.vlgmr.msra.gmra.mrb[12].mxu0 %vm502_vm1, %v3994_v54 }
 0x2ae   : > { %v4724_v58 = vpop.f32.mrb[11].mxu0  ;;  %v3997_v60 = vpop.f32.mrb[14].mxu1 }
 0x2af   : > { %v861_v61 = vpop.f32.mrb[15].mxu1 }
 0x2b0   : > { %4023 = vmatprep.mubr.msk.f32.mxu0 %vm502_vm1, %v861_v61 }
 0x2b1   : > { %4024 = vmatmul.mubr.msk.f32.gmra.mrb[14].mxu0 %vm502_vm1, %v3997_v60 }
 0x2b2   : > { %v4008_v62 = vpop.f32.mrb[16].mxu1 }
 0x2b3   : > { %v948_v0 = vpop.f32.mrb[17].mxu1 }
 0x2b4   : > { %4026 = vmatprep.mubr.msk.f32.mxu0 %vm502_vm1, %v948_v0 }
 0x2b5   : > { %4027 = vmatmul.mubr.msk.f32.gmra.mrb[16].mxu0 %vm502_vm1, %v4008_v62 }
 0x2b6   : > { %v4011_v1 = vpop.f32.mrb[18].mxu1 }
 0x2b7   : > { %v958_v3 = vpop.f32.mrb[19].mxu1 }
 0x2b8   : > { %4029 = vmatprep.mubr.msk.f32.mxu0 %vm502_vm1, %v958_v3 }
 0x2b9   : > { %4030 = vmatmul.mubr.msk.f32.gmra.mrb[18].mxu0 %vm502_vm1, %v4011_v1 }
 0x2ba   : > { %4060 = vmatprep.mubr.msk.f32.mxu0 %vm502_vm1, %v4648_v55 }
 0x380   : > { %v4022_v7 = vpop.f32.mrb[12].mxu0 }
 0x381   : > { %v1066_v9 = vpop.f32.mrb[13].mxu0  ;;  %v4739_v12 = vadd.f32 %v4022_v7, %v3669_v5 }
 0x382   : > { %v4737_v11 = vadd.f32 %v3669_v5, %v1066_v9 }
 0x383   : > { %v1106_v20 = vmul.f32 %v4739_v12, %v4739_v12 }
 0x384   : > { %v4025_v13 = vpop.f32.mrb[14].mxu0  ;;  %v1105_v14 = vmul.f32 %v4737_v11, %v4737_v11 }
 0x385   : > { %v1076_v15 = vpop.f32.mrb[15].mxu0  ;;  %v4746_v17 = vadd.f32 %v4025_v13, %v3669_v5 }
 0x386   : > { %v4743_v16 = vadd.f32 %v3669_v5, %v1076_v15  ;;  %1121 = vrot.lane.b32.xlu0 %v1105_v14, %s4488_s9 }
 0x387   : > { %v1108_v25 = vmul.f32 %v4746_v17, %v4746_v17 }
 0x388   : > { %v4028_v18 = vpop.f32.mrb[16].mxu0  ;;  %v1107_v19 = vmul.f32 %v4743_v16, %v4743_v16 }
 0x389   : > { %v1086_v21 = vpop.f32.mrb[17].mxu0  ;;  %v4756_v23 = vadd.f32 %v4028_v18, %v3669_v5 }
 0x38a   : > { %v4752_v22 = vadd.f32 %v3669_v5, %v1086_v21  ;;  %1125 = vrot.lane.b32.xlu1 %v1107_v19, %s4488_s9  ;;  %1123 = vrot.lane.b32.xlu0 %v1106_v20, %s4488_s9 }
 0x38b   : > { %v1110_v30 = vmul.f32 %v4756_v23, %v4756_v23 }
 0x38c   : > { %v4031_v24 = vpop.f32.mrb[18].mxu0  ;;  %v1109_v26 = vmul.f32 %v4752_v22, %v4752_v22 }
 0x38d   : > { %v1096_v27 = vpop.f32.mrb[19].mxu0  ;;  %v4766_v29 = vadd.f32 %v4031_v24, %v3669_v5 }
 0x38e   : > { %v4762_v28 = vadd.f32 %v3669_v5, %v1096_v27  ;;  %1127 = vrot.lane.b32.xlu1 %v1108_v25, %s4488_s9  ;;  %1129 = vrot.lane.b32.xlu0 %v1109_v26, %s4488_s9 }
 0x38f   : > { %v1112_v32 = vmul.f32 %v4766_v29, %v4766_v29 }
 0x390   : > { %v1111_v31 = vmul.f32 %v4762_v28, %v4762_v28 }
 0x392   : > { %1131 = vrot.lane.b32.xlu1 %v1110_v30, %s4488_s9  ;;  %1133 = vrot.lane.b32.xlu0 %v1111_v31, %s4488_s9 }
 0x396   : > { %1135 = vrot.lane.b32.xlu1 %v1112_v32, %s4488_s9 }
 0x3f8   : > { %v1122_v33 = vpop.permute.xlu0 %1121 }
 0x3f9   : > { %v1145_v34 = vsel %vm502_vm1, %v4737_v11, %v1122_v33 }
 0x3fa   : > { %v1154_v39 = vsel %vm1153_vm6, %v1145_v34, 0.0 }
 0x3fc   : > { %v1126_v35 = vpop.permute.xlu1 %1125  ;;  %v1124_v36 = vpop.permute.xlu0 %1123 }
 0x3fd   : > { %v1147_v37 = vsel %vm502_vm1, %v4743_v16, %v1126_v35  ;;  %v1146_v38 = vsel %vm502_vm1, %v4739_v12, %v1124_v36 }
 0x3fe   : > { %v1155_v40 = vsel %vm1153_vm6, %v1146_v38, 0.0  ;;  %v1157_v42 = vsel %vm1153_vm6, %v1147_v37, 0.0 }
 0x3ff   : > { %v1156_v41 = vadd.f32 %v1155_v40, %v1154_v39 }
 0x400   : > { %v1128_v43 = vpop.permute.xlu1 %1127  ;;  %v1130_v44 = vpop.permute.xlu0 %1129 }
 0x401   : > { %v1148_v45 = vsel %vm502_vm1, %v4746_v17, %v1128_v43  ;;  %v1158_v54 = vadd.f32 %v1157_v42, %v1156_v41  ;;  %v1149_v61 = vsel %vm502_vm1, %v4752_v22, %v1130_v44 }
 0x402   : > { %v1159_v56 = vsel %vm1153_vm6, %v1148_v45, 0.0  ;;  %v1167_v7 = vsel %vm1153_vm6, %v1149_v61, 0.0  ;;  %v1267_v45 = vld [vmem:[%s5794_s3 + $0x90] sm:$0xff] }
 0x403   : > { %v1160_v60 = vadd.f32 %v1159_v56, %v1158_v54  ;;  %v1268_v54 = vld [vmem:[%s5794_s3 + $0x98] sm:$0xff] }
 0x404   : > { %v1132_v62 = vpop.permute.xlu1 %1131  ;;  %v1134_v0 = vpop.permute.xlu0 %1133  ;;  %v4259_v56 = vpack.c.bf16 %v1268_v54, %v1267_v45 }
 0x405   : > { %v1161_v1 = vrot.slane %v1160_v60, 4  ;;  %v1150_v3 = vsel %vm502_vm1, %v4756_v23, %v1132_v62  ;;  %v1151_v5 = vsel %vm502_vm1, %v4762_v28, %v1134_v0  ;;  %v1269_v62 = vld [vmem:[%s5794_s3 + $0xa0] sm:$0xff]  ;;  %v1270_v0 = vld [vmem:[%s5794_s3 + $0xa8] sm:$0xff] }
 0x406   : > { %v1168_v9 = vsel %vm1153_vm6, %v1150_v3, 0.0  ;;  %v1170_v15 = vsel %vm1153_vm6, %v1151_v5, 0.0  ;;  %4260 = vmatprep.subr.bf16.mxu1 %v4259_v56  ;;  %v4263_v3 = vpack.c.bf16 %v1270_v0, %v1269_v62 }
 0x407   : > { %v1162_v13 = vadd.f32 %v1161_v1, %v1160_v60  ;;  %v1169_v14 = vadd.f32 %v1168_v9, %v1167_v7  ;;  %4262 = vmatpush3.bf16.msra.mxu1 %v4259_v56  ;;  %v4816_v7 = vsub.s32 0, %v4638_v49 }
 0x408   : > { %v1136_v18 = vpop.permute.xlu1 %1135  ;;  %4264 = vmatprep.subr.bf16.mxu1 %v4263_v3 }
 0x409   : > { %v1163_v19 = vrot.slane %v1162_v13, 2  ;;  %v1171_v20 = vadd.f32 %v1170_v15, %v1169_v14  ;;  %v1152_v21 = vsel %vm502_vm1, %v4766_v29, %v1136_v18 }
 0x40a   : > { %v1172_v24 = vsel %vm1153_vm6, %v1152_v21, 0.0 }
 0x40b   : > { %v1164_v25 = vadd.f32 %v1163_v19, %v1162_v13  ;;  %v1173_v26 = vadd.f32 %v1172_v24, %v1171_v20  ;;  %4266 = vmatpush3.bf16.msra.mxu1 %v4263_v3  ;;  %v3678_v24 = vld [vmem:[%s5796_s5 + $0x3] ss:$0 sm:$0xff] }
 0x40d   : > { %v1165_v27 = vrot.slane %v1164_v25, 1  ;;  %v1174_v30 = vrot.slane %v1173_v26, 4 }
 0x40f   : > { %v1166_v31 = vadd.f32 %v1165_v27, %v1164_v25  ;;  %v1175_v32 = vadd.f32 %v1174_v30, %v1173_v26 }
 0x411   : > { %v1181_v33 = vmul.f32 0.03125, %v1166_v31  ;;  %v1176_v34 = vrot.slane %v1175_v32, 2 }
 0x413   : > { %v1177_v35 = vadd.f32 %v1176_v34, %v1175_v32  ;;  %v1183_v36 = vmul.f32 %v1181_v33, %v1181_v33  ;;  %v1201_v18 = vsub.f32 %v4737_v11, %v1181_v33  ;;  %v1202_v19 = vsub.f32 %v4739_v12, %v1181_v33  ;;  %v3679_v32 = vld [vmem:[%s5796_s5 + $0x4] ss:$0 sm:$0xff] }
 0x414   : > { %v1203_v20 = vsub.f32 %v4743_v16, %v1181_v33  ;;  %v1204_v21 = vsub.f32 %v4746_v17, %v1181_v33 }
 0x415   : > { %v1178_v37 = vrot.slane %v1177_v35, 1  ;;  %1187 = vrot.lane.b32.xlu0 %v1183_v36, %s4488_s9 }
 0x417   : > { %v1179_v38 = vadd.f32 %v1178_v37, %v1177_v35 }
 0x419   : > { %v1182_v39 = vmul.f32 0.03125, %v1179_v38 }
 0x41b   : > { %v1184_v40 = vmul.f32 %v1182_v39, %v1182_v39  ;;  %v1206_v37 = vsub.f32 %v4756_v23, %v1182_v39 }
 0x41d   : > { %1189 = vrot.lane.b32.xlu1 %v1184_v40, %s4488_s9  ;;  %v1207_v40 = vsub.f32 %v4762_v28, %v1182_v39 }
 0x487   : > { %v1188_v41 = vpop.permute.xlu0 %1187 }
 0x488   : > { %v1193_v42 = vsub.f32 %v1181_v33, %v1188_v41  ;;  %v1205_v33 = vsub.f32 %v4752_v22, %v1182_v39  ;;  %v1208_v41 = vsub.f32 %v4766_v29, %v1182_v39 }
 0x48a   : > { %v1195_v43 = vmax.f32 %v1193_v42, 0.0 }
 0x48c   : > { %v1197_v44 = vadd.f32 1e-05, %v1195_v43 }
 0x48e   : > { %4399 = vrsqrt.f32 %v1197_v44 }
 0x48f   : > { %v1190_v60 = vpop.permute.xlu1 %1189 }
 0x490   : > { %v1194_v61 = vsub.f32 %v1182_v39, %v1190_v60 }
 0x492   : > { %v1196_v1 = vmax.f32 %v1194_v61, 0.0 }
 0x494   : > { %v1198_v5 = vadd.f32 1e-05, %v1196_v1 }
 0x496   : > { %4401 = vrsqrt.f32 %v1198_v5 }
 0x498   : > { %v4400_v9 = vpop.eup %4399 }
 0x499   : > { %v1212_v13 = vrot.slane %v4400_v9, %v4816_v7 }
 0x49b   : > { %1219 = vrot.lane.b32.xlu0 %v1212_v13, %s4489_s19 }
 0x4a0   : > { %v4402_v14 = vpop.eup %4401 }
 0x4a1   : > { %v1216_v15 = vrot.slane %v4402_v14, %v4816_v7 }
 0x4a3   : > { %1221 = vrot.lane.b32.xlu1 %v1216_v15, %s4489_s19  ;;  %v3680_v15 = vld [vmem:[%s5796_s5 + $0x5] ss:$0 sm:$0xff] }
 0x50d   : > { %v1220_v25 = vpop.permute.xlu0 %1219 }
 0x50e   : > { %v1225_v26 = vmul.f32 %v1220_v25, %v1201_v18  ;;  %v1226_v27 = vmul.f32 %v1220_v25, %v1202_v19  ;;  %v1227_v30 = vmul.f32 %v1220_v25, %v1203_v20  ;;  %v1228_v31 = vmul.f32 %v1220_v25, %v1204_v21 }
 0x510   : > { %v1238_v11 = vmul.f32 %v3678_v24, %v1225_v26  ;;  %v1239_v34 = vmul.f32 %v3678_v24, %v1226_v27  ;;  %v1240_v12 = vmul.f32 %v3678_v24, %v1227_v30  ;;  %v1241_v35 = vmul.f32 %v3678_v24, %v1228_v31 }
 0x512   : > { %v1252_v16 = vadd.f32 %v3679_v32, %v1239_v34  ;;  %v1251_v36 = vadd.f32 %v3679_v32, %v1238_v11  ;;  %v1253_v17 = vadd.f32 %v3679_v32, %v1240_v12  ;;  %v1254_v45 = vadd.f32 %v3679_v32, %v1241_v35 }
 0x514   : > { %v1260_v38 = vmax.f32 %v1252_v16, 0.0  ;;  %v1259_v42 = vmax.f32 %v1251_v36, 0.0  ;;  %v1261_v44 = vmax.f32 %v1253_v17, 0.0  ;;  %v1262_v0 = vmax.f32 %v1254_v45, 0.0 }
 0x515   : > { %v1222_v43 = vpop.permute.xlu1 %1221 }
 0x516   : > { %v1229_v54 = vmul.f32 %v1222_v43, %v1205_v33  ;;  %v1230_v56 = vmul.f32 %v1222_v43, %v1206_v37  ;;  %v1231_v60 = vmul.f32 %v1222_v43, %v1207_v40  ;;  %v1232_v61 = vmul.f32 %v1222_v43, %v1208_v41  ;;  %4040 = vmatprep.mubr.msk.f32.mxu1 %vm502_vm1, %v1259_v42 }
 0x517   : > { %4041 = vmatmul.mubr.msk.f32.vlgmr.msra.gmra.mrb[20].mxu1 %vm502_vm1, %v1260_v38 }
 0x518   : > { %v1242_v22 = vmul.f32 %v3678_v24, %v1229_v54  ;;  %v1243_v62 = vmul.f32 %v3678_v24, %v1230_v56  ;;  %v1244_v23 = vmul.f32 %v3678_v24, %v1231_v60  ;;  %4043 = vmatprep.mubr.msk.f32.mxu1 %vm502_vm1, %v1261_v44  ;;  %v1245_v28 = vmul.f32 %v3678_v24, %v1232_v61 }
 0x51a   : > { %v1255_v29 = vadd.f32 %v3679_v32, %v1242_v22  ;;  %v1256_v39 = vadd.f32 %v3679_v32, %v1243_v62  ;;  %v1257_v1 = vadd.f32 %v3679_v32, %v1244_v23  ;;  %v1258_v9 = vadd.f32 %v3679_v32, %v1245_v28 }
 0x51b   : > { %4044 = vmatmul.mubr.msk.f32.gmra.mrb[22].mxu1 %vm502_vm1, %v1262_v0 }
 0x51c   : > { %v1263_v3 = vmax.f32 %v1255_v29, 0.0  ;;  %v1264_v5 = vmax.f32 %v1256_v39, 0.0  ;;  %v1265_v13 = vmax.f32 %v1257_v1, 0.0  ;;  %v1266_v14 = vmax.f32 %v1258_v9, 0.0 }
 0x51e   : > { %4046 = vmatprep.mubr.msk.f32.mxu1 %vm502_vm1, %v1263_v3 }
 0x51f   : > { %4047 = vmatmul.mubr.msk.f32.gmra.mrb[24].mxu1 %vm502_vm1, %v1264_v5 }
 0x520   : > { %4049 = vmatprep.mubr.msk.f32.mxu1 %vm502_vm1, %v1265_v13 }
 0x523   : > { %4050 = vmatmul.mubr.msk.f32.gmra.mrb[26].mxu1 %vm502_vm1, %v1266_v14 }
 0x524   : > { %4074 = vmatprep.mubr.msk.f32.mxu1 %vm502_vm1, %v4663_v4 }
 0x5ea   : > { %v4042_v18 = vpop.f32.mrb[20].mxu1 }
 0x5eb   : > { %v4849_v19 = vadd.f32 %v4042_v18, %v3680_v15  ;;  %v1366_v20 = vpop.f32.mrb[21].mxu1 }
 0x5ec   : > { %v4851_v21 = vadd.f32 %v3680_v15, %v1366_v20 }
 0x5ed   : > { %v1406_v24 = vmul.f32 %v4849_v19, %v4849_v19 }
 0x5ee   : > { %v4045_v25 = vpop.f32.mrb[22].mxu1  ;;  %v1405_v26 = vmul.f32 %v4851_v21, %v4851_v21 }
 0x5ef   : > { %v4857_v27 = vadd.f32 %v4045_v25, %v3680_v15  ;;  %1423 = vrot.lane.b32.xlu1 %v1406_v24, %s4488_s9  ;;  %v1376_v30 = vpop.f32.mrb[23].mxu1 }
 0x5f0   : > { %v4860_v31 = vadd.f32 %v3680_v15, %v1376_v30  ;;  %1421 = vrot.lane.b32.xlu0 %v1405_v26, %s4488_s9 }
 0x5f1   : > { %v1408_v32 = vmul.f32 %v4857_v27, %v4857_v27 }
 0x5f2   : > { %v4048_v11 = vpop.f32.mrb[24].mxu1  ;;  %v1407_v34 = vmul.f32 %v4860_v31, %v4860_v31 }
 0x5f3   : > { %v4867_v12 = vadd.f32 %v4048_v11, %v3680_v15  ;;  %1427 = vrot.lane.b32.xlu1 %v1408_v32, %s4488_s9  ;;  %v1386_v35 = vpop.f32.mrb[25].mxu1 }
 0x5f4   : > { %v4870_v16 = vadd.f32 %v3680_v15, %v1386_v35  ;;  %1425 = vrot.lane.b32.xlu0 %v1407_v34, %s4488_s9 }
 0x5f5   : > { %v1410_v36 = vmul.f32 %v4867_v12, %v4867_v12 }
 0x5f6   : > { %v4051_v17 = vpop.f32.mrb[26].mxu1  ;;  %v1409_v33 = vmul.f32 %v4870_v16, %v4870_v16 }
 0x5f7   : > { %v4877_v37 = vadd.f32 %v4051_v17, %v3680_v15  ;;  %1431 = vrot.lane.b32.xlu1 %v1410_v36, %s4488_s9  ;;  %v1396_v38 = vpop.f32.mrb[27].mxu1 }
 0x5f8   : > { %v4880_v40 = vadd.f32 %v3680_v15, %v1396_v38  ;;  %1429 = vrot.lane.b32.xlu0 %v1409_v33, %s4488_s9 }
 0x5f9   : > { %v1412_v41 = vmul.f32 %v4877_v37, %v4877_v37 }
 0x5fa   : > { %v1411_v42 = vmul.f32 %v4880_v40, %v4880_v40 }
 0x5fb   : > { %1435 = vrot.lane.b32.xlu1 %v1412_v41, %s4488_s9 }
 0x5fc   : > { %1433 = vrot.lane.b32.xlu0 %v1411_v42, %s4488_s9 }
 0x661   : > { %v1424_v43 = vpop.permute.xlu1 %1423 }
 0x662   : > { %v1446_v44 = vsel %vm502_vm1, %v4849_v19, %v1424_v43  ;;  %v1422_v45 = vpop.permute.xlu0 %1421 }
 0x663   : > { %v1445_v54 = vsel %vm502_vm1, %v4851_v21, %v1422_v45  ;;  %v1454_v56 = vsel %vm1153_vm6, %v1446_v44, 0.0 }
 0x664   : > { %v1453_v60 = vsel %vm1153_vm6, %v1445_v54, 0.0 }
 0x665   : > { %v1428_v61 = vpop.permute.xlu1 %1427  ;;  %v1455_v62 = vadd.f32 %v1454_v56, %v1453_v60 }
 0x666   : > { %v1426_v22 = vpop.permute.xlu0 %1425  ;;  %v1448_v23 = vsel %vm502_vm1, %v4857_v27, %v1428_v61 }
 0x667   : > { %v1447_v28 = vsel %vm502_vm1, %v4860_v31, %v1426_v22  ;;  %v1458_v1 = vsel %vm1153_vm6, %v1448_v23, 0.0 }
 0x668   : > { %v1456_v0 = vsel %vm1153_vm6, %v1447_v28, 0.0 }
 0x669   : > { %v1457_v29 = vadd.f32 %v1456_v0, %v1455_v62  ;;  %v1432_v39 = vpop.permute.xlu1 %1431 }
 0x66a   : > { %v1450_v3 = vsel %vm502_vm1, %v4867_v12, %v1432_v39  ;;  %v1430_v5 = vpop.permute.xlu0 %1429 }
 0x66b   : > { %v1459_v9 = vadd.f32 %v1458_v1, %v1457_v29  ;;  %v1449_v13 = vsel %vm502_vm1, %v4870_v16, %v1430_v5  ;;  %v1467_v14 = vsel %vm1153_vm6, %v1450_v3, 0.0 }
 0x66c   : > { %v1466_v15 = vsel %vm1153_vm6, %v1449_v13, 0.0 }
 0x66d   : > { %v1460_v18 = vrot.slane %v1459_v9, 4  ;;  %v1436_v20 = vpop.permute.xlu1 %1435  ;;  %v1468_v26 = vadd.f32 %v1467_v14, %v1466_v15 }
 0x66e   : > { %v1434_v24 = vpop.permute.xlu0 %1433  ;;  %v1452_v30 = vsel %vm502_vm1, %v4877_v37, %v1436_v20 }
 0x66f   : > { %v1461_v25 = vadd.f32 %v1460_v18, %v1459_v9  ;;  %v1451_v32 = vsel %vm502_vm1, %v4880_v40, %v1434_v24  ;;  %v1471_v36 = vsel %vm1153_vm6, %v1452_v30, 0.0 }
 0x670   : > { %v1469_v11 = vsel %vm1153_vm6, %v1451_v32, 0.0 }
 0x671   : > { %v1462_v34 = vrot.slane %v1461_v25, 2  ;;  %v1470_v35 = vadd.f32 %v1469_v11, %v1468_v26  ;;  %v3689_v26 = vld [vmem:[%s5796_s5 + $0x6] ss:$0 sm:$0xff] }
 0x673   : > { %v1463_v17 = vadd.f32 %v1462_v34, %v1461_v25  ;;  %v1472_v33 = vadd.f32 %v1471_v36, %v1470_v35  ;;  %v3690_v36 = vld [vmem:[%s5796_s5 + $0x7] ss:$0 sm:$0xff] }
 0x675   : > { %v1464_v38 = vrot.slane %v1463_v17, 1  ;;  %v1473_v41 = vrot.slane %v1472_v33, 4 }
 0x677   : > { %v1465_v42 = vadd.f32 %v1464_v38, %v1463_v17  ;;  %v1474_v43 = vadd.f32 %v1473_v41, %v1472_v33 }
 0x679   : > { %v1479_v44 = vmul.f32 0.03125, %v1465_v42  ;;  %v1475_v45 = vrot.slane %v1474_v43, 2 }
 0x67b   : > { %v1476_v54 = vadd.f32 %v1475_v45, %v1474_v43  ;;  %v1481_v56 = vmul.f32 %v1479_v44, %v1479_v44  ;;  %v1499_v18 = vsub.f32 %v4851_v21, %v1479_v44  ;;  %v1500_v20 = vsub.f32 %v4849_v19, %v1479_v44 }
 0x67c   : > { %v1501_v24 = vsub.f32 %v4860_v31, %v1479_v44  ;;  %v1502_v25 = vsub.f32 %v4857_v27, %v1479_v44 }
 0x67d   : > { %v1477_v60 = vrot.slane %v1476_v54, 1  ;;  %1485 = vrot.lane.b32.xlu0 %v1481_v56, %s4488_s9 }
 0x67f   : > { %v1478_v61 = vadd.f32 %v1477_v60, %v1476_v54 }
 0x681   : > { %v1480_v22 = vmul.f32 0.03125, %v1478_v61 }
 0x683   : > { %v1482_v62 = vmul.f32 %v1480_v22, %v1480_v22  ;;  %v1503_v42 = vsub.f32 %v4870_v16, %v1480_v22  ;;  %v1504_v43 = vsub.f32 %v4867_v12, %v1480_v22  ;;  %v1506_v45 = vsub.f32 %v4877_v37, %v1480_v22 }
 0x685   : > { %1487 = vrot.lane.b32.xlu1 %v1482_v62, %s4488_s9 }
 0x6ef   : > { %v1486_v23 = vpop.permute.xlu0 %1485 }
 0x6f0   : > { %v1491_v28 = vsub.f32 %v1479_v44, %v1486_v23  ;;  %v1505_v44 = vsub.f32 %v4880_v40, %v1480_v22 }
 0x6f2   : > { %v1493_v0 = vmax.f32 %v1491_v28, 0.0 }
 0x6f4   : > { %v1495_v29 = vadd.f32 1e-05, %v1493_v0 }
 0x6f6   : > { %4403 = vrsqrt.f32 %v1495_v29 }
 0x6f7   : > { %v1488_v39 = vpop.permute.xlu1 %1487 }
 0x6f8   : > { %v1492_v1 = vsub.f32 %v1480_v22, %v1488_v39  ;;  %v1735_v39 = vld [vmem:[%s5794_s3 + $0x50] sm:$0xff] }
 0x6fa   : > { %v1494_v3 = vmax.f32 %v1492_v1, 0.0  ;;  %v1736_v1 = vld [vmem:[%s5794_s3 + $0x58] sm:$0xff] }
 0x6fc   : > { %v1496_v5 = vadd.f32 1e-05, %v1494_v3 }
 0x6fe   : > { %4405 = vrsqrt.f32 %v1496_v5 }
 0x700   : > { %v4404_v9 = vpop.eup %4403 }
 0x701   : > { %v1510_v13 = vrot.slane %v4404_v9, %v4816_v7 }
 0x703   : > { %1517 = vrot.lane.b32.xlu0 %v1510_v13, %s4489_s19 }
 0x708   : > { %v4406_v14 = vpop.eup %4405 }
 0x709   : > { %v1514_v15 = vrot.slane %v4406_v14, %v4816_v7 }
 0x70b   : > { %1519 = vrot.lane.b32.xlu1 %v1514_v15, %s4489_s19  ;;  %v4283_v15 = vpack.c.bf16 %v1736_v1, %v1735_v39 }
 0x775   : > { %v1518_v30 = vpop.permute.xlu0 %1517 }
 0x776   : > { %v1523_v32 = vmul.f32 %v1518_v30, %v1499_v18  ;;  %v1524_v11 = vmul.f32 %v1518_v30, %v1500_v20  ;;  %v1525_v34 = vmul.f32 %v1518_v30, %v1501_v24  ;;  %v1526_v35 = vmul.f32 %v1518_v30, %v1502_v25  ;;  %v1738_v30 = vld [vmem:[%s5794_s3 + $0x68] sm:$0xff] }
 0x778   : > { %v1536_v21 = vmul.f32 %v3689_v26, %v1523_v32  ;;  %v1537_v17 = vmul.f32 %v3689_v26, %v1524_v11  ;;  %v1538_v19 = vmul.f32 %v3689_v26, %v1525_v34  ;;  %v1539_v33 = vmul.f32 %v3689_v26, %v1526_v35 }
 0x77a   : > { %v4929_v31 = vadd.f32 %v3690_v36, %v1536_v21  ;;  %v4931_v27 = vadd.f32 %v3690_v36, %v1537_v17  ;;  %v4933_v38 = vadd.f32 %v3690_v36, %v1538_v19  ;;  %v4935_v41 = vadd.f32 %v3690_v36, %v1539_v33 }
 0x77c   : > { %v5805_v54 = vmax.f32 %v4929_v31, 0.0  ;;  %v5804_v56 = vmax.f32 %v4931_v27, 0.0  ;;  %v5803_v61 = vmax.f32 %v4933_v38, 0.0  ;;  %v5802_v62 = vmax.f32 %v4935_v41, 0.0 }
 0x77d   : > { %v1520_v60 = vpop.permute.xlu1 %1519 }
 0x77e   : > { %v1527_v23 = vmul.f32 %v1520_v60, %v1503_v42  ;;  %v1528_v28 = vmul.f32 %v1520_v60, %v1504_v43  ;;  %v1529_v0 = vmul.f32 %v1520_v60, %v1505_v44  ;;  %v1530_v29 = vmul.f32 %v1520_v60, %v1506_v45  ;;  %v3699_v44 = vld [vmem:[%s5796_s5 + $0x8] ss:$0 sm:$0xff] }
 0x77f   : > { %v4267_v12 = vpack.c.bf16 %v5804_v56, %v5805_v54  ;;  %v4271_v3 = vpack.c.bf16 %v5802_v62, %v5803_v61 }
 0x780   : > { %v1540_v16 = vmul.f32 %v3689_v26, %v1527_v23  ;;  %v1541_v37 = vmul.f32 %v3689_v26, %v1528_v28  ;;  %v1542_v40 = vmul.f32 %v3689_v26, %v1529_v0  ;;  %v1543_v22 = vmul.f32 %v3689_v26, %v1530_v29  ;;  %v1737_v26 = vld [vmem:[%s5794_s3 + $0x60] sm:$0xff] }
 0x781   : > { %4268 = vmatprep.subr.bf16.mxu0 %v4267_v12  ;;  %v4287_v34 = vpack.c.bf16 %v1738_v30, %v1737_v26 }
 0x782   : > { %4270 = vmatpush3.bf16.msra.mxu0 %v4267_v12  ;;  %v4959_v5 = vadd.f32 %v3690_v36, %v1540_v16  ;;  %v4961_v9 = vadd.f32 %v3690_v36, %v1541_v37  ;;  %v4963_v13 = vadd.f32 %v3690_v36, %v1542_v40  ;;  %v4965_v14 = vadd.f32 %v3690_v36, %v1543_v22 }
 0x783   : > { %4272 = vmatprep.subr.bf16.mxu0 %v4271_v3 }
 0x784   : > { %v5800_v18 = vmax.f32 %v4959_v5, 0.0  ;;  %v5801_v20 = vmax.f32 %v4961_v9, 0.0  ;;  %v5799_v24 = vmax.f32 %v4963_v13, 0.0  ;;  %v5798_v25 = vmax.f32 %v4965_v14, 0.0 }
 0x786   : > { %4274 = vmatpush3.bf16.msra.mxu0 %v4271_v3  ;;  %v4275_v32 = vpack.c.bf16 %v5801_v20, %v5800_v18  ;;  %v4279_v11 = vpack.c.bf16 %v5798_v25, %v5799_v24 }
 0x787   : > { %4284 = vmatprep.subr.bf16.mxu0 %v4283_v15 }
 0x788   : > { %4276 = vmatprep.subr.bf16.mxu1 %v4275_v32 }
 0x789   : > { %4061 = vmatmul.mubr.msk.f32.vlgmr.msra.gmra.mrb[20].mxu0 %vm502_vm1, %v4652_v59  ;;  %4278 = vmatpush3.bf16.msra.mxu1 %v4275_v32 }
 0x78a   : > { %4280 = vmatprep.subr.bf16.mxu1 %v4279_v11  ;;  %4063 = vmatprep.mubr.msk.f32.mxu0 %vm502_vm1, %v4658_v63 }
 0x78b   : > { %4286 = vmatpush3.bf16.msra.mxu0 %v4283_v15 }
 0x78c   : > { %4288 = vmatprep.subr.bf16.mxu0 %v4287_v34 }
 0x78d   : > { %4064 = vmatmul.mubr.msk.f32.gmra.mrb[22].mxu0 %vm502_vm1, %v4661_v2  ;;  %4282 = vmatpush3.bf16.msra.mxu1 %v4279_v11 }
 0x78f   : > { %4290 = vmatpush3.bf16.msra.mxu0 %v4287_v34 }
 0x790   : > { %4075 = vmatmul.mubr.msk.f32.vlgmr.msra.gmra.mrb[28].mxu1 %vm502_vm1, %v4665_v6 }
 0x791   : > { %4077 = vmatprep.mubr.msk.f32.mxu1 %vm502_vm1, %v4667_v8 }
 0x794   : > { %4078 = vmatmul.mubr.msk.f32.gmra.mrb[30].mxu1 %vm502_vm1, %v4669_v10 }
 0x85c   : > { %v4062_v35 = vpop.f32.mrb[20].mxu0 }
 0x85d   : > { %v1631_v36 = vpop.f32.mrb[21].mxu0 }
 0x85e   : > { %4088 = vmatprep.mubr.msk.f32.mxu0 %vm502_vm1, %v1631_v36 }
 0x85f   : > { %4089 = vmatmul.mubr.msk.f32.vlgmr.msra.gmra.mrb[24].mxu0 %vm502_vm1, %v4062_v35 }
 0x860   : > { %v4065_v21 = vpop.f32.mrb[22].mxu0 }
 0x861   : > { %v1641_v17 = vpop.f32.mrb[23].mxu0 }
 0x862   : > { %4091 = vmatprep.mubr.msk.f32.mxu0 %vm502_vm1, %v1641_v17 }
 0x863   : > { %4092 = vmatmul.mubr.msk.f32.gmra.mrb[26].mxu0 %vm502_vm1, %v4065_v21  ;;  %v4076_v19 = vpop.f32.mrb[28].mxu1 }
 0x864   : > { %v1716_v33 = vpop.f32.mrb[29].mxu1 }
 0x865   : > { %4094 = vmatprep.mubr.msk.f32.mxu0 %vm502_vm1, %v1716_v33 }
 0x867   : > { %4095 = vmatmul.mubr.msk.f32.gmra.mrb[28].mxu0 %vm502_vm1, %v4076_v19  ;;  %v4079_v42 = vpop.f32.mrb[30].mxu1 }
 0x868   : > { %v1726_v43 = vpop.f32.mrb[31].mxu1 }
 0x869   : > { %4097 = vmatprep.mubr.msk.f32.mxu0 %vm502_vm1, %v1726_v43 }
 0x86b   : > { %4098 = vmatmul.mubr.msk.f32.gmra.mrb[30].mxu0 %vm502_vm1, %v4079_v42 }
 0x86c   : > { %4128 = vmatprep.mubr.msk.f32.mxu0 %vm502_vm1, %v4648_v55 }
 0x932   : > { %v4090_v45 = vpop.f32.mrb[24].mxu0 }
 0x933   : > { %v5010_v60 = vadd.f32 %v4090_v45, %v3699_v44  ;;  %v1834_v23 = vpop.f32.mrb[25].mxu0 }
 0x934   : > { %v5012_v28 = vadd.f32 %v3699_v44, %v1834_v23 }
 0x935   : > { %v1874_v0 = vmul.f32 %v5010_v60, %v5010_v60 }
 0x936   : > { %v4093_v29 = vpop.f32.mrb[26].mxu0  ;;  %v1873_v12 = vmul.f32 %v5012_v28, %v5012_v28 }
 0x937   : > { %v5018_v16 = vadd.f32 %v4093_v29, %v3699_v44  ;;  %1891 = vrot.lane.b32.xlu1 %v1874_v0, %s4488_s9  ;;  %v1844_v55 = vpop.f32.mrb[27].mxu0 }
 0x938   : > { %v5021_v37 = vadd.f32 %v3699_v44, %v1844_v55  ;;  %1889 = vrot.lane.b32.xlu0 %v1873_v12, %s4488_s9 }
 0x939   : > { %v1876_v40 = vmul.f32 %v5018_v16, %v5018_v16 }
 0x93a   : > { %v4096_v22 = vpop.f32.mrb[28].mxu0  ;;  %v1875_v39 = vmul.f32 %v5021_v37, %v5021_v37 }
 0x93b   : > { %v5028_v1 = vadd.f32 %v4096_v22, %v3699_v44  ;;  %1895 = vrot.lane.b32.xlu1 %v1876_v40, %s4488_s9  ;;  %v1854_v3 = vpop.f32.mrb[29].mxu0 }
 0x93c   : > { %v5031_v15 = vadd.f32 %v3699_v44, %v1854_v3  ;;  %1893 = vrot.lane.b32.xlu0 %v1875_v39, %s4488_s9 }
 0x93d   : > { %v1878_v26 = vmul.f32 %v5028_v1, %v5028_v1 }
 0x93e   : > { %v4099_v30 = vpop.f32.mrb[30].mxu0  ;;  %v1877_v32 = vmul.f32 %v5031_v15, %v5031_v15 }
 0x93f   : > { %v5038_v11 = vadd.f32 %v4099_v30, %v3699_v44  ;;  %1899 = vrot.lane.b32.xlu1 %v1878_v26, %s4488_s9  ;;  %v1864_v34 = vpop.f32.mrb[31].mxu0 }
 0x940   : > { %v5041_v35 = vadd.f32 %v3699_v44, %v1864_v34  ;;  %1897 = vrot.lane.b32.xlu0 %v1877_v32, %s4488_s9 }
 0x941   : > { %v1880_v36 = vmul.f32 %v5038_v11, %v5038_v11 }
 0x942   : > { %v1879_v21 = vmul.f32 %v5041_v35, %v5041_v35 }
 0x943   : > { %1903 = vrot.lane.b32.xlu1 %v1880_v36, %s4488_s9 }
 0x944   : > { %1901 = vrot.lane.b32.xlu0 %v1879_v21, %s4488_s9 }
 0x9a9   : > { %v1892_v17 = vpop.permute.xlu1 %1891 }
 0x9aa   : > { %v1914_v19 = vsel %vm502_vm1, %v5010_v60, %v1892_v17  ;;  %v1890_v33 = vpop.permute.xlu0 %1889 }
 0x9ab   : > { %v1913_v42 = vsel %vm502_vm1, %v5012_v28, %v1890_v33  ;;  %v1922_v43 = vsel %vm1153_vm6, %v1914_v19, 0.0 }
 0x9ac   : > { %v1921_v44 = vsel %vm1153_vm6, %v1913_v42, 0.0 }
 0x9ad   : > { %v1896_v45 = vpop.permute.xlu1 %1895  ;;  %v1923_v0 = vadd.f32 %v1922_v43, %v1921_v44 }
 0x9ae   : > { %v1894_v23 = vpop.permute.xlu0 %1893  ;;  %v1916_v29 = vsel %vm502_vm1, %v5018_v16, %v1896_v45 }
 0x9af   : > { %v1915_v12 = vsel %vm502_vm1, %v5021_v37, %v1894_v23  ;;  %v1926_v39 = vsel %vm1153_vm6, %v1916_v29, 0.0 }
 0x9b0   : > { %v1924_v55 = vsel %vm1153_vm6, %v1915_v12, 0.0 }
 0x9b1   : > { %v1925_v40 = vadd.f32 %v1924_v55, %v1923_v0  ;;  %v1900_v22 = vpop.permute.xlu1 %1899 }
 0x9b2   : > { %v1918_v3 = vsel %vm502_vm1, %v5028_v1, %v1900_v22  ;;  %v1898_v26 = vpop.permute.xlu0 %1897 }
 0x9b3   : > { %v1927_v30 = vadd.f32 %v1926_v39, %v1925_v40  ;;  %v1917_v32 = vsel %vm502_vm1, %v5031_v15, %v1898_v26  ;;  %v1935_v34 = vsel %vm1153_vm6, %v1918_v3, 0.0 }
 0x9b4   : > { %v1934_v36 = vsel %vm1153_vm6, %v1917_v32, 0.0 }
 0x9b5   : > { %v1928_v21 = vrot.slane %v1927_v30, 4  ;;  %v1904_v17 = vpop.permute.xlu1 %1903  ;;  %v1936_v42 = vadd.f32 %v1935_v34, %v1934_v36 }
 0x9b6   : > { %v1902_v19 = vpop.permute.xlu0 %1901  ;;  %v1920_v43 = vsel %vm502_vm1, %v5038_v11, %v1904_v17 }
 0x9b7   : > { %v1929_v33 = vadd.f32 %v1928_v21, %v1927_v30  ;;  %v1919_v44 = vsel %vm502_vm1, %v5041_v35, %v1902_v19  ;;  %v1939_v29 = vsel %vm1153_vm6, %v1920_v43, 0.0 }
 0x9b8   : > { %v1937_v45 = vsel %vm1153_vm6, %v1919_v44, 0.0 }
 0x9b9   : > { %v1930_v23 = vrot.slane %v1929_v33, 2  ;;  %v1938_v0 = vadd.f32 %v1937_v45, %v1936_v42  ;;  %v2033_v45 = vld [vmem:[%s5794_s3 + $0xb0] sm:$0xff] }
 0x9bb   : > { %v1931_v12 = vadd.f32 %v1930_v23, %v1929_v33  ;;  %v1940_v55 = vadd.f32 %v1939_v29, %v1938_v0  ;;  %v2034_v23 = vld [vmem:[%s5794_s3 + $0xb8] sm:$0xff] }
 0x9bc   : > { %v4291_v0 = vpack.c.bf16 %v2034_v23, %v2033_v45 }
 0x9bd   : > { %v1932_v40 = vrot.slane %v1931_v12, 1  ;;  %v1941_v22 = vrot.slane %v1940_v55, 4 }
 0x9be   : > { %4292 = vmatprep.subr.bf16.mxu1 %v4291_v0 }
 0x9bf   : > { %v1933_v39 = vadd.f32 %v1932_v40, %v1931_v12  ;;  %v1942_v3 = vadd.f32 %v1941_v22, %v1940_v55  ;;  %4294 = vmatpush3.bf16.msra.mxu1 %v4291_v0  ;;  %v2035_v55 = vld [vmem:[%s5794_s3 + $0xc0] sm:$0xff]  ;;  %v2036_v40 = vld [vmem:[%s5794_s3 + $0xc8] sm:$0xff] }
 0x9c1   : > { %v1947_v26 = vmul.f32 0.03125, %v1933_v39  ;;  %v1943_v30 = vrot.slane %v1942_v3, 2  ;;  %v4295_v39 = vpack.c.bf16 %v2036_v40, %v2035_v55 }
 0x9c3   : > { %v1944_v32 = vadd.f32 %v1943_v30, %v1942_v3  ;;  %v1949_v34 = vmul.f32 %v1947_v26, %v1947_v26  ;;  %4296 = vmatprep.subr.bf16.mxu1 %v4295_v39 }
 0x9c4   : > { %4298 = vmatpush3.bf16.msra.mxu1 %v4295_v39 }
 0x9c5   : > { %v1945_v36 = vrot.slane %v1944_v32, 1  ;;  %1953 = vrot.lane.b32.xlu0 %v1949_v34, %s4488_s9 }
 0x9c7   : > { %v1946_v21 = vadd.f32 %v1945_v36, %v1944_v32 }
 0x9c9   : > { %v1948_v17 = vmul.f32 0.03125, %v1946_v21  ;;  %v1967_v21 = vsub.f32 %v5012_v28, %v1947_v26 }
 0x9cb   : > { %v1950_v19 = vmul.f32 %v1948_v17, %v1948_v17  ;;  %v1972_v39 = vsub.f32 %v5028_v1, %v1948_v17 }
 0x9cd   : > { %1955 = vrot.lane.b32.xlu1 %v1950_v19, %s4488_s9  ;;  %v1968_v19 = vsub.f32 %v5010_v60, %v1947_v26 }
 0xa37   : > { %v1954_v42 = vpop.permute.xlu0 %1953 }
 0xa38   : > { %v1959_v43 = vsub.f32 %v1947_v26, %v1954_v42  ;;  %v1969_v42 = vsub.f32 %v5021_v37, %v1947_v26 }
 0xa3a   : > { %v1961_v33 = vmax.f32 %v1959_v43, 0.0  ;;  %v1970_v43 = vsub.f32 %v5018_v16, %v1947_v26  ;;  %v1971_v26 = vsub.f32 %v5031_v15, %v1948_v17 }
 0xa3c   : > { %v1963_v44 = vadd.f32 1e-05, %v1961_v33  ;;  %v3708_v33 = vld [vmem:[%s5796_s5 + $0x9] ss:$0 sm:$0xff] }
 0xa3e   : > { %4407 = vrsqrt.f32 %v1963_v44 }
 0xa3f   : > { %v1956_v29 = vpop.permute.xlu1 %1955 }
 0xa40   : > { %v1960_v12 = vsub.f32 %v1948_v17, %v1956_v29 }
 0xa42   : > { %v1962_v22 = vmax.f32 %v1960_v12, 0.0  ;;  %v3709_v12 = vld [vmem:[%s5796_s5 + $0xa] ss:$0 sm:$0xff] }
 0xa44   : > { %v1964_v3 = vadd.f32 1e-05, %v1962_v22 }
 0xa46   : > { %4409 = vrsqrt.f32 %v1964_v3 }
 0xa48   : > { %v4408_v30 = vpop.eup %4407 }
 0xa49   : > { %v1978_v32 = vrot.slane %v4408_v30, %v4816_v7  ;;  %v1973_v30 = vsub.f32 %v5041_v35, %v1948_v17 }
 0xa4b   : > { %1985 = vrot.lane.b32.xlu0 %v1978_v32, %s4489_s19  ;;  %v1974_v32 = vsub.f32 %v5038_v11, %v1948_v17 }
 0xa50   : > { %v4410_v34 = vpop.eup %4409 }
 0xa51   : > { %v1982_v36 = vrot.slane %v4410_v34, %v4816_v7 }
 0xa53   : > { %1987 = vrot.lane.b32.xlu1 %v1982_v36, %s4489_s19 }
 0xabd   : > { %v1986_v44 = vpop.permute.xlu0 %1985 }
 0xabe   : > { %v1991_v45 = vmul.f32 %v1986_v44, %v1967_v21  ;;  %v1992_v23 = vmul.f32 %v1986_v44, %v1968_v19  ;;  %v1993_v0 = vmul.f32 %v1986_v44, %v1969_v42  ;;  %v1994_v29 = vmul.f32 %v1986_v44, %v1970_v43 }
 0xac0   : > { %v2004_v28 = vmul.f32 %v3708_v33, %v1991_v45  ;;  %v2005_v55 = vmul.f32 %v3708_v33, %v1992_v23  ;;  %v2006_v60 = vmul.f32 %v3708_v33, %v1993_v0  ;;  %v2007_v40 = vmul.f32 %v3708_v33, %v1994_v29 }
 0xac2   : > { %v2018_v37 = vadd.f32 %v3709_v12, %v2005_v55  ;;  %v2017_v22 = vadd.f32 %v3709_v12, %v2004_v28  ;;  %v2019_v16 = vadd.f32 %v3709_v12, %v2006_v60  ;;  %v2020_v19 = vadd.f32 %v3709_v12, %v2007_v40 }
 0xac4   : > { %v2026_v3 = vmax.f32 %v2018_v37, 0.0  ;;  %v2025_v34 = vmax.f32 %v2017_v22, 0.0  ;;  %v2027_v21 = vmax.f32 %v2019_v16, 0.0  ;;  %v2028_v0 = vmax.f32 %v2020_v19, 0.0 }
 0xac5   : > { %v1988_v36 = vpop.permute.xlu1 %1987 }
 0xac6   : > { %v1995_v42 = vmul.f32 %v1988_v36, %v1971_v26  ;;  %v1996_v43 = vmul.f32 %v1988_v36, %v1972_v39  ;;  %v1997_v44 = vmul.f32 %v1988_v36, %v1973_v30  ;;  %v1998_v45 = vmul.f32 %v1988_v36, %v1974_v32  ;;  %4108 = vmatprep.mubr.msk.f32.mxu1 %vm502_vm1, %v2025_v34 }
 0xac7   : > { %4109 = vmatmul.mubr.msk.f32.vlgmr.msra.gmra.mrb[32].mxu1 %vm502_vm1, %v2026_v3 }
 0xac8   : > { %v2008_v15 = vmul.f32 %v3708_v33, %v1995_v42  ;;  %v2009_v23 = vmul.f32 %v3708_v33, %v1996_v43  ;;  %v2010_v1 = vmul.f32 %v3708_v33, %v1997_v44  ;;  %4111 = vmatprep.mubr.msk.f32.mxu1 %vm502_vm1, %v2027_v21  ;;  %v2011_v35 = vmul.f32 %v3708_v33, %v1998_v45  ;;  %v3710_v33 = vld [vmem:[%s5796_s5 + $0xb] ss:$0 sm:$0xff] }
 0xaca   : > { %v2021_v11 = vadd.f32 %v3709_v12, %v2008_v15  ;;  %v2022_v17 = vadd.f32 %v3709_v12, %v2009_v23  ;;  %v2023_v29 = vadd.f32 %v3709_v12, %v2010_v1  ;;  %v2024_v60 = vadd.f32 %v3709_v12, %v2011_v35 }
 0xacb   : > { %4112 = vmatmul.mubr.msk.f32.gmra.mrb[34].mxu1 %vm502_vm1, %v2028_v0 }
 0xacc   : > { %v2029_v28 = vmax.f32 %v2021_v11, 0.0  ;;  %v2030_v55 = vmax.f32 %v2022_v17, 0.0  ;;  %v2031_v40 = vmax.f32 %v2023_v29, 0.0  ;;  %v2032_v37 = vmax.f32 %v2024_v60, 0.0 }
 0xace   : > { %4114 = vmatprep.mubr.msk.f32.mxu1 %vm502_vm1, %v2029_v28 }
 0xacf   : > { %4115 = vmatmul.mubr.msk.f32.gmra.mrb[36].mxu1 %vm502_vm1, %v2030_v55 }
 0xad0   : > { %4117 = vmatprep.mubr.msk.f32.mxu1 %vm502_vm1, %v2031_v40 }
 0xad3   : > { %4118 = vmatmul.mubr.msk.f32.gmra.mrb[38].mxu1 %vm502_vm1, %v2032_v37 }
 0xad4   : > { %4142 = vmatprep.mubr.msk.f32.mxu1 %vm502_vm1, %v4663_v4 }
 0xb9a   : > { %v4110_v22 = vpop.f32.mrb[32].mxu1 }
 0xb9b   : > { %v5119_v16 = vadd.f32 %v4110_v22, %v3710_v33  ;;  %v2132_v12 = vpop.f32.mrb[33].mxu1 }
 0xb9c   : > { %v5121_v26 = vadd.f32 %v3710_v33, %v2132_v12 }
 0xb9d   : > { %v2172_v39 = vmul.f32 %v5119_v16, %v5119_v16 }
 0xb9e   : > { %v4113_v3 = vpop.f32.mrb[34].mxu1  ;;  %v2171_v30 = vmul.f32 %v5121_v26, %v5121_v26 }
 0xb9f   : > { %v5127_v32 = vadd.f32 %v4113_v3, %v3710_v33  ;;  %2189 = vrot.lane.b32.xlu1 %v2172_v39, %s4488_s9  ;;  %v2142_v4 = vpop.f32.mrb[35].mxu1 }
 0xba0   : > { %v5130_v34 = vadd.f32 %v3710_v33, %v2142_v4  ;;  %2187 = vrot.lane.b32.xlu0 %v2171_v30, %s4488_s9 }
 0xba1   : > { %v2174_v36 = vmul.f32 %v5127_v32, %v5127_v32 }
 0xba2   : > { %v4116_v21 = vpop.f32.mrb[36].mxu1  ;;  %v2173_v19 = vmul.f32 %v5130_v34, %v5130_v34 }
 0xba3   : > { %v5137_v42 = vadd.f32 %v4116_v21, %v3710_v33  ;;  %2193 = vrot.lane.b32.xlu1 %v2174_v36, %s4488_s9  ;;  %v2152_v43 = vpop.f32.mrb[37].mxu1 }
 0xba4   : > { %v5140_v44 = vadd.f32 %v3710_v33, %v2152_v43  ;;  %2191 = vrot.lane.b32.xlu0 %v2173_v19, %s4488_s9 }
 0xba5   : > { %v2176_v45 = vmul.f32 %v5137_v42, %v5137_v42 }
 0xba6   : > { %v4119_v15 = vpop.f32.mrb[38].mxu1  ;;  %v2175_v23 = vmul.f32 %v5140_v44, %v5140_v44 }
 0xba7   : > { %v5147_v1 = vadd.f32 %v4119_v15, %v3710_v33  ;;  %2197 = vrot.lane.b32.xlu1 %v2176_v45, %s4488_s9  ;;  %v2162_v35 = vpop.f32.mrb[39].mxu1 }
 0xba8   : > { %v5150_v0 = vadd.f32 %v3710_v33, %v2162_v35  ;;  %2195 = vrot.lane.b32.xlu0 %v2175_v23, %s4488_s9 }
 0xba9   : > { %v2178_v11 = vmul.f32 %v5147_v1, %v5147_v1 }
 0xbaa   : > { %v2177_v17 = vmul.f32 %v5150_v0, %v5150_v0 }
 0xbab   : > { %2201 = vrot.lane.b32.xlu1 %v2178_v11, %s4488_s9 }
 0xbac   : > { %2199 = vrot.lane.b32.xlu0 %v2177_v17, %s4488_s9 }
 0xc11   : > { %v2190_v29 = vpop.permute.xlu1 %2189 }
 0xc12   : > { %v2212_v28 = vsel %vm502_vm1, %v5119_v16, %v2190_v29  ;;  %v2188_v55 = vpop.permute.xlu0 %2187 }
 0xc13   : > { %v2211_v60 = vsel %vm502_vm1, %v5121_v26, %v2188_v55  ;;  %v2220_v40 = vsel %vm1153_vm6, %v2212_v28, 0.0 }
 0xc14   : > { %v2219_v37 = vsel %vm1153_vm6, %v2211_v60, 0.0 }
 0xc15   : > { %v2194_v33 = vpop.permute.xlu1 %2193  ;;  %v2221_v12 = vadd.f32 %v2220_v40, %v2219_v37 }
 0xc16   : > { %v2192_v22 = vpop.permute.xlu0 %2191  ;;  %v2214_v39 = vsel %vm502_vm1, %v5127_v32, %v2194_v33 }
 0xc17   : > { %v2213_v3 = vsel %vm502_vm1, %v5130_v34, %v2192_v22  ;;  %v2224_v21 = vsel %vm1153_vm6, %v2214_v39, 0.0 }
 0xc18   : > { %v2222_v30 = vsel %vm1153_vm6, %v2213_v3, 0.0 }
 0xc19   : > { %v2223_v4 = vadd.f32 %v2222_v30, %v2221_v12  ;;  %v2198_v36 = vpop.permute.xlu1 %2197 }
 0xc1a   : > { %v2216_v19 = vsel %vm502_vm1, %v5137_v42, %v2198_v36  ;;  %v2196_v43 = vpop.permute.xlu0 %2195 }
 0xc1b   : > { %v2225_v45 = vadd.f32 %v2224_v21, %v2223_v4  ;;  %v2215_v15 = vsel %vm502_vm1, %v5140_v44, %v2196_v43  ;;  %v2233_v23 = vsel %vm1153_vm6, %v2216_v19, 0.0 }
 0xc1c   : > { %v2232_v35 = vsel %vm1153_vm6, %v2215_v15, 0.0 }
 0xc1d   : > { %v2226_v11 = vrot.slane %v2225_v45, 4  ;;  %v2202_v17 = vpop.permute.xlu1 %2201  ;;  %v2234_v55 = vadd.f32 %v2233_v23, %v2232_v35 }
 0xc1e   : > { %v2200_v29 = vpop.permute.xlu0 %2199  ;;  %v2218_v60 = vsel %vm502_vm1, %v5147_v1, %v2202_v17 }
 0xc1f   : > { %v2227_v28 = vadd.f32 %v2226_v11, %v2225_v45  ;;  %v2217_v40 = vsel %vm502_vm1, %v5150_v0, %v2200_v29  ;;  %v2237_v12 = vsel %vm1153_vm6, %v2218_v60, 0.0 }
 0xc20   : > { %v2235_v37 = vsel %vm1153_vm6, %v2217_v40, 0.0 }
 0xc21   : > { %v2228_v33 = vrot.slane %v2227_v28, 2  ;;  %v2236_v22 = vadd.f32 %v2235_v37, %v2234_v55 }
 0xc23   : > { %v2229_v39 = vadd.f32 %v2228_v33, %v2227_v28  ;;  %v2238_v3 = vadd.f32 %v2237_v12, %v2236_v22 }
 0xc25   : > { %v2230_v30 = vrot.slane %v2229_v39, 1  ;;  %v2239_v4 = vrot.slane %v2238_v3, 4 }
 0xc27   : > { %v2231_v36 = vadd.f32 %v2230_v30, %v2229_v39  ;;  %v2240_v21 = vadd.f32 %v2239_v4, %v2238_v3 }
 0xc29   : > { %v2245_v19 = vmul.f32 0.03125, %v2231_v36  ;;  %v2241_v43 = vrot.slane %v2240_v21, 2 }
 0xc2b   : > { %v2242_v45 = vadd.f32 %v2241_v43, %v2240_v21  ;;  %v2247_v15 = vmul.f32 %v2245_v19, %v2245_v19  ;;  %v2265_v4 = vsub.f32 %v5121_v26, %v2245_v19  ;;  %v2266_v36 = vsub.f32 %v5119_v16, %v2245_v19 }
 0xc2c   : > { %v2267_v21 = vsub.f32 %v5130_v34, %v2245_v19  ;;  %v2268_v43 = vsub.f32 %v5127_v32, %v2245_v19 }
 0xc2d   : > { %v2243_v23 = vrot.slane %v2242_v45, 1  ;;  %2251 = vrot.lane.b32.xlu0 %v2247_v15, %s4488_s9 }
 0xc2f   : > { %v2244_v35 = vadd.f32 %v2243_v23, %v2242_v45  ;;  %v3719_v45 = vld [vmem:[%s5796_s5 + $0xc] ss:$0 sm:$0xff] }
 0xc31   : > { %v2246_v11 = vmul.f32 0.03125, %v2244_v35 }
 0xc33   : > { %v2248_v17 = vmul.f32 %v2246_v11, %v2246_v11 }
 0xc35   : > { %2253 = vrot.lane.b32.xlu1 %v2248_v17, %s4488_s9 }
 0xc9f   : > { %v2252_v29 = vpop.permute.xlu0 %2251 }
 0xca0   : > { %v2257_v55 = vsub.f32 %v2245_v19, %v2252_v29 }
 0xca2   : > { %v2259_v28 = vmax.f32 %v2257_v55, 0.0  ;;  %v3720_v55 = vld [vmem:[%s5796_s5 + $0xd] ss:$0 sm:$0xff] }
 0xca4   : > { %v2261_v60 = vadd.f32 1e-05, %v2259_v28 }
 0xca6   : > { %4411 = vrsqrt.f32 %v2261_v60 }
 0xca7   : > { %v2254_v40 = vpop.permute.xlu1 %2253 }
 0xca8   : > { %v2258_v37 = vsub.f32 %v2246_v11, %v2254_v40 }
 0xcaa   : > { %v2260_v33 = vmax.f32 %v2258_v37, 0.0  ;;  %v2269_v37 = vsub.f32 %v5140_v44, %v2246_v11 }
 0xcac   : > { %v2262_v22 = vadd.f32 1e-05, %v2260_v33  ;;  %v2270_v33 = vsub.f32 %v5137_v42, %v2246_v11 }
 0xcae   : > { %4413 = vrsqrt.f32 %v2262_v22  ;;  %v2271_v22 = vsub.f32 %v5150_v0, %v2246_v11 }
 0xcb0   : > { %v4412_v12 = vpop.eup %4411 }
 0xcb1   : > { %v2276_v39 = vrot.slane %v4412_v12, %v4816_v7  ;;  %v2272_v12 = vsub.f32 %v5147_v1, %v2246_v11 }
 0xcb3   : > { %2283 = vrot.lane.b32.xlu0 %v2276_v39, %s4489_s19 }
 0xcb8   : > { %v4414_v3 = vpop.eup %4413 }
 0xcb9   : > { %v2280_v30 = vrot.slane %v4414_v3, %v4816_v7 }
 0xcbb   : > { %2285 = vrot.lane.b32.xlu1 %v2280_v30, %s4489_s19 }
 0xd25   : > { %v2284_v15 = vpop.permute.xlu0 %2283 }
 0xd26   : > { %v2289_v23 = vmul.f32 %v2284_v15, %v2265_v4  ;;  %v2290_v35 = vmul.f32 %v2284_v15, %v2266_v36  ;;  %v2291_v17 = vmul.f32 %v2284_v15, %v2267_v21  ;;  %v2292_v29 = vmul.f32 %v2284_v15, %v2268_v43 }
 0xd28   : > { %v2302_v26 = vmul.f32 %v3719_v45, %v2289_v23  ;;  %v2303_v28 = vmul.f32 %v3719_v45, %v2290_v35  ;;  %v2304_v16 = vmul.f32 %v3719_v45, %v2291_v17  ;;  %v2305_v60 = vmul.f32 %v3719_v45, %v2292_v29  ;;  %v2501_v35 = vld [vmem:[%s5794_s3 + $0x70] sm:$0xff]  ;;  %v2502_v17 = vld [vmem:[%s5794_s3 + $0x78] sm:$0xff] }
 0xd2a   : > { %v5199_v34 = vadd.f32 %v3720_v55, %v2302_v26  ;;  %v5201_v32 = vadd.f32 %v3720_v55, %v2303_v28  ;;  %v5203_v19 = vadd.f32 %v3720_v55, %v2304_v16  ;;  %v5205_v40 = vadd.f32 %v3720_v55, %v2305_v60 }
 0xd2b   : > { %v4315_v60 = vpack.c.bf16 %v2502_v17, %v2501_v35 }
 0xd2c   : > { %v2323_v39 = vmax.f32 %v5199_v34, 0.0  ;;  %v2324_v3 = vmax.f32 %v5201_v32, 0.0  ;;  %v2325_v4 = vmax.f32 %v5203_v19, 0.0  ;;  %v2326_v36 = vmax.f32 %v5205_v40, 0.0 }
 0xd2d   : > { %v2286_v30 = vpop.permute.xlu1 %2285  ;;  %v3198_v32 = vsub.s32 1, %v4638_v49 }
 0xd2e   : > { %v2293_v21 = vmul.f32 %v2286_v30, %v2269_v37  ;;  %v2294_v43 = vmul.f32 %v2286_v30, %v2270_v33  ;;  %v2295_v15 = vmul.f32 %v2286_v30, %v2271_v22  ;;  %v2296_v23 = vmul.f32 %v2286_v30, %v2272_v12  ;;  %v2503_v30 = vld [vmem:[%s5794_s3 + $0x80] sm:$0xff] }
 0xd2f   : > { %v4299_v42 = vpack.c.bf16 %v2324_v3, %v2323_v39  ;;  %v4303_v29 = vpack.c.bf16 %v2326_v36, %v2325_v4 }
 0xd30   : > { %v2306_v44 = vmul.f32 %v3719_v45, %v2293_v21  ;;  %v2307_v1 = vmul.f32 %v3719_v45, %v2294_v43  ;;  %v2308_v0 = vmul.f32 %v3719_v45, %v2295_v15  ;;  %v2309_v11 = vmul.f32 %v3719_v45, %v2296_v23  ;;  %v2504_v21 = vld [vmem:[%s5794_s3 + $0x88] sm:$0xff] }
 0xd31   : > { %4300 = vmatprep.subr.bf16.mxu0 %v4299_v42  ;;  %v4319_v15 = vpack.c.bf16 %v2504_v21, %v2503_v30 }
 0xd32   : > { %4302 = vmatpush3.bf16.msra.mxu0 %v4299_v42  ;;  %v5229_v26 = vadd.f32 %v3720_v55, %v2306_v44  ;;  %v5231_v28 = vadd.f32 %v3720_v55, %v2307_v1  ;;  %v5233_v45 = vadd.f32 %v3720_v55, %v2308_v0  ;;  %v5235_v16 = vadd.f32 %v3720_v55, %v2309_v11  ;;  %v3729_v44 = vld [vmem:[%s5796_s5 + $0xe] ss:$0 sm:$0xff] }
 0xd33   : > { %4304 = vmatprep.subr.bf16.mxu0 %v4303_v29 }
 0xd34   : > { %v2327_v37 = vmax.f32 %v5229_v26, 0.0  ;;  %v2328_v33 = vmax.f32 %v5231_v28, 0.0  ;;  %v2329_v22 = vmax.f32 %v5233_v45, 0.0  ;;  %v2330_v12 = vmax.f32 %v5235_v16, 0.0  ;;  %v3749_v28 = vld [vmem:[%s5796_s5 + $0x12] ss:$0 sm:$0xff] }
 0xd36   : > { %4306 = vmatpush3.bf16.msra.mxu0 %v4303_v29  ;;  %v4307_v55 = vpack.c.bf16 %v2328_v33, %v2327_v37  ;;  %v4311_v43 = vpack.c.bf16 %v2330_v12, %v2329_v22 }
 0xd37   : > { %4316 = vmatprep.subr.bf16.mxu0 %v4315_v60 }
 0xd38   : > { %4308 = vmatprep.subr.bf16.mxu1 %v4307_v55 }
 0xd39   : > { %4129 = vmatmul.mubr.msk.f32.vlgmr.msra.gmra.mrb[32].mxu0 %vm502_vm1, %v4652_v59  ;;  %4310 = vmatpush3.bf16.msra.mxu1 %v4307_v55 }
 0xd3a   : > { %4312 = vmatprep.subr.bf16.mxu1 %v4311_v43  ;;  %4131 = vmatprep.mubr.msk.f32.mxu0 %vm502_vm1, %v4658_v63 }
 0xd3b   : > { %4318 = vmatpush3.bf16.msra.mxu0 %v4315_v60 }
 0xd3c   : > { %4320 = vmatprep.subr.bf16.mxu0 %v4319_v15 }
 0xd3d   : > { %4132 = vmatmul.mubr.msk.f32.gmra.mrb[34].mxu0 %vm502_vm1, %v4661_v2  ;;  %4314 = vmatpush3.bf16.msra.mxu1 %v4311_v43 }
 0xd3f   : > { %4322 = vmatpush3.bf16.msra.mxu0 %v4319_v15 }
 0xd40   : > { %4143 = vmatmul.mubr.msk.f32.vlgmr.msra.gmra.mrb[40].mxu1 %vm502_vm1, %v4665_v6 }
 0xd41   : > { %4145 = vmatprep.mubr.msk.f32.mxu1 %vm502_vm1, %v4667_v8 }
 0xd44   : > { %4146 = vmatmul.mubr.msk.f32.gmra.mrb[42].mxu1 %vm502_vm1, %v4669_v10 }
 0xe0c   : > { %v4130_v59 = vpop.f32.mrb[32].mxu0 }
 0xe0d   : > { %v2397_v23 = vpop.f32.mrb[33].mxu0 }
 0xe0e   : > { %4156 = vmatprep.mubr.msk.f32.mxu0 %vm502_vm1, %v2397_v23 }
 0xe0f   : > { %4157 = vmatmul.mubr.msk.f32.vlgmr.msra.gmra.mrb[36].mxu0 %vm502_vm1, %v4130_v59 }
 0xe10   : > { %v4133_v63 = vpop.f32.mrb[34].mxu0 }
 0xe11   : > { %v2407_v42 = vpop.f32.mrb[35].mxu0 }
 0xe12   : > { %4159 = vmatprep.mubr.msk.f32.mxu0 %vm502_vm1, %v2407_v42 }
 0xe13   : > { %4160 = vmatmul.mubr.msk.f32.gmra.mrb[38].mxu0 %vm502_vm1, %v4133_v63  ;;  %v4144_v2 = vpop.f32.mrb[40].mxu1 }
 0xe14   : > { %v2482_v6 = vpop.f32.mrb[41].mxu1 }
 0xe15   : > { %4162 = vmatprep.mubr.msk.f32.mxu0 %vm502_vm1, %v2482_v6 }
 0xe17   : > { %4163 = vmatmul.mubr.msk.f32.gmra.mrb[40].mxu0 %vm502_vm1, %v4144_v2  ;;  %v4147_v8 = vpop.f32.mrb[42].mxu1 }
 0xe18   : > { %v2492_v10 = vpop.f32.mrb[43].mxu1 }
 0xe19   : > { %4165 = vmatprep.mubr.msk.f32.mxu0 %vm502_vm1, %v2492_v10 }
 0xe1b   : > { %4166 = vmatmul.mubr.msk.f32.gmra.mrb[42].mxu0 %vm502_vm1, %v4147_v8 }
 0xee2   : > { %v4158_v1 = vpop.f32.mrb[36].mxu0 }
 0xee3   : > { %v5278_v0 = vadd.f32 %v4158_v1, %v3729_v44  ;;  %v2600_v11 = vpop.f32.mrb[37].mxu0 }
 0xee4   : > { %v5280_v35 = vadd.f32 %v3729_v44, %v2600_v11 }
 0xee5   : > { %v2640_v17 = vmul.f32 %v5278_v0, %v5278_v0 }
 0xee6   : > { %v4161_v29 = vpop.f32.mrb[38].mxu0  ;;  %v2639_v60 = vmul.f32 %v5280_v35, %v5280_v35 }
 0xee7   : > { %v5286_v30 = vadd.f32 %v4161_v29, %v3729_v44  ;;  %2657 = vrot.lane.b32.xlu1 %v2640_v17, %s4488_s9  ;;  %v2610_v21 = vpop.f32.mrb[39].mxu0 }
 0xee8   : > { %v5289_v55 = vadd.f32 %v3729_v44, %v2610_v21  ;;  %2655 = vrot.lane.b32.xlu0 %v2639_v60, %s4488_s9 }
 0xee9   : > { %v2642_v43 = vmul.f32 %v5286_v30, %v5286_v30 }
 0xeea   : > { %v4164_v15 = vpop.f32.mrb[40].mxu0  ;;  %v2641_v59 = vmul.f32 %v5289_v55, %v5289_v55 }
 0xeeb   : > { %v5296_v23 = vadd.f32 %v4164_v15, %v3729_v44  ;;  %2661 = vrot.lane.b32.xlu1 %v2642_v43, %s4488_s9  ;;  %v2620_v63 = vpop.f32.mrb[41].mxu0 }
 0xeec   : > { %v5299_v42 = vadd.f32 %v3729_v44, %v2620_v63  ;;  %2659 = vrot.lane.b32.xlu0 %v2641_v59, %s4488_s9 }
 0xeed   : > { %v2644_v2 = vmul.f32 %v5296_v23, %v5296_v23 }
 0xeee   : > { %v4167_v6 = vpop.f32.mrb[42].mxu0  ;;  %v2643_v8 = vmul.f32 %v5299_v42, %v5299_v42 }
 0xeef   : > { %v5306_v10 = vadd.f32 %v4167_v6, %v3729_v44  ;;  %2665 = vrot.lane.b32.xlu1 %v2644_v2, %s4488_s9  ;;  %v2630_v1 = vpop.f32.mrb[43].mxu0 }
 0xef0   : > { %v5309_v11 = vadd.f32 %v3729_v44, %v2630_v1  ;;  %2663 = vrot.lane.b32.xlu0 %v2643_v8, %s4488_s9 }
 0xef1   : > { %v2646_v17 = vmul.f32 %v5306_v10, %v5306_v10 }
 0xef2   : > { %v2645_v29 = vmul.f32 %v5309_v11, %v5309_v11 }
 0xef3   : > { %2669 = vrot.lane.b32.xlu1 %v2646_v17, %s4488_s9 }
 0xef4   : > { %2667 = vrot.lane.b32.xlu0 %v2645_v29, %s4488_s9 }
 0xf59   : > { %v2658_v60 = vpop.permute.xlu1 %2657 }
 0xf5a   : > { %v2680_v21 = vsel %vm502_vm1, %v5278_v0, %v2658_v60  ;;  %v2656_v43 = vpop.permute.xlu0 %2655 }
 0xf5b   : > { %v2679_v44 = vsel %vm502_vm1, %v5280_v35, %v2656_v43  ;;  %v2688_v15 = vsel %vm1153_vm6, %v2680_v21, 0.0 }
 0xf5c   : > { %v2687_v59 = vsel %vm1153_vm6, %v2679_v44, 0.0 }
 0xf5d   : > { %v2662_v63 = vpop.permute.xlu1 %2661  ;;  %v2689_v6 = vadd.f32 %v2688_v15, %v2687_v59 }
 0xf5e   : > { %v2660_v2 = vpop.permute.xlu0 %2659  ;;  %v2682_v8 = vsel %vm502_vm1, %v5286_v30, %v2662_v63 }
 0xf5f   : > { %v2681_v1 = vsel %vm502_vm1, %v5289_v55, %v2660_v2  ;;  %v2692_v25 = vsel %vm1153_vm6, %v2682_v8, 0.0 }
 0xf60   : > { %v2690_v17 = vsel %vm1153_vm6, %v2681_v1, 0.0 }
 0xf61   : > { %v2691_v29 = vadd.f32 %v2690_v17, %v2689_v6  ;;  %v2666_v60 = vpop.permute.xlu1 %2665 }
 0xf62   : > { %v2684_v21 = vsel %vm502_vm1, %v5296_v23, %v2666_v60  ;;  %v2664_v43 = vpop.permute.xlu0 %2663 }
 0xf63   : > { %v2693_v44 = vadd.f32 %v2692_v25, %v2691_v29  ;;  %v2683_v15 = vsel %vm502_vm1, %v5299_v42, %v2664_v43  ;;  %v2701_v59 = vsel %vm1153_vm6, %v2684_v21, 0.0 }
 0xf64   : > { %v2700_v63 = vsel %vm1153_vm6, %v2683_v15, 0.0 }
 0xf65   : > { %v2694_v24 = vrot.slane %v2693_v44, 4  ;;  %v2670_v2 = vpop.permute.xlu1 %2669  ;;  %v2702_v6 = vadd.f32 %v2701_v59, %v2700_v63 }
 0xf66   : > { %v2668_v18 = vpop.permute.xlu0 %2667  ;;  %v2686_v8 = vsel %vm502_vm1, %v5306_v10, %v2670_v2 }
 0xf67   : > { %v2695_v1 = vadd.f32 %v2694_v24, %v2693_v44  ;;  %v2685_v17 = vsel %vm502_vm1, %v5309_v11, %v2668_v18  ;;  %v2705_v43 = vsel %vm1153_vm6, %v2686_v8, 0.0 }
 0xf68   : > { %v2703_v25 = vsel %vm1153_vm6, %v2685_v17, 0.0 }
 0xf69   : > { %v2696_v29 = vrot.slane %v2695_v1, 2  ;;  %v2704_v60 = vadd.f32 %v2703_v25, %v2702_v6 }
 0xf6b   : > { %v2697_v21 = vadd.f32 %v2696_v29, %v2695_v1  ;;  %v2706_v20 = vadd.f32 %v2705_v43, %v2704_v60  ;;  %v2801_v60 = vld [vmem:[%s5794_s3 + $0xe0] sm:$0xff]  ;;  %v2802_v43 = vld [vmem:[%s5794_s3 + $0xe8] sm:$0xff] }
 0xf6d   : > { %v2698_v15 = vrot.slane %v2697_v21, 1  ;;  %v2707_v62 = vrot.slane %v2706_v20, 4 }
 0xf6f   : > { %v2699_v61 = vadd.f32 %v2698_v15, %v2697_v21  ;;  %v2708_v56 = vadd.f32 %v2707_v62, %v2706_v20  ;;  %v2799_v62 = vld [vmem:[%s5794_s3 + $0xd0] sm:$0xff]  ;;  %v4327_v15 = vpack.c.bf16 %v2802_v43, %v2801_v60 }
 0xf70   : > { %v3739_v60 = vld [vmem:[%s5796_s5 + $0x10] ss:$0 sm:$0xff] }
 0xf71   : > { %v2713_v24 = vmul.f32 0.03125, %v2699_v61  ;;  %v2709_v44 = vrot.slane %v2708_v56, 2 }
 0xf73   : > { %v2710_v59 = vadd.f32 %v2709_v44, %v2708_v56  ;;  %v2715_v63 = vmul.f32 %v2713_v24, %v2713_v24  ;;  %v2800_v56 = vld [vmem:[%s5794_s3 + $0xd8] sm:$0xff] }
 0xf74   : > { %v4323_v61 = vpack.c.bf16 %v2800_v56, %v2799_v62 }
 0xf75   : > { %v2711_v2 = vrot.slane %v2710_v59, 1  ;;  %2719 = vrot.lane.b32.xlu0 %v2715_v63, %s4488_s9 }
 0xf76   : > { %4324 = vmatprep.subr.bf16.mxu1 %v4323_v61 }
 0xf77   : > { %v2712_v18 = vadd.f32 %v2711_v2, %v2710_v59  ;;  %4326 = vmatpush3.bf16.msra.mxu1 %v4323_v61 }
 0xf78   : > { %4328 = vmatprep.subr.bf16.mxu1 %v4327_v15 }
 0xf79   : > { %v2714_v54 = vmul.f32 0.03125, %v2712_v18 }
 0xf7b   : > { %v2716_v17 = vmul.f32 %v2714_v54, %v2714_v54  ;;  %4330 = vmatpush3.bf16.msra.mxu1 %v4327_v15 }
 0xf7d   : > { %2721 = vrot.lane.b32.xlu1 %v2716_v17, %s4488_s9  ;;  %v2733_v17 = vsub.f32 %v5280_v35, %v2713_v24 }
 0xfe7   : > { %v2720_v6 = vpop.permute.xlu0 %2719 }
 0xfe8   : > { %v2725_v8 = vsub.f32 %v2713_v24, %v2720_v6  ;;  %v2734_v6 = vsub.f32 %v5278_v0, %v2713_v24 }
 0xfea   : > { %v2727_v1 = vmax.f32 %v2725_v8, 0.0  ;;  %v2735_v8 = vsub.f32 %v5289_v55, %v2713_v24 }
 0xfec   : > { %v2729_v25 = vadd.f32 1e-05, %v2727_v1  ;;  %v2736_v1 = vsub.f32 %v5286_v30, %v2713_v24  ;;  %v2737_v24 = vsub.f32 %v5299_v42, %v2714_v54 }
 0xfee   : > { %4415 = vrsqrt.f32 %v2729_v25  ;;  %v3738_v25 = vld [vmem:[%s5796_s5 + $0xf] ss:$0 sm:$0xff] }
 0xfef   : > { %v2722_v20 = vpop.permute.xlu1 %2721 }
 0xff0   : > { %v2726_v29 = vsub.f32 %v2714_v54, %v2722_v20 }
 0xff2   : > { %v2728_v21 = vmax.f32 %v2726_v29, 0.0 }
 0xff4   : > { %v2730_v44 = vadd.f32 1e-05, %v2728_v21 }
 0xff6   : > { %4417 = vrsqrt.f32 %v2730_v44  ;;  %v2738_v44 = vsub.f32 %v5296_v23, %v2714_v54 }
 0xff8   : > { %v4416_v59 = vpop.eup %4415 }
 0xff9   : > { %v2744_v63 = vrot.slane %v4416_v59, %v4816_v7 }
 0xffb   : > { %2751 = vrot.lane.b32.xlu0 %v2744_v63, %s4489_s19  ;;  %v2739_v63 = vsub.f32 %v5309_v11, %v2714_v54 }
0x1000   : > { %v4418_v2 = vpop.eup %4417 }
0x1001   : > { %v2748_v18 = vrot.slane %v4418_v2, %v4816_v7  ;;  %v2740_v2 = vsub.f32 %v5306_v10, %v2714_v54 }
0x1003   : > { %2753 = vrot.lane.b32.xlu1 %v2748_v18, %s4489_s19 }
0x106d   : > { %v2752_v62 = vpop.permute.xlu0 %2751 }
0x106e   : > { %v2757_v56 = vmul.f32 %v2752_v62, %v2733_v17  ;;  %v2758_v61 = vmul.f32 %v2752_v62, %v2734_v6  ;;  %v2759_v20 = vmul.f32 %v2752_v62, %v2735_v8  ;;  %v2760_v29 = vmul.f32 %v2752_v62, %v2736_v1 }
0x1070   : > { %v2770_v35 = vmul.f32 %v3738_v25, %v2757_v56  ;;  %v2771_v43 = vmul.f32 %v3738_v25, %v2758_v61  ;;  %v2772_v0 = vmul.f32 %v3738_v25, %v2759_v20  ;;  %v2773_v21 = vmul.f32 %v3738_v25, %v2760_v29 }
0x1072   : > { %v2784_v55 = vadd.f32 %v3739_v60, %v2771_v43  ;;  %v2783_v15 = vadd.f32 %v3739_v60, %v2770_v35  ;;  %v2785_v30 = vadd.f32 %v3739_v60, %v2772_v0  ;;  %v2786_v8 = vadd.f32 %v3739_v60, %v2773_v21 }
0x1074   : > { %v2792_v59 = vmax.f32 %v2784_v55, 0.0  ;;  %v2791_v18 = vmax.f32 %v2783_v15, 0.0  ;;  %v2793_v6 = vmax.f32 %v2785_v30, 0.0  ;;  %v2794_v29 = vmax.f32 %v2786_v8, 0.0 }
0x1075   : > { %v2754_v17 = vpop.permute.xlu1 %2753 }
0x1076   : > { %v2761_v1 = vmul.f32 %v2754_v17, %v2737_v24  ;;  %v2762_v62 = vmul.f32 %v2754_v17, %v2738_v44  ;;  %v2763_v56 = vmul.f32 %v2754_v17, %v2739_v63  ;;  %v2764_v61 = vmul.f32 %v2754_v17, %v2740_v2  ;;  %4176 = vmatprep.mubr.msk.f32.mxu1 %vm502_vm1, %v2791_v18 }
0x1077   : > { %4177 = vmatmul.mubr.msk.f32.vlgmr.msra.gmra.mrb[44].mxu1 %vm502_vm1, %v2792_v59 }
0x1078   : > { %v2774_v42 = vmul.f32 %v3738_v25, %v2761_v1  ;;  %v2775_v20 = vmul.f32 %v3738_v25, %v2762_v62  ;;  %v2776_v23 = vmul.f32 %v3738_v25, %v2763_v56  ;;  %4179 = vmatprep.mubr.msk.f32.mxu1 %vm502_vm1, %v2793_v6  ;;  %v2777_v11 = vmul.f32 %v3738_v25, %v2764_v61  ;;  %v3740_v25 = vld [vmem:[%s5796_s5 + $0x11] ss:$0 sm:$0xff] }
0x107a   : > { %v2787_v54 = vadd.f32 %v3739_v60, %v2774_v42  ;;  %v2788_v10 = vadd.f32 %v3739_v60, %v2775_v20  ;;  %v2789_v35 = vadd.f32 %v3739_v60, %v2776_v23  ;;  %v2790_v21 = vadd.f32 %v3739_v60, %v2777_v11 }
0x107b   : > { %4180 = vmatmul.mubr.msk.f32.gmra.mrb[46].mxu1 %vm502_vm1, %v2794_v29 }
0x107c   : > { %v2795_v43 = vmax.f32 %v2787_v54, 0.0  ;;  %v2796_v0 = vmax.f32 %v2788_v10, 0.0  ;;  %v2797_v55 = vmax.f32 %v2789_v35, 0.0  ;;  %v2798_v15 = vmax.f32 %v2790_v21, 0.0 }
0x107e   : > { %4182 = vmatprep.mubr.msk.f32.mxu1 %vm502_vm1, %v2795_v43 }
0x107f   : > { %4183 = vmatmul.mubr.msk.f32.gmra.mrb[48].mxu1 %vm502_vm1, %v2796_v0 }
0x1080   : > { %4185 = vmatprep.mubr.msk.f32.mxu1 %vm502_vm1, %v2797_v55 }
0x1083   : > { %4186 = vmatmul.mubr.msk.f32.gmra.mrb[50].mxu1 %vm502_vm1, %v2798_v15 }
0x114a   : > { %v4178_v30 = vpop.f32.mrb[44].mxu1 }
0x114b   : > { %v5385_v24 = vadd.f32 %v4178_v30, %v3740_v25  ;;  %v2898_v44 = vpop.f32.mrb[45].mxu1 }
0x114c   : > { %v5387_v59 = vadd.f32 %v3740_v25, %v2898_v44 }
0x114d   : > { %v2938_v60 = vmul.f32 %v5385_v24, %v5385_v24 }
0x114e   : > { %v4181_v63 = vpop.f32.mrb[46].mxu1  ;;  %v2937_v2 = vmul.f32 %v5387_v59, %v5387_v59 }
0x114f   : > { %2955 = vrot.lane.b32.xlu1 %v2938_v60, %s4488_s9  ;;  %v2908_v18 = vpop.f32.mrb[47].mxu1  ;;  %v5406_v42 = vadd.f32 %v4181_v63, %v3740_v25 }
0x1150   : > { %v5394_v17 = vadd.f32 %v3740_v25, %v2908_v18  ;;  %2953 = vrot.lane.b32.xlu0 %v2937_v2, %s4488_s9 }
0x1151   : > { %v2940_v35 = vmul.f32 %v5406_v42, %v5406_v42 }
0x1152   : > { %v4184_v6 = vpop.f32.mrb[48].mxu1  ;;  %v2939_v8 = vmul.f32 %v5394_v17, %v5394_v17 }
0x1153   : > { %v5399_v1 = vadd.f32 %v4184_v6, %v3740_v25  ;;  %v2918_v62 = vpop.f32.mrb[49].mxu1 }
0x1154   : > { %v5401_v56 = vadd.f32 %v3740_v25, %v2918_v62  ;;  %2957 = vrot.lane.b32.xlu0 %v2939_v8, %s4488_s9 }
0x1155   : > { %v2942_v61 = vmul.f32 %v5399_v1, %v5399_v1 }
0x1156   : > { %v4187_v20 = vpop.f32.mrb[50].mxu1  ;;  %v2941_v23 = vmul.f32 %v5401_v56, %v5401_v56 }
0x1157   : > { %2963 = vrot.lane.b32.xlu1 %v2942_v61, %s4488_s9  ;;  %v2928_v11 = vpop.f32.mrb[51].mxu1  ;;  %v5414_v54 = vadd.f32 %v4187_v20, %v3740_v25 }
0x1158   : > { %v5411_v29 = vadd.f32 %v3740_v25, %v2928_v11  ;;  %2961 = vrot.lane.b32.xlu0 %v2941_v23, %s4488_s9 }
0x1159   : > { %v2944_v43 = vmul.f32 %v5414_v54, %v5414_v54 }
0x115a   : > { %v2943_v10 = vmul.f32 %v5411_v29, %v5411_v29 }
0x115c   : > { %2965 = vrot.lane.b32.xlu1 %v2943_v10, %s4488_s9  ;;  %2959 = vrot.lane.b32.xlu0 %v2940_v35, %s4488_s9 }
0x1160   : > { %2967 = vrot.lane.b32.xlu1 %v2944_v43, %s4488_s9 }
0x11c1   : > { %v2956_v21 = vpop.permute.xlu1 %2955 }
0x11c2   : > { %v2954_v0 = vpop.permute.xlu0 %2953  ;;  %v2978_v15 = vsel %vm502_vm1, %v5385_v24, %v2956_v21 }
0x11c3   : > { %v2977_v25 = vsel %vm502_vm1, %v5387_v59, %v2954_v0  ;;  %v2986_v60 = vsel %vm1153_vm6, %v2978_v15, 0.0 }
0x11c4   : > { %v2985_v63 = vsel %vm1153_vm6, %v2977_v25, 0.0 }
0x11c5   : > { %v2987_v62 = vadd.f32 %v2986_v60, %v2985_v63 }
0x11c6   : > { %v2958_v55 = vpop.permute.xlu0 %2957 }
0x11c7   : > { %v2979_v30 = vsel %vm502_vm1, %v5394_v17, %v2958_v55 }
0x11c8   : > { %v2988_v8 = vsel %vm1153_vm6, %v2979_v30, 0.0 }
0x11c9   : > { %v2964_v44 = vpop.permute.xlu1 %2963  ;;  %v2989_v10 = vadd.f32 %v2988_v8, %v2987_v62 }
0x11ca   : > { %v2962_v2 = vpop.permute.xlu0 %2961  ;;  %v2982_v18 = vsel %vm502_vm1, %v5399_v1, %v2964_v44 }
0x11cb   : > { %v2981_v6 = vsel %vm502_vm1, %v5401_v56, %v2962_v2  ;;  %v2999_v61 = vsel %vm1153_vm6, %v2982_v18, 0.0 }
0x11cc   : > { %v2998_v20 = vsel %vm1153_vm6, %v2981_v6, 0.0 }
0x11cd   : > { %v3000_v55 = vadd.f32 %v2999_v61, %v2998_v20 }
0x11ce   : > { %v2966_v23 = vpop.permute.xlu1 %2965  ;;  %v2960_v11 = vpop.permute.xlu0 %2959 }
0x11cf   : > { %v2983_v35 = vsel %vm502_vm1, %v5411_v29, %v2966_v23  ;;  %v2980_v43 = vsel %vm502_vm1, %v5406_v42, %v2960_v11 }
0x11d0   : > { %v3001_v0 = vsel %vm1153_vm6, %v2983_v35, 0.0  ;;  %v2990_v21 = vsel %vm1153_vm6, %v2980_v43, 0.0 }
0x11d1   : > { %v2991_v15 = vadd.f32 %v2990_v21, %v2989_v10  ;;  %v3002_v30 = vadd.f32 %v3001_v0, %v3000_v55 }
0x11d2   : > { %v2968_v25 = vpop.permute.xlu1 %2967 }
0x11d3   : > { %v2992_v44 = vrot.slane %v2991_v15, 4  ;;  %v2984_v60 = vsel %vm502_vm1, %v5414_v54, %v2968_v25 }
0x11d4   : > { %v3003_v63 = vsel %vm1153_vm6, %v2984_v60, 0.0 }
0x11d5   : > { %v2993_v2 = vadd.f32 %v2992_v44, %v2991_v15  ;;  %v3004_v18 = vadd.f32 %v3003_v63, %v3002_v30 }
0x11d7   : > { %v2994_v6 = vrot.slane %v2993_v2, 2  ;;  %v3005_v8 = vrot.slane %v3004_v18, 4 }
0x11d9   : > { %v2995_v62 = vadd.f32 %v2994_v6, %v2993_v2  ;;  %v3006_v23 = vadd.f32 %v3005_v8, %v3004_v18 }
0x11db   : > { %v2996_v11 = vrot.slane %v2995_v62, 1  ;;  %v3007_v35 = vrot.slane %v3006_v23, 2 }
0x11dd   : > { %v2997_v53 = vadd.f32 %v2996_v11, %v2995_v62  ;;  %v3008_v43 = vadd.f32 %v3007_v35, %v3006_v23  ;;  %v334_v23 = vld [vmem:[%s300_s18] sm:$0x3]  ;;  %v4490_v11 = vmov -inf  }
0x11de   : > { %vm336_vm7 = vcmp.gt.f32.partialorder %v334_v23, 0.5 }
0x11df   : > { %v5449_v61 = vmul.f32 0.03125, %v2997_v53  ;;  %v3009_v20 = vrot.slane %v3008_v43, 1  ;;  %v338_v35 = vsel %vm336_vm7, 0.0, %v4490_v11 }
0x11e0   : > { %v3180_v34 = vrot.slane %v338_v35, %v4816_v7 }
0x11e1   : > { %v3010_v10 = vadd.f32 %v3009_v20, %v3008_v43  ;;  %v3013_v0 = vmul.f32 %v5449_v61, %v5449_v61  ;;  %v335_v43 = vld [vmem:[%s300_s18 + $0x2] sm:$0x3]  ;;  %v3032_v40 = vsub.f32 %v5385_v24, %v5449_v61  ;;  %v3034_v45 = vsub.f32 %v5406_v42, %v5449_v61  ;;  %v5521_v24 = vld [vmem:[%s5796_s5 + $0x13] ss:$0 sm:$0xff]  ;;  %s4427_s18 = sshll.u32 %s4495_s10, 4  ;;  %s4428_s18 = int_to_ptr.vmem [resolvable:$false] %s4427_s18 }
0x11e2   : > { %vm337_vm8 = vcmp.gt.f32.partialorder %v335_v43, 0.5  ;;  %s4429_s13 = scalar_lea.vmem %s4428_s18, 128 }
0x11e3   : > { %v5453_v21 = vmul.f32 0.03125, %v3010_v10  ;;  %3017 = vrot.lane.b32.xlu0 %v3013_v0, %s4488_s9 }
0x11e5   : > { %v3014_v55 = vmul.f32 %v5453_v21, %v5453_v21  ;;  %v3036_v42 = vsub.f32 %v5399_v1, %v5453_v21  ;;  %v3037_v1 = vsub.f32 %v5411_v29, %v5453_v21 }
0x11e7   : > { %3019 = vrot.lane.b32.xlu1 %v3014_v55, %s4488_s9 }
0x1255   : > { %v3018_v15 = vpop.permute.xlu0 %3017 }
0x1256   : > { %v3023_v25 = vsub.f32 %v5449_v61, %v3018_v15 }
0x1258   : > { %v3025_v53 = vmax.f32 %v3023_v25, 0.0 }
0x1259   : > { %v3020_v30 = vpop.permute.xlu1 %3019 }
0x125a   : > { %v3027_v44 = vadd.f32 1e-05, %v3025_v53  ;;  %v3024_v60 = vsub.f32 %v5453_v21, %v3020_v30 }
0x125c   : > { %4419 = vrsqrt.f32 %v3027_v44  ;;  %v3026_v63 = vmax.f32 %v3024_v60, 0.0 }
0x125e   : > { %v3028_v2 = vadd.f32 1e-05, %v3026_v63 }
0x1260   : > { %4421 = vrsqrt.f32 %v3028_v2 }
0x1266   : > { %v4420_v18 = vpop.eup %4419 }
0x1267   : > { %v3042_v6 = vrot.slane %v4420_v18, %v4816_v7 }
0x1269   : > { %3049 = vrot.lane.b32.xlu0 %v3042_v6, %s4489_s19 }
0x126a   : > { %v4422_v8 = vpop.eup %4421 }
0x126b   : > { %v3046_v62 = vrot.slane %v4422_v8, %v4816_v7 }
0x126d   : > { %3051 = vrot.lane.b32.xlu1 %v3046_v62, %s4489_s19  ;;  %3105 = vrot.lane.b32.xlu0 %v2323_v39, %s4488_s9  ;;  %v3199_v39 = vrot.slane %v338_v35, %v3198_v32  ;;  %s279_s19 = sand.u32 1, %s4477_s22  }
0x126e   : > { %s3626_s11 = sshll.u32 %s279_s19, 2  ;;  %s5748_s25 = scalar_lea.sflag [#allocation3], %s279_s19 }
0x126f   : > { %s281_s17 = scalar_lea.vmem [#allocation2], %s3626_s11 }
0x1270   : > { %s3536_s20 = sshll.u32 %s281_s17, 4  ;;  %s5743_s20 = int_to_ptr.vmem [resolvable:$true] %s3536_s20 }
0x1271   : > { %3107 = vrot.lane.b32.xlu1 %v2324_v3, %s4488_s9  ;;  %3113 = vrot.lane.b32.xlu0 %v2327_v37, %s4488_s9  ;;  %v339_v3 = vsel %vm337_vm8, 0.0, %v4490_v11  ;;  %p4430_p0 = scmp.lt.s32.totalorder %s5743_s20, %s4428_s18 }
0x1272   : > { %v5487_v26 = vrot.slane %v339_v3, %v4816_v7  ;;  %v5494_v19 = vrot.slane %v339_v3, %v3198_v32  ;;  %v3031_v7 = vsub.f32 %v5387_v59, %v5449_v61 }
0x1275   : > { %3115 = vrot.lane.b32.xlu1 %v2328_v33, %s4488_s9  ;;  %3109 = vrot.lane.b32.xlu0 %v2325_v4, %s4488_s9  ;;  %v3033_v4 = vsub.f32 %v5394_v17, %v5449_v61 }
0x1279   : > { %3182 = vbcast.lane.b32.xlu1 %v3180_v34, 256  ;;  %3186 = vbcast.lane.b32.xlu0 %v3180_v34, 264 }
0x127d   : > { %3201 = vbcast.lane.b32.xlu1 %v3199_v39, 256  ;;  %3205 = vbcast.lane.b32.xlu0 %v3199_v39, 264 }
0x1281   : > { %3117 = vrot.lane.b32.xlu1 %v2329_v22, %s4488_s9  ;;  %3224 = vbcast.lane.b32.xlu0 %v5487_v26, 264 }
0x1285   : > { %3220 = vbcast.lane.b32.xlu1 %v5487_v26, 256  ;;  %3209 = vbcast.lane.b32.xlu0 %v3199_v39, 272 }
0x1289   : > { %3111 = vrot.lane.b32.xlu1 %v2326_v36, %s4488_s9  ;;  %3243 = vbcast.lane.b32.xlu0 %v5494_v19, 264 }
0x128d   : > { %3190 = vbcast.lane.b32.xlu1 %v3180_v34, 272  ;;  %3213 = vbcast.lane.b32.xlu0 %v3199_v39, 280 }
0x1291   : > { %3239 = vbcast.lane.b32.xlu1 %v5494_v19, 256 }
0x1295   : > { %3119 = vrot.lane.b32.xlu1 %v2330_v12, %s4488_s9  ;;  %v3035_v12 = vsub.f32 %v5401_v56, %v5453_v21 }
0x1299   : > { %3228 = vbcast.lane.b32.xlu1 %v5487_v26, 272 }
0x129d   : > { %3194 = vbcast.lane.b32.xlu1 %v3180_v34, 280  ;;  %v3038_v34 = vsub.f32 %v5414_v54, %v5453_v21  ;;  %v3375_v54 = vld [vmem:[%s5795_s4 + $0x28] sm:$0xff] }
0x12db   : > { %v3050_v36 = vpop.permute.xlu0 %3049 }
0x12dc   : > { %v3055_v16 = vmul.f32 %v3050_v36, %v3031_v7  ;;  %v3056_v37 = vmul.f32 %v3050_v36, %v3032_v40  ;;  %v3057_v33 = vmul.f32 %v3050_v36, %v3033_v4  ;;  %v3058_v22 = vmul.f32 %v3050_v36, %v3034_v45  ;;  %v3374_v4 = vld [vmem:[%s5795_s4 + $0x20] sm:$0xff] }
0x12dd   : > { %v4332_v45 = vpack.c.bf16 %v3375_v54, %v3374_v4 }
0x12de   : > { %v3069_v59 = vmul.f32 %v3749_v28, %v3056_v37  ;;  %v3068_v17 = vmul.f32 %v3749_v28, %v3055_v16  ;;  %v3070_v0 = vmul.f32 %v3749_v28, %v3057_v33  ;;  %v3071_v25 = vmul.f32 %v3749_v28, %v3058_v22 }
0x12df   : > { %v3052_v20 = vpop.permute.xlu1 %3051  ;;  %v5523_v10 = vpop.permute.xlu0 %3105  ;;  %v4492_v37 = vmov 0.0|0.0  }
0x12e0   : > { %v3059_v55 = vmul.f32 %v3052_v20, %v3035_v12  ;;  %v3082_v61 = vadd.f32 %v5521_v24, %v3069_v59  ;;  %v3081_v15 = vadd.f32 %v5521_v24, %v3068_v17  ;;  %v3060_v53 = vmul.f32 %v3052_v20, %v3036_v42  ;;  %4331 = vmatprep.subr.bf16.mxu0 %v4492_v37 }
0x12e1   : > { %v3083_v2 = vadd.f32 %v5521_v24, %v3070_v0  ;;  %v3061_v8 = vmul.f32 %v3052_v20, %v3037_v1  ;;  %v3084_v35 = vadd.f32 %v5521_v24, %v3071_v25  ;;  %v3062_v29 = vmul.f32 %v3052_v20, %v3038_v34  ;;  %4333 = vmatpush3.bf16.msra.mxu0 %v4332_v45  ;;  %v3376_v20 = vld [vmem:[%s5795_s4 + $0x30] sm:$0xff]  ;;  %v3377_v0 = vld [vmem:[%s5795_s4 + $0x38] sm:$0xff] }
0x12e2   : > { %v3072_v56 = vmul.f32 %v3749_v28, %v3059_v55  ;;  %v3090_v60 = vmax.f32 %v3082_v61, 0.0  ;;  %v3089_v63 = vmax.f32 %v3081_v15, 0.0  ;;  %v3073_v43 = vmul.f32 %v3749_v28, %v3060_v53  ;;  %4334 = vmatprep.subr.bf16.mxu0 %v4492_v37 }
0x12e3   : > { %v5529_v30 = vpop.permute.xlu1 %3107  ;;  %v5531_v44 = vpop.permute.xlu0 %3113  ;;  %v3091_v11 = vmax.f32 %v3083_v2, 0.0  ;;  %v3074_v32 = vmul.f32 %v3749_v28, %v3061_v8  ;;  %v3092_v7 = vmax.f32 %v3084_v35, 0.0  ;;  %v3075_v33 = vmul.f32 %v3749_v28, %v3062_v29 }
0x12e4   : > { %v3085_v18 = vadd.f32 %v5521_v24, %v3072_v56  ;;  %3139 = vrot.lane.b32.xlu1 %v3090_v60, %s4491_s14  ;;  %3137 = vrot.lane.b32.xlu0 %v3089_v63, %s4491_s14  ;;  %v3086_v40 = vadd.f32 %v5521_v24, %v3073_v43  ;;  %v4335_v42 = vpack.c.bf16 %v3377_v0, %v3376_v20 }
0x12e5   : > { %v3087_v17 = vadd.f32 %v5521_v24, %v3074_v32  ;;  %v3088_v53 = vadd.f32 %v5521_v24, %v3075_v33  ;;  %v3380_v24 = vld [vmem:[%s5795_s4 + $0x50] sm:$0xff]  ;;  %v3382_v32 = vld [vmem:[%s5795_s4 + $0x60] sm:$0xff] }
0x12e6   : > { %v3093_v6 = vmax.f32 %v3085_v18, 0.0  ;;  %v3094_v59 = vmax.f32 %v3086_v40, 0.0  ;;  %4336 = vmatpush3.bf16.msra.mxu0 %v4335_v42  ;;  %v3381_v18 = vld [vmem:[%s5795_s4 + $0x58] sm:$0xff] }
0x12e7   : > { %v5539_v62 = vpop.permute.xlu1 %3115  ;;  %v5541_v23 = vpop.permute.xlu0 %3109  ;;  %v3095_v25 = vmax.f32 %v3087_v17, 0.0  ;;  %4337 = vmatprep.subr.bf16.mxu0 %v4492_v37  ;;  %v3096_v2 = vmax.f32 %v3088_v53, 0.0  ;;  %v5809_v17 = vmov 0.0  }
0x12e8   : > { %3145 = vrot.lane.b32.xlu1 %v3093_v6, %s4491_s14  ;;  %3141 = vrot.lane.b32.xlu0 %v3091_v11, %s4491_s14  ;;  %v4341_v11 = vpack.c.bf16 %v3381_v18, %v3380_v24 }
0x12e9   : > { %4212 = vmatprep.mubr.msk.f32.mxu0 %vm4493_vm9, %v5809_v17 }
0x12eb   : > { %v5548_v39 = vpop.permute.xlu1 %3182  ;;  %v5550_v3 = vpop.permute.xlu0 %3186 }
0x12ec   : > { %v5561_v21 = vadd.f32 %v5548_v39, %v4710_v47  ;;  %v5565_v36 = vadd.f32 %v4708_v46, %v5550_v3  ;;  %3247 = vbcast.lane.b32.xlu1 %v5494_v19, 272  ;;  %3143 = vrot.lane.b32.xlu0 %v3092_v7, %s4491_s14  ;;  %v3383_v7 = vld [vmem:[%s5795_s4 + $0x68] sm:$0xff] }
0x12ed   : > { %v4344_v40 = vpack.c.bf16 %v3383_v7, %v3382_v32  ;;  %v5813_v7 = vmax.f32 %v4935_v41, 0.0 }
0x12ee   : > { %v3285_v16 = vmax.f32 %v5561_v21, %v5565_v36  ;;  %v3384_v21 = vld [vmem:[%s5795_s4 + $0x70] sm:$0xff]  ;;  %v3385_v36 = vld [vmem:[%s5795_s4 + $0x78] sm:$0xff] }
0x12ef   : > { %v5571_v22 = vpop.permute.xlu1 %3201  ;;  %v5573_v12 = vpop.permute.xlu0 %3205 }
0x12f0   : > { %v3261_v55 = vadd.f32 %v5571_v22, %v4710_v47  ;;  %v3263_v28 = vadd.f32 %v4708_v46, %v5573_v12  ;;  %3251 = vbcast.lane.b32.xlu1 %v5494_v19, 280  ;;  %3147 = vrot.lane.b32.xlu0 %v3094_v59, %s4491_s14  ;;  %v3378_v47 = vld [vmem:[%s5795_s4 + $0x40] sm:$0xff]  ;;  %v3379_v46 = vld [vmem:[%s5795_s4 + $0x48] sm:$0xff]  ;;  %v4347_v59 = vpack.c.bf16 %v3385_v36, %v3384_v21 }
0x12f1   : > { %v4338_v19 = vpack.c.bf16 %v3379_v46, %v3378_v47  ;;  %v5811_v46 = vmax.f32 %v4931_v27, 0.0 }
0x12f2   : > { %v3308_v61 = vmax.f32 %v3261_v55, %v3263_v28 }
0x12f3   : > { %v5588_v15 = vpop.permute.xlu1 %3117  ;;  %v5590_v56 = vpop.permute.xlu0 %3224  ;;  %4339 = vmatpush3.bf16.msra.mxu0 %v4338_v19  ;;  %v3162_v19 = vsel %vm502_vm1, %v5811_v46, %v5529_v30 }
0x12f4   : > { %3149 = vrot.lane.b32.xlu0 %v3095_v25, %s4491_s14  ;;  %v3271_v1 = vadd.f32 %v4716_v51, %v5590_v56  ;;  %4340 = vmatprep.subr.bf16.mxu0 %v4492_v37 }
0x12f7   : > { %v5600_v60 = vpop.permute.xlu1 %3220  ;;  %v3210_v63 = vpop.permute.xlu0 %3209  ;;  %4342 = vmatpush3.bf16.msra.mxu0 %v4341_v11 }
0x12f8   : > { %v3269_v6 = vadd.f32 %v5600_v60, %v4718_v52  ;;  %v3265_v8 = vadd.f32 %v3210_v63, %v4714_v50  ;;  %3151 = vrot.lane.b32.xlu0 %v3096_v2, %s4491_s14  ;;  %4343 = vmatprep.subr.bf16.mxu0 %v4492_v37  ;;  %s4423_s14 = scalar_lea.vmem %s5743_s20, 64 }
0x12f9   : > { %p4424_p11 = scmp.ne.s32.totalorder %s5743_s20, %s4423_s14  ;;  %p4431_p1 = scmp.lt.s32.totalorder %s4429_s13, %s4423_s14 }
0x12fa   : > { %v3330_v35 = vmax.f32 %v3269_v6, %v3271_v1  ;;  %v3309_v43 = vmax.f32 %v3308_v61, %v3265_v8 }
0x12fb   : > { %v3112_v34 = vpop.permute.xlu1 %3111  ;;  %v5614_v29 = vpop.permute.xlu0 %3243  ;;  %4345 = vmatpush3.bf16.msra.mxu0 %v4344_v40  ;;  %p4425_p12 = pnand %p4424_p11, %p4570_p5  ;;  %p4432_p2 = por %p4431_p1, %p4430_p0 }
0x12fc   : > { %3232 = vbcast.lane.b32.xlu0 %v5487_v26, 280  ;;  %4346 = vmatprep.subr.bf16.mxu0 %v4492_v37  ;;  %v3279_v55 = vadd.f32 %v4716_v51, %v5614_v29  ;;  %v5810_v51 = vmax.f32 %v4929_v31, 0.0 }
0x12fd   : > { %p4426_p13 = pneg %p4425_p12 }
0x12ff   : > { %v3191_v4 = vpop.permute.xlu1 %3190  ;;  %v3214_v54 = vpop.permute.xlu0 %3213  ;;  %4348 = vmatpush3.bf16.msra.mxu0 %v4347_v59  ;;  %p4433_p3 = pnand %p4432_p2, %p4426_p13 }
0x1300   : > { %v3257_v45 = vadd.f32 %v3191_v4, %v4714_v50  ;;  %v3267_v33 = vadd.f32 %v4712_v48, %v3214_v54 }
0x1302   : > { %v3286_v26 = vmax.f32 %v3285_v16, %v3257_v45  ;;  %v5632_v20 = vmax.f32 %v3309_v43, %v3267_v33 }
0x1303   : > { %v5634_v0 = vpop.permute.xlu1 %3239 }
0x1304   : > { %v3277_v28 = vadd.f32 %v5634_v0, %v4718_v52  ;;  %v3161_v52 = vsel %vm502_vm1, %v5810_v51, %v5523_v10  ;;  %v5812_v10 = vmax.f32 %v4933_v38, 0.0  ;;  %v3164_v38 = vsel %vm502_vm1, %v5813_v7, %v3112_v34 }
0x1306   : > { %v3352_v50 = vmax.f32 %v3277_v28, %v3279_v55  ;;  %v3163_v27 = vsel %vm502_vm1, %v5812_v10, %v5541_v23 }
0x1307   : > { %v5640_v42 = vpop.permute.xlu1 %3119 }
0x130b   : > { %v5642_v37 = vpop.permute.xlu1 %3228 }
0x130c   : > { %v3273_v61 = vadd.f32 %v5642_v37, %v4724_v58 }
0x130e   : > { %v5646_v16 = vmax.f32 %v3330_v35, %v3273_v61 }
0x130f   : > { %v3195_v25 = vpop.permute.xlu1 %3194 }
0x1310   : > { %v3259_v53 = vadd.f32 %v4712_v48, %v3195_v25 }
0x1312   : > { %v5649_v47 = vmax.f32 %v3286_v26, %v3259_v53  ;;  %v5814_v26 = vmax.f32 %v4961_v9, 0.0 }
0x1314   : > { %v3166_v41 = vsel %vm502_vm1, %v5814_v26, %v5539_v62 }
0x1356   : > { %v3140_v2 = vpop.permute.xlu1 %3139  ;;  %v3138_v24 = vpop.permute.xlu0 %3137 }
0x1357   : > { %v3170_v18 = vsel %vm1153_vm6, %v3162_v19, %v3140_v2  ;;  %v3169_v1 = vsel %vm1153_vm6, %v3161_v52, %v3138_v24  ;;  %v5815_v52 = vmax.f32 %v4959_v5, 0.0 }
0x1358   : > { %v3256_v48 = vadd.f32 %v5550_v3, %v3170_v18  ;;  %v3264_v6 = vadd.f32 %v5573_v12, %v3170_v18  ;;  %v3254_v8 = vadd.f32 %v5548_v39, %v3169_v1  ;;  %v3262_v31 = vadd.f32 %v5571_v22, %v3169_v1 }
0x1359   : > { %v5816_v18 = vmax.f32 %v4963_v13, 0.0  ;;  %v5817_v13 = vmax.f32 %v4965_v14, 0.0 }
0x135a   : > { %v3146_v30 = vpop.permute.xlu1 %3145  ;;  %v3142_v11 = vpop.permute.xlu0 %3141  ;;  %v3296_v3 = vsel %vm3294_vm10, %v3256_v48, -inf  ;;  %v3318_v12 = vsel %vm3294_vm10, %v3264_v6, -inf  ;;  %v3295_v39 = vsel %vm3294_vm10, %v3254_v8, -inf  ;;  %v3317_v22 = vsel %vm3294_vm10, %v3262_v31, -inf }
0x135b   : > { %v3171_v35 = vsel %vm1153_vm6, %v3163_v27, %v3142_v11  ;;  %v3297_v45 = vmax.f32 %v3295_v39, %v3296_v3  ;;  %v3319_v33 = vmax.f32 %v3317_v22, %v3318_v12  ;;  %v3167_v5 = vsel %vm502_vm1, %v5816_v18, %v5588_v15 }
0x135c   : > { %v3258_v43 = vadd.f32 %v3191_v4, %v3171_v35  ;;  %v3266_v32 = vadd.f32 %v3210_v63, %v3171_v35  ;;  %v3168_v15 = vsel %vm502_vm1, %v5817_v13, %v5640_v42 }
0x135e   : > { %v3248_v23 = vpop.permute.xlu1 %3247  ;;  %v3144_v40 = vpop.permute.xlu0 %3143  ;;  %v3298_v21 = vsel %vm3294_vm10, %v3258_v43, -inf  ;;  %v3320_v36 = vsel %vm3294_vm10, %v3266_v32, -inf }
0x135f   : > { %v3281_v63 = vadd.f32 %v3248_v23, %v4724_v58  ;;  %v3172_v4 = vsel %vm1153_vm6, %v3164_v38, %v3144_v40  ;;  %v3299_v55 = vmax.f32 %v3297_v45, %v3298_v21  ;;  %v3321_v28 = vmax.f32 %v3319_v33, %v3320_v36 }
0x1360   : > { %v3260_v59 = vadd.f32 %v3195_v25, %v3172_v4  ;;  %v3268_v17 = vadd.f32 %v3214_v54, %v3172_v4  ;;  %v3165_v25 = vsel %vm502_vm1, %v5815_v52, %v5531_v44 }
0x1361   : > { %v3353_v34 = vmax.f32 %v3352_v50, %v3281_v63  ;;  %v3173_v62 = vsel %vm1153_vm6, %v3165_v25, %v3146_v30 }
0x1362   : > { %v3300_v61 = vsel %vm3294_vm10, %v3260_v59, -inf  ;;  %v3322_v53 = vsel %vm3294_vm10, %v3268_v17, -inf  ;;  %v3252_v51 = vpop.permute.xlu1 %3251  ;;  %v3148_v58 = vpop.permute.xlu0 %3147  ;;  %v3278_v44 = vadd.f32 %v5634_v0, %v3173_v62  ;;  %v3270_v31 = vadd.f32 %v5600_v60, %v3173_v62 }
0x1363   : > { %v3283_v54 = vadd.f32 %v4721_v57, %v3252_v51  ;;  %v3174_v9 = vsel %vm1153_vm6, %v3166_v41, %v3148_v58  ;;  %v3301_v50 = vmax.f32 %v3299_v55, %v3300_v61  ;;  %v3323_v46 = vmax.f32 %v3321_v28, %v3322_v53 }
0x1364   : > { %v3280_v2 = vadd.f32 %v5614_v29, %v3174_v9  ;;  %v3272_v1 = vadd.f32 %v5590_v56, %v3174_v9  ;;  %v3361_v0 = vsel %vm3294_vm10, %v3278_v44, -inf }
0x1365   : > { %v5694_v19 = vmax.f32 %v3353_v34, %v3283_v54  ;;  %v3302_v48 = vrot.slane %v3301_v50, 4  ;;  %v3324_v6 = vrot.slane %v3323_v46, 4 }
0x1366   : > { %v3150_v24 = vpop.permute.xlu0 %3149  ;;  %v3362_v10 = vsel %vm3294_vm10, %v3280_v2, -inf  ;;  %v3340_v56 = vsel %vm3294_vm10, %v3272_v1, -inf  ;;  %v3288_v2 = vrot.slane %v5649_v47, 4 }
0x1367   : > { %v3175_v8 = vsel %vm1153_vm6, %v3167_v5, %v3150_v24  ;;  %v3303_v11 = vmax.f32 %v3301_v50, %v3302_v48  ;;  %v3325_v35 = vmax.f32 %v3323_v46, %v3324_v6  ;;  %v3363_v32 = vmax.f32 %v3361_v0, %v3362_v10 }
0x1368   : > { %v3274_v29 = vadd.f32 %v5642_v37, %v3175_v8  ;;  %v3282_v27 = vadd.f32 %v3248_v23, %v3175_v8  ;;  %v3339_v37 = vsel %vm3294_vm10, %v3270_v31, -inf  ;;  %v3311_v24 = vrot.slane %v5632_v20, 4 }
0x1369   : > { %v3341_v14 = vmax.f32 %v3339_v37, %v3340_v56  ;;  %v3304_v7 = vrot.slane %v3303_v11, 2  ;;  %v3326_v38 = vrot.slane %v3325_v35, 2  ;;  %v3289_v5 = vmax.f32 %v5649_v47, %v3288_v2 }
0x136a   : > { %v3152_v30 = vpop.permute.xlu0 %3151  ;;  %v3364_v43 = vsel %vm3294_vm10, %v3282_v27, -inf  ;;  %v3342_v3 = vsel %vm3294_vm10, %v3274_v29, -inf  ;;  %v3355_v44 = vrot.slane %v5694_v19, 4  ;;  %v3312_v1 = vmax.f32 %v5632_v20, %v3311_v24 }
0x136b   : > { %v3176_v60 = vsel %vm1153_vm6, %v3168_v15, %v3152_v30  ;;  %v3365_v22 = vmax.f32 %v3363_v32, %v3364_v43  ;;  %v3343_v21 = vmax.f32 %v3341_v14, %v3342_v3  ;;  %v3305_v59 = vmax.f32 %v3303_v11, %v3304_v7 }
0x136c   : > { %v3284_v12 = vadd.f32 %v3252_v51, %v3176_v60  ;;  %v3327_v17 = vmax.f32 %v3325_v35, %v3326_v38  ;;  %v4494_v6 = vmov 1983009808   ;;  %v3290_v31 = vrot.slane %v3289_v5, 2 }
0x136d   : > { %v3471_v8 = vunpack.c.l.s4 %v4494_v6  ;;  %v3356_v10 = vmax.f32 %v5694_v19, %v3355_v44  ;;  %v3313_v29 = vrot.slane %v3312_v1, 2 }
0x136e   : > { %v3233_v39 = vpop.permute.xlu0 %3232  ;;  %v3366_v23 = vsel %vm3294_vm10, %v3284_v12, -inf  ;;  %v3328_v28 = vrot.slane %v3327_v17, 1  ;;  %v3291_v13 = vmax.f32 %v3289_v5, %v3290_v31 }
0x136f   : > { %v3275_v42 = vadd.f32 %v4721_v57, %v3233_v39  ;;  %v3276_v40 = vadd.f32 %v3233_v39, %v3176_v60  ;;  %v3367_v36 = vmax.f32 %v3365_v22, %v3366_v23  ;;  %v3306_v57 = vrot.slane %v3305_v59, 1 }
0x1370   : > { %v3329_v52 = vmax.f32 %v3327_v17, %v3328_v28  ;;  %v3472_v30 = vunpack.c.0.s8 %v3471_v8  ;;  %v3357_v15 = vrot.slane %v3356_v10, 2  ;;  %v3314_v0 = vmax.f32 %v3312_v1, %v3313_v29 }
0x1371   : > { %v3332_v63 = vmax.f32 %v5646_v16, %v3275_v42  ;;  %v3344_v4 = vsel %vm3294_vm10, %v3276_v40, -inf  ;;  %v3368_v45 = vrot.slane %v3367_v36, 4  ;;  %v3307_v58 = vmax.f32 %v3305_v59, %v3306_v57 }
0x1372   : > { %v3345_v33 = vmax.f32 %v3343_v21, %v3344_v4  ;;  %v3475_v47 = vsub.s32 %v3472_v30, %v4638_v49  ;;  %v3358_v11 = vmax.f32 %v3356_v10, %v3357_v15  ;;  %v3292_v35 = vrot.slane %v3291_v13, 1 }
0x1373   : > { %v3369_v26 = vmax.f32 %v3367_v36, %v3368_v45  ;;  %v3392_v62 = vsel %vm3391_vm11, %v3329_v52, %v3307_v58  ;;  %v3333_v18 = vrot.slane %v3332_v63, 4  ;;  %v3315_v20 = vrot.slane %v3314_v0, 1  ;;  %v3752_v36 = vld [vmem:[%s5795_s4 + $0x80] ss:$0 sm:$0xff] }
0x1374   : > { %v3346_v41 = vrot.slane %v3345_v33, 4  ;;  %v3359_v19 = vrot.slane %v3358_v11, 1  ;;  %v3293_v3 = vmax.f32 %v3291_v13, %v3292_v35 }
0x1375   : > { %v3370_v34 = vrot.slane %v3369_v26, 2  ;;  %v3334_v48 = vmax.f32 %v3332_v63, %v3333_v18  ;;  %v3316_v14 = vmax.f32 %v3314_v0, %v3315_v20 }
0x1376   : > { %v3347_v55 = vmax.f32 %v3345_v33, %v3346_v41  ;;  %v3360_v49 = vmax.f32 %v3358_v11, %v3359_v19 }
0x1377   : > { %v3371_v61 = vmax.f32 %v3369_v26, %v3370_v34  ;;  %v3335_v27 = vrot.slane %v3334_v48, 2 }
0x1378   : > { %v3348_v53 = vrot.slane %v3347_v55, 2 }
0x1379   : > { %v3372_v25 = vrot.slane %v3371_v61, 1  ;;  %v3336_v56 = vmax.f32 %v3334_v48, %v3335_v27 }
0x137a   : > { %v3349_v51 = vmax.f32 %v3347_v55, %v3348_v53 }
0x137b   : > { %v3373_v9 = vmax.f32 %v3371_v61, %v3372_v25  ;;  %v3337_v60 = vrot.slane %v3336_v56, 1 }
0x137c   : > { %v3350_v54 = vrot.slane %v3349_v51, 1 }
0x137d   : > { %v3338_v22 = vmax.f32 %v3336_v56, %v3337_v60 }
0x137e   : > { %v3351_v16 = vmax.f32 %v3349_v51, %v3350_v54 }
0x1380   : > { %v3394_v50 = vsel %vm3393_vm12, %v3351_v16, %v3392_v62 }
0x1381   : > { %v3396_v46 = vsel %vm3395_vm13, %v3373_v9, %v3394_v50 }
0x1382   : > { %4213 = vmatmul.mubr.msk.f32.vlgmr.msra.gmra.mrb[44].mxu0 %vm3294_vm10, %v3396_v46 }
0x1455   : > { %v3465_v43 = vpop.f32.mrb[44].mxu0 }
0x1456   : > { %v3476_v32 = vrot.slane %v3465_v43, %v3475_v47  ;;  %v4214_v37 = vpop.f32.mrb[45].mxu0 }
0x1458   : > { %v3477_v12 = vcombine.high %v3476_v32, %v3476_v32  ;;  %v3484_v39 = vrot.slane %v3476_v32, %v3475_v47 }
0x145a   : > { %v3491_v42 = vrot.slane %v3477_v12, %v3475_v47  ;;  %v3492_v7 = vrot.slane %v3484_v39, 1  ;;  %v3498_v38 = vadd.f32 %v3484_v39, %v3293_v3 }
0x145c   : > { %v3493_v23 = vrot.slane %v3491_v42, 1  ;;  %v3499_v40 = vadd.f32 %v3492_v7, %v3316_v14  ;;  %v3500_v21 = vadd.f32 %v3491_v42, %v3338_v22  ;;  %v3506_v45 = vadd.f32 %v3752_v36, %v3498_v38 }
0x145e   : > { %v3501_v63 = vadd.f32 %v3493_v23, %v3360_v49  ;;  %v3507_v4 = vadd.f32 %v3752_v36, %v3499_v40  ;;  %v3508_v17 = vadd.f32 %v3752_v36, %v3500_v21 }
0x1460   : > { %v3509_v33 = vadd.f32 %v3752_v36, %v3501_v63  ;;  %v3514_v59 = vrot.slane %v3507_v4, 7 }
0x1462   : > { %v3515_v26 = vsel %vm3391_vm11, %v3514_v59, %v3506_v45  ;;  %v3516_v41 = vrot.slane %v3509_v33, 7 }
0x1463   : > { %3520 = vst [vmem:[%s281_s17] sm:$0x3] %v3515_v26 }
0x1464   : > { %v3517_v34 = vsel %vm3391_vm11, %v3516_v41, %v3508_v17 }
0x1465   : > { %3521 = vst [vmem:[%s281_s17 + $0x2] sm:$0x3] %v3517_v34 }
0x1466   : > { %4436 = shalt.err (!%p4433_p3)
}
0x1467   : > { %s4437_s19 = scalar_lea.hbm %s5741_s29, 64  ;;  %s4441_s15 = scalar_lea.hbm %s5797_s6, 128 }
0x1468   : > { %p4438_p4 = scmp.ne.s32.totalorder %s5741_s29, %s4437_s19  ;;  %p4442_p9 = scmp.lt.u32.totalorder %s5741_s29, %s5797_s6 }
0x1469   : > { %p4443_p10 = scmp.lt.u32.totalorder %s4441_s15, %s4437_s19  ;;  %p4445_p12 = scmp.lt.u32.totalorder %s4437_s19, %s5741_s29 }
0x146a   : > { %p4439_p7 = pnand %p4438_p4, %p4570_p5 }
0x146b   : > { %p4444_p11 = por %p4443_p10, %p4442_p9 }
0x146c   : > { %p4440_p8 = pneg %p4439_p7 }
0x146d   : > { %p4446_p13 = por %p4445_p12, %p4444_p11 }
0x146f   : > { %p4447_p0 = pnand %p4446_p13, %p4440_p8 }
0x1471   : > { %4450 = shalt.err (!%p4447_p0)
}
0x1472   : > { %s4496_s26 = smov 2  }
0x1473   : > { %4351 = dma.vmem_to_hbm [thread:$0]  (%p4570_p5), %s5743_s20, 64, %s5741_s29, %s5748_s25, %s4488_s9, %s4488_s9, %s4496_s26  }
0x1474 PF: > { %p4357_p1 = scmp.ge.s32.totalorder %s4485_s24, 2  ;;  %s3551_s28 = sand.u32 1, %s4473_s21  }
0x1475   : > { %s3552_s14 = scalar_lea.sflag [#allocation3], %s3551_s28 }
0x1476   : > { %p4354_p2 = pnand %p4357_p1, %p4574_p6 }
0x1478   : > { %4468 = dma.done.wait (!%p4354_p2), %s3552_s14, 64  }
0x1479   : > { %4470 = vsyncadd (!%p4354_p2), %s3552_s14, 4294967232  ;;  %p16_p3 = scmp.ge.s32.totalorder %s4557_s27, 4   ;;  %s5818_s21 = smov %s4477_s22 }
0x147a   : > { %s5819_s22 = smov %s4481_s23  ;;  %s5820_s23 = smov %s4568_s30 }
0x147b   : > { %s5821_s24 = smov %s4557_s27  ;;  %18 = sbr.rel (!%p16_p3) target bundleno = 3 (0x3), region = 85 }
0x1482   :  { %3557 = vsyncpa [#allocation3], 1 }
0x1483   :  { %3559 = vsyncpa [#allocation3 + $0x1], 1 }

</bundles_post_ra>
